<compile_context>
chip_gen: v7x
topology: tpu7x:2x2x1
jax: 0.10.0
libtpu: 0.0.40
codegen_flags: <defaults>
</compile_context>

<pallas_src>
import jax
import jax.numpy as jnp
from jax.experimental import pallas as pl
from jax.experimental.pallas import tpu as pltpu


def _make_backbone_kernel(Bb, H, W, C, K, Fp, Hc):
    """Conv(KxK, same) + bias + ReLU + global-average-pool for a Bb-element batch tile."""
    pad = K // 2
    n_chunks = H // Hc
    inv_hw = 1.0 / (H * W)

    def kernel(x_ref, w_ref, b_ref, out_ref, xp_s):
        # x_ref : (Bb, H, W, C)        bf16  raw NHWC activation tile (unpadded)
        # w_ref : (K*K*C, Fp)          bf16  fused conv weight, F zero-padded to Fp(=128)
        # b_ref : (1, Fp)              f32   bias, zero-padded
        # out_ref: (Bb, Fp)            f32   pooled features (lane-dense)
        # xp_s  : (Bb, H+2p, W+2p, C)  bf16  VMEM scratch: halo-padded activation

        # in-kernel halo pad (borders zero, interior = input tile)
        xp_s[...] = jnp.zeros(xp_s.shape, xp_s.dtype)
        xp_s[:, pl.ds(pad, H), pl.ds(pad, W), :] = x_ref[...]

        acc = jnp.zeros((Bb, Fp), jnp.float32)          # tiny pooled accumulator
        for ci in range(n_chunks):                       # static, small trip count
            h0 = ci * Hc
            # assemble the im2col LHS for this row chunk ONCE (lane-axis concat of the
            # K*K shifted views), then a single MXU matmul with contraction K*K*C.
            taps = [xp_s[:, pl.ds(h0 + kh, Hc), pl.ds(kw, W), :]
                    for kh in range(K) for kw in range(K)]
            lhs = jnp.concatenate(taps, axis=-1).reshape(Bb * Hc * W, K * K * C)
            conv = jnp.dot(lhs, w_ref[...], preferred_element_type=jnp.float32)
            conv = jnp.maximum(conv + b_ref[...], 0.0)   # bias + ReLU (f32, VPU)
            # partial global-average-pool: reduce this chunk into the (Bb, Fp) accumulator
            acc = acc + jnp.sum(conv.reshape(Bb, Hc * W, Fp), axis=1)
        out_ref[...] = acc * inv_hw

    return kernel


def backbone_forward(clips_nchw, weight, bias):
    """clips_nchw: (B, C, H, W) f32; weight: (F, C, K, K) f32; bias: (F,) f32."""
    B, C, H, W = clips_nchw.shape
    F, _, K, _ = weight.shape
    pad = K // 2
    Hp, Wp = H + 2 * pad, W + 2 * pad
    Fp = max(((F + 127) // 128) * 128, 128)             # lane-dense feature width

    # ---- tiny glue: NCHW -> NHWC + bf16 cast only (halo pad happens in-kernel) ----
    x = jnp.transpose(clips_nchw, (0, 2, 3, 1)).astype(jnp.bfloat16)   # (B, H, W, C)

    # fused conv weight: w2[(kh*K + kw)*C + c, f] = weight[f, c, kh, kw]; F zero-padded
    w2 = jnp.transpose(weight, (2, 3, 1, 0)).reshape(K * K * C, F)
    w2 = jnp.pad(w2, ((0, 0), (0, Fp - F))).astype(jnp.bfloat16)
    b_row = jnp.pad(bias, (0, Fp - F)).reshape(1, Fp).astype(jnp.float32)

    # ---- tiling: H-row chunk size, then the largest batch tile that fits VMEM ----
    def pick_hc(d):
        # keep the f32 chunk (~Mc x Fp) small while giving the MXU a decent M dim
        target_rows = 256
        hc = 1
        for cand in range(1, H + 1):
            if H % cand == 0 and d * cand * W <= target_rows:
                hc = cand
        return hc

    def step_bytes(d, hc):
        mc = d * hc * W
        return (2 * d * H * W * C * 2            # double-buffered bf16 input block
                + d * Hp * Wp * C * 2            # padded VMEM scratch
                + 2 * mc * (K * K * C) * 2       # bf16 im2col chunk (+slack)
                + 2 * mc * Fp * 4                # f32 conv chunk (+slack)
                + 2 * K * K * C * Fp * 2         # weights (double-buffered)
                + 4 * d * Fp * 4)                # bias / accumulator / output

    budget = 8 << 20                             # conservative vs. 32 MiB scoped default
    Bb = B                                       # default: single grid step
    for d in sorted((d for d in range(1, B + 1) if B % d == 0), reverse=True):
        # keep the (Bb, Fp) output block sublane-aligned: full batch or a multiple of 8
        if (d == B or d % 8 == 0) and step_bytes(d, pick_hc(d)) <= budget:
            Bb = d
            break
    Hc = pick_hc(Bb)
    grid = (B // Bb,)

    kernel = _make_backbone_kernel(Bb, H, W, C, K, Fp, Hc)

    out = pl.pallas_call(
        kernel,
        out_shape=jax.ShapeDtypeStruct((B, Fp), jnp.float32),
        grid_spec=pltpu.PrefetchScalarGridSpec(
            num_scalar_prefetch=0,
            grid=grid,
            in_specs=[
                pl.BlockSpec((Bb, H, W, C), lambda i: (i, 0, 0, 0)),
                pl.BlockSpec((K * K * C, Fp), lambda i: (0, 0)),
                pl.BlockSpec((1, Fp), lambda i: (0, 0)),
            ],
            out_specs=pl.BlockSpec((Bb, Fp), lambda i: (i, 0)),
            scratch_shapes=[pltpu.VMEM((Bb, Hp, Wp, C), jnp.bfloat16)],
        ),
        compiler_params=pltpu.CompilerParams(
            dimension_semantics=("parallel",),
        ),
    )(x, w2, b_row)

    features = out[:, :F]                        # drop lane padding
    # Backbone.forward returns {'features': features}
    return {"features": features}


if __name__ == "__main__":
    key = jax.random.PRNGKey(0)
    k_x, k_w, k_b = jax.random.split(key, 3)

    # small shapes consistent with the module's forward: clips in NCHW
    B, C, H, W = 2, 4, 16, 16
    F, K = 32, 3

    clips = jax.random.normal(k_x, (B, C, H, W), dtype=jnp.float32)
    # deterministic "pretrained" parameters (synthetic, no checkpoint load)
    weight = 0.1 * jax.random.normal(k_w, (F, C, K, K), dtype=jnp.float32)
    bias = 0.01 * jax.random.normal(k_b, (F,), dtype=jnp.float32)

    out = backbone_forward(clips, weight, bias)
    feats = jax.block_until_ready(out["features"])
    assert feats.shape == (B, F) and feats.dtype == jnp.float32

    # sanity check against a full-f32 reference of the same backbone
    # (kernel operands are bf16-quantized, hence the loose tolerance)
    ref_conv = jax.lax.conv_general_dilated(
        clips, weight, window_strides=(1, 1), padding="SAME",
        dimension_numbers=("NCHW", "OIHW", "NCHW"),
        precision=jax.lax.Precision.HIGHEST)
    ref = jnp.mean(jnp.maximum(ref_conv + bias[None, :, None, None], 0.0), axis=(2, 3))
    assert jnp.allclose(feats, ref, atol=2e-2, rtol=2e-2), (
        float(jnp.max(jnp.abs(feats - ref))))

    print("KERNEL_OK")
</pallas_src>

<mosaic_0001>
module attributes {stable_mosaic.version = 11 : i64} {
  func.func @kernel(%arg0: i32, %arg1: memref<2x16x16x4xbf16, #tpu.memory_space<vmem>>, %arg2: memref<36x128xbf16, #tpu.memory_space<vmem>>, %arg3: memref<1x128xf32, #tpu.memory_space<vmem>>, %arg4: memref<2x128xf32, #tpu.memory_space<vmem>>, %arg5: memref<2x18x18x4xbf16, #tpu.memory_space<vmem>>) attributes {dimension_semantics = [#tpu.dimension_semantics<parallel>], iteration_bounds = array<i64: 1>, scalar_prefetch = 0 : i64, scratch_operands = 1 : i64, tpu.core_type = #tpu.core_type<tc>, window_params = [{transform_indices = @transform_0, window_bounds = array<i64: 2, 16, 16, 4>}, {pipeline_mode = #tpu.pipeline_mode<synchronous>, transform_indices = @transform_1, window_bounds = array<i64: 36, 128>}, {pipeline_mode = #tpu.pipeline_mode<synchronous>, transform_indices = @transform_2, window_bounds = array<i64: 1, 128>}, {transform_indices = @transform_3, window_bounds = array<i64: 2, 128>}]} {
    %cst = arith.constant 0.000000e+00 : bf16
    %0 = vector.broadcast %cst : bf16 to vector<2x18x18x4xbf16>
    %c0 = arith.constant 0 : index
    %c0_0 = arith.constant 0 : index
    %c0_1 = arith.constant 0 : index
    %c0_2 = arith.constant 0 : index
    %1 = vector.load %arg5[%c0, %c0_0, %c0_1, %c0_2] : memref<2x18x18x4xbf16, #tpu.memory_space<vmem>>, vector<2x18x18x4xbf16>
    tpu.vector_store %arg5[%c0, %c0_0, %c0_1, %c0_2], %0 {strides = array<i32>} : memref<2x18x18x4xbf16, #tpu.memory_space<vmem>>, vector<2x18x18x4xbf16>,
    %c0_3 = arith.constant 0 : index
    %c0_4 = arith.constant 0 : index
    %c0_5 = arith.constant 0 : index
    %c0_6 = arith.constant 0 : index
    %2 = vector.load %arg1[%c0_3, %c0_4, %c0_5, %c0_6] : memref<2x16x16x4xbf16, #tpu.memory_space<vmem>>, vector<2x16x16x4xbf16>
    %c0_7 = arith.constant 0 : index
    %c1 = arith.constant 1 : index
    %c1_8 = arith.constant 1 : index
    %c0_9 = arith.constant 0 : index
    %3 = vector.load %arg5[%c0_7, %c1, %c1_8, %c0_9] : memref<2x18x18x4xbf16, #tpu.memory_space<vmem>>, vector<2x16x16x4xbf16>
    tpu.vector_store %arg5[%c0_7, %c1, %c1_8, %c0_9], %2 {strides = array<i32>} : memref<2x18x18x4xbf16, #tpu.memory_space<vmem>>, vector<2x16x16x4xbf16>,
    %cst_10 = arith.constant 0.000000e+00 : f32
    %4 = vector.broadcast %cst_10 : f32 to vector<2x128xf32>
    %c0_11 = arith.constant 0 : index
    %c0_12 = arith.constant 0 : index
    %c0_13 = arith.constant 0 : index
    %c0_14 = arith.constant 0 : index
    %5 = vector.load %arg5[%c0_11, %c0_12, %c0_13, %c0_14] : memref<2x18x18x4xbf16, #tpu.memory_space<vmem>>, vector<2x8x16x4xbf16>
    %c0_15 = arith.constant 0 : index
    %c0_16 = arith.constant 0 : index
    %c1_17 = arith.constant 1 : index
    %c0_18 = arith.constant 0 : index
    %6 = vector.load %arg5[%c0_15, %c0_16, %c1_17, %c0_18] : memref<2x18x18x4xbf16, #tpu.memory_space<vmem>>, vector<2x8x16x4xbf16>
    %c0_19 = arith.constant 0 : index
    %c0_20 = arith.constant 0 : index
    %c2 = arith.constant 2 : index
    %c0_21 = arith.constant 0 : index
    %7 = vector.load %arg5[%c0_19, %c0_20, %c2, %c0_21] : memref<2x18x18x4xbf16, #tpu.memory_space<vmem>>, vector<2x8x16x4xbf16>
    %c0_22 = arith.constant 0 : index
    %c1_23 = arith.constant 1 : index
    %c0_24 = arith.constant 0 : index
    %c0_25 = arith.constant 0 : index
    %8 = vector.load %arg5[%c0_22, %c1_23, %c0_24, %c0_25] : memref<2x18x18x4xbf16, #tpu.memory_space<vmem>>, vector<2x8x16x4xbf16>
    %c0_26 = arith.constant 0 : index
    %c1_27 = arith.constant 1 : index
    %c1_28 = arith.constant 1 : index
    %c0_29 = arith.constant 0 : index
    %9 = vector.load %arg5[%c0_26, %c1_27, %c1_28, %c0_29] : memref<2x18x18x4xbf16, #tpu.memory_space<vmem>>, vector<2x8x16x4xbf16>
    %c0_30 = arith.constant 0 : index
    %c1_31 = arith.constant 1 : index
    %c2_32 = arith.constant 2 : index
    %c0_33 = arith.constant 0 : index
    %10 = vector.load %arg5[%c0_30, %c1_31, %c2_32, %c0_33] : memref<2x18x18x4xbf16, #tpu.memory_space<vmem>>, vector<2x8x16x4xbf16>
    %c0_34 = arith.constant 0 : index
    %c2_35 = arith.constant 2 : index
    %c0_36 = arith.constant 0 : index
    %c0_37 = arith.constant 0 : index
    %11 = vector.load %arg5[%c0_34, %c2_35, %c0_36, %c0_37] : memref<2x18x18x4xbf16, #tpu.memory_space<vmem>>, vector<2x8x16x4xbf16>
    %c0_38 = arith.constant 0 : index
    %c2_39 = arith.constant 2 : index
    %c1_40 = arith.constant 1 : index
    %c0_41 = arith.constant 0 : index
    %12 = vector.load %arg5[%c0_38, %c2_39, %c1_40, %c0_41] : memref<2x18x18x4xbf16, #tpu.memory_space<vmem>>, vector<2x8x16x4xbf16>
    %c0_42 = arith.constant 0 : index
    %c2_43 = arith.constant 2 : index
    %c2_44 = arith.constant 2 : index
    %c0_45 = arith.constant 0 : index
    %13 = vector.load %arg5[%c0_42, %c2_43, %c2_44, %c0_45] : memref<2x18x18x4xbf16, #tpu.memory_space<vmem>>, vector<2x8x16x4xbf16>
    %14 = tpu.concatenate %5, %6, %7, %8, %9, %10, %11, %12, %13 in 3 : vector<2x8x16x4xbf16>, vector<2x8x16x4xbf16>, vector<2x8x16x4xbf16>, vector<2x8x16x4xbf16>, vector<2x8x16x4xbf16>, vector<2x8x16x4xbf16>, vector<2x8x16x4xbf16>, vector<2x8x16x4xbf16>, vector<2x8x16x4xbf16> -> vector<2x8x16x36xbf16>
    %15 = vector.shape_cast %14 : vector<2x8x16x36xbf16> to vector<256x36xbf16>
    %c0_46 = arith.constant 0 : index
    %c0_47 = arith.constant 0 : index
    %16 = vector.load %arg2[%c0_46, %c0_47] : memref<36x128xbf16, #tpu.memory_space<vmem>>, vector<36x128xbf16>
    %cst_48 = arith.constant dense<0.000000e+00> : vector<256x128xf32>
    %17 = tpu.matmul %15, %16, %cst_48 {dimension_numbers = #tpu.dot_dimension_numbers<[1], [0], [0], [1], [0, 0, 1, 1], [], []>} : vector<256x36xbf16>, vector<36x128xbf16>, vector<256x128xf32> -> vector<256x128xf32>
    %c0_49 = arith.constant 0 : index
    %c0_50 = arith.constant 0 : index
    %18 = vector.load %arg3[%c0_49, %c0_50] : memref<1x128xf32, #tpu.memory_space<vmem>>, vector<1x128xf32>
    %19 = vector.broadcast %18 : vector<1x128xf32> to vector<256x128xf32>
    %20 = arith.addf %17, %19 : vector<256x128xf32>
    %cst_51 = arith.constant 0.000000e+00 : f32
    %21 = vector.broadcast %cst_51 : f32 to vector<256x128xf32>
    %22 = arith.maximumf %20, %21 : vector<256x128xf32>
    %23 = vector.shape_cast %22 : vector<256x128xf32> to vector<2x128x128xf32>
    %cst_52 = arith.constant dense<0.000000e+00> : vector<2x128xf32>
    %24 = vector.multi_reduction <add>, %23, %cst_52 [1] : vector<2x128x128xf32> to vector<2x128xf32>
    %25 = arith.addf %4, %24 : vector<2x128xf32>
    %c0_53 = arith.constant 0 : index
    %c8 = arith.constant 8 : index
    %c0_54 = arith.constant 0 : index
    %c0_55 = arith.constant 0 : index
    %26 = vector.load %arg5[%c0_53, %c8, %c0_54, %c0_55] : memref<2x18x18x4xbf16, #tpu.memory_space<vmem>>, vector<2x8x16x4xbf16>
    %c0_56 = arith.constant 0 : index
    %c8_57 = arith.constant 8 : index
    %c1_58 = arith.constant 1 : index
    %c0_59 = arith.constant 0 : index
    %27 = vector.load %arg5[%c0_56, %c8_57, %c1_58, %c0_59] : memref<2x18x18x4xbf16, #tpu.memory_space<vmem>>, vector<2x8x16x4xbf16>
    %c0_60 = arith.constant 0 : index
    %c8_61 = arith.constant 8 : index
    %c2_62 = arith.constant 2 : index
    %c0_63 = arith.constant 0 : index
    %28 = vector.load %arg5[%c0_60, %c8_61, %c2_62, %c0_63] : memref<2x18x18x4xbf16, #tpu.memory_space<vmem>>, vector<2x8x16x4xbf16>
    %c0_64 = arith.constant 0 : index
    %c9 = arith.constant 9 : index
    %c0_65 = arith.constant 0 : index
    %c0_66 = arith.constant 0 : index
    %29 = vector.load %arg5[%c0_64, %c9, %c0_65, %c0_66] : memref<2x18x18x4xbf16, #tpu.memory_space<vmem>>, vector<2x8x16x4xbf16>
    %c0_67 = arith.constant 0 : index
    %c9_68 = arith.constant 9 : index
    %c1_69 = arith.constant 1 : index
    %c0_70 = arith.constant 0 : index
    %30 = vector.load %arg5[%c0_67, %c9_68, %c1_69, %c0_70] : memref<2x18x18x4xbf16, #tpu.memory_space<vmem>>, vector<2x8x16x4xbf16>
    %c0_71 = arith.constant 0 : index
    %c9_72 = arith.constant 9 : index
    %c2_73 = arith.constant 2 : index
    %c0_74 = arith.constant 0 : index
    %31 = vector.load %arg5[%c0_71, %c9_72, %c2_73, %c0_74] : memref<2x18x18x4xbf16, #tpu.memory_space<vmem>>, vector<2x8x16x4xbf16>
    %c0_75 = arith.constant 0 : index
    %c10 = arith.constant 10 : index
    %c0_76 = arith.constant 0 : index
    %c0_77 = arith.constant 0 : index
    %32 = vector.load %arg5[%c0_75, %c10, %c0_76, %c0_77] : memref<2x18x18x4xbf16, #tpu.memory_space<vmem>>, vector<2x8x16x4xbf16>
    %c0_78 = arith.constant 0 : index
    %c10_79 = arith.constant 10 : index
    %c1_80 = arith.constant 1 : index
    %c0_81 = arith.constant 0 : index
    %33 = vector.load %arg5[%c0_78, %c10_79, %c1_80, %c0_81] : memref<2x18x18x4xbf16, #tpu.memory_space<vmem>>, vector<2x8x16x4xbf16>
    %c0_82 = arith.constant 0 : index
    %c10_83 = arith.constant 10 : index
    %c2_84 = arith.constant 2 : index
    %c0_85 = arith.constant 0 : index
    %34 = vector.load %arg5[%c0_82, %c10_83, %c2_84, %c0_85] : memref<2x18x18x4xbf16, #tpu.memory_space<vmem>>, vector<2x8x16x4xbf16>
    %35 = tpu.concatenate %26, %27, %28, %29, %30, %31, %32, %33, %34 in 3 : vector<2x8x16x4xbf16>, vector<2x8x16x4xbf16>, vector<2x8x16x4xbf16>, vector<2x8x16x4xbf16>, vector<2x8x16x4xbf16>, vector<2x8x16x4xbf16>, vector<2x8x16x4xbf16>, vector<2x8x16x4xbf16>, vector<2x8x16x4xbf16> -> vector<2x8x16x36xbf16>
    %36 = vector.shape_cast %35 : vector<2x8x16x36xbf16> to vector<256x36xbf16>
    %c0_86 = arith.constant 0 : index
    %c0_87 = arith.constant 0 : index
    %37 = vector.load %arg2[%c0_86, %c0_87] : memref<36x128xbf16, #tpu.memory_space<vmem>>, vector<36x128xbf16>
    %cst_88 = arith.constant dense<0.000000e+00> : vector<256x128xf32>
    %38 = tpu.matmul %36, %37, %cst_88 {dimension_numbers = #tpu.dot_dimension_numbers<[1], [0], [0], [1], [0, 0, 1, 1], [], []>} : vector<256x36xbf16>, vector<36x128xbf16>, vector<256x128xf32> -> vector<256x128xf32>
    %c0_89 = arith.constant 0 : index
    %c0_90 = arith.constant 0 : index
    %39 = vector.load %arg3[%c0_89, %c0_90] : memref<1x128xf32, #tpu.memory_space<vmem>>, vector<1x128xf32>
    %40 = vector.broadcast %39 : vector<1x128xf32> to vector<256x128xf32>
    %41 = arith.addf %38, %40 : vector<256x128xf32>
    %cst_91 = arith.constant 0.000000e+00 : f32
    %42 = vector.broadcast %cst_91 : f32 to vector<256x128xf32>
    %43 = arith.maximumf %41, %42 : vector<256x128xf32>
    %44 = vector.shape_cast %43 : vector<256x128xf32> to vector<2x128x128xf32>
    %cst_92 = arith.constant dense<0.000000e+00> : vector<2x128xf32>
    %45 = vector.multi_reduction <add>, %44, %cst_92 [1] : vector<2x128x128xf32> to vector<2x128xf32>
    %46 = arith.addf %25, %45 : vector<2x128xf32>
    %cst_93 = arith.constant 3.906250e-03 : f32
    %47 = vector.broadcast %cst_93 : f32 to vector<2x128xf32>
    %48 = arith.mulf %46, %47 : vector<2x128xf32>
    %c0_94 = arith.constant 0 : index
    %c0_95 = arith.constant 0 : index
    %49 = vector.load %arg4[%c0_94, %c0_95] : memref<2x128xf32, #tpu.memory_space<vmem>>, vector<2x128xf32>
    tpu.vector_store %arg4[%c0_94, %c0_95], %48 {strides = array<i32>} : memref<2x128xf32, #tpu.memory_space<vmem>>, vector<2x128xf32>,
    return
  }
  func.func @transform_0(%arg0: i32) -> (i32, i32, i32, i32) {
    %c0_i32 = arith.constant 0 : i32
    %c0_i32_0 = arith.constant 0 : i32
    %c0_i32_1 = arith.constant 0 : i32
    %c0_i32_2 = arith.constant 0 : i32
    return %arg0, %c0_i32, %c0_i32_0, %c0_i32_1 : i32, i32, i32, i32
  }
  func.func @transform_1(%arg0: i32) -> (i32, i32) {
    %c0_i32 = arith.constant 0 : i32
    %c0_i32_0 = arith.constant 0 : i32
    %c0_i32_1 = arith.constant 0 : i32
    return %c0_i32, %c0_i32_0 : i32, i32
  }
  func.func @transform_2(%arg0: i32) -> (i32, i32) {
    %c0_i32 = arith.constant 0 : i32
    %c0_i32_0 = arith.constant 0 : i32
    %c0_i32_1 = arith.constant 0 : i32
    return %c0_i32, %c0_i32_0 : i32, i32
  }
  func.func @transform_3(%arg0: i32) -> (i32, i32) {
    %c0_i32 = arith.constant 0 : i32
    %c0_i32_0 = arith.constant 0 : i32
    return %arg0, %c0_i32 : i32, i32
  }
}

</mosaic_0001>

<bundles_post_ra>
// kernel: tpu_custom_call.1
= control target key start
LH: loop header
LB: loop body
LE: loop exit
PB: predicated region body
PF: predicated region fallthrough
CT: control target
= control target key end

     0   :  { %vm16_vm0 = vcmask 27648   ;;  %vm19_vm1 = vcmask 24576   ;;  %v6312_v0 = vmov 0   ;;  %vm190_vm2 = vsmask.f32 256  ;;  %s6313_s5 = smov 4   ;;  %s9425_s0 = inlined_call_operand.vmem [shape: bf16[2,16,16,4], index: 0, kind: input, shape index: {}]   ;;  %s9426_s1 = inlined_call_operand.vmem [shape: bf16[36,128], index: 1, kind: input, shape index: {}]   ;;  %s9427_s2 = inlined_call_operand.vmem [shape: f32[1,128], index: 2, kind: input, shape index: {}]   ;;  %s9428_s3 = inlined_call_operand.hbm [shape: f32[2,128], index: 3, kind: output, shape index: {}]  }
   0x1   :  { %17 = vst.msk [vmem:[#allocation2] sm:$0xf] %vm16_vm0, %v6312_v0  ;;  %18 = vst.msk [vmem:[#allocation2 + $0x4] sm:$0xf] %vm16_vm0, %v6312_v0  ;;  %v128_v1 = vld [vmem:[%s9425_s0 + $0x8] sm:$0xf] }
   0x2   :  { %20 = vst.msk [vmem:[#allocation2 + $0x8] sm:$0x1] %vm19_vm1, %v6312_v0  ;;  %23 = vst.msk [vmem:[#allocation2 + $0x14] sm:$0x1] %vm19_vm1, %v6312_v0  ;;  %v129_v2 = vld [vmem:[%s9425_s0 + $0xc] sm:$0xf] }
   0x3   :  { %21 = vst.msk [vmem:[#allocation2 + $0xc] sm:$0xf] %vm16_vm0, %v6312_v0  ;;  %22 = vst.msk [vmem:[#allocation2 + $0x10] sm:$0xf] %vm16_vm0, %v6312_v0  ;;  %vm191_vm3 = vsmask.f32 4368 }
   0x4   :  { %24 = vst.msk [vmem:[#allocation2 + $0x18] sm:$0xf] %vm16_vm0, %v6312_v0  ;;  %25 = vst.msk [vmem:[#allocation2 + $0x1c] sm:$0xf] %vm16_vm0, %v6312_v0  ;;  %v211_v3 = vshrl.u32 %v128_v1, 16  ;;  %v219_v4 = vshrl.u32 %v129_v2, 16 }
   0x5   :  { %26 = vst.msk [vmem:[#allocation2 + $0x20] sm:$0x1] %vm19_vm1, %v6312_v0  ;;  %29 = vst.msk [vmem:[#allocation2 + $0x2c] sm:$0x1] %vm19_vm1, %v6312_v0  ;;  %v222_v5 = vshll.u32 %v129_v2, 16  ;;  %v214_v8 = vshll.u32 %v128_v1, 16 }
   0x6   :  { %27 = vst.msk [vmem:[#allocation2 + $0x24] sm:$0xf] %vm16_vm0, %v6312_v0  ;;  %28 = vst.msk [vmem:[#allocation2 + $0x28] sm:$0xf] %vm16_vm0, %v6312_v0  ;;  %v126_v6 = vld [vmem:[%s9425_s0] sm:$0xf] }
   0x7   :  { %30 = vst.msk [vmem:[#allocation2 + $0x30] sm:$0xf] %vm16_vm0, %v6312_v0  ;;  %31 = vst.msk [vmem:[#allocation2 + $0x34] sm:$0xf] %vm16_vm0, %v6312_v0  ;;  %v213_v7 = vrot.slane %v211_v3, 7  ;;  %v221_v9 = vrot.slane %v219_v4, 7 }
   0x8   :  { %32 = vst.msk [vmem:[#allocation2 + $0x38] sm:$0x1] %vm19_vm1, %v6312_v0  ;;  %35 = vst.msk [vmem:[#allocation2 + $0x44] sm:$0x1] %vm19_vm1, %v6312_v0  ;;  %v127_v10 = vld [vmem:[%s9425_s0 + $0x4] sm:$0xf] }
   0x9   :  { %33 = vst.msk [vmem:[#allocation2 + $0x3c] sm:$0xf] %vm16_vm0, %v6312_v0  ;;  %34 = vst.msk [vmem:[#allocation2 + $0x40] sm:$0xf] %vm16_vm0, %v6312_v0  ;;  %v194_v11 = vshrl.u32 %v126_v6, 16  ;;  %v202_v13 = vshrl.u32 %v127_v10, 16  ;;  %v224_v17 = vor.u32 %v222_v5, %v221_v9  ;;  %v216_v26 = vor.u32 %v214_v8, %v213_v7 }
   0xa   :  { %36 = vst.msk [vmem:[#allocation2 + $0x48] sm:$0xf] %vm16_vm0, %v6312_v0  ;;  %37 = vst.msk [vmem:[#allocation2 + $0x4c] sm:$0xf] %vm16_vm0, %v6312_v0  ;;  %vm835_vm5 = vsmask.f32 7938 }
   0xb   :  { %38 = vst.msk [vmem:[#allocation2 + $0x50] sm:$0x1] %vm19_vm1, %v6312_v0  ;;  %41 = vst.msk [vmem:[#allocation2 + $0x5c] sm:$0x1] %vm19_vm1, %v6312_v0  ;;  %v205_v14 = vshll.u32 %v127_v10, 16  ;;  %v217_v16 = vrot.slane %v213_v7, 4 }
   0xc   :  { %39 = vst.msk [vmem:[#allocation2 + $0x54] sm:$0xf] %vm16_vm0, %v6312_v0  ;;  %40 = vst.msk [vmem:[#allocation2 + $0x58] sm:$0xf] %vm16_vm0, %v6312_v0  ;;  %v130_v15 = vld [vmem:[%s9425_s0 + $0x10] sm:$0xf] }
   0xd   :  { %42 = vst.msk [vmem:[#allocation2 + $0x60] sm:$0xf] %vm16_vm0, %v6312_v0  ;;  %43 = vst.msk [vmem:[#allocation2 + $0x64] sm:$0xf] %vm16_vm0, %v6312_v0  ;;  %vm1384_vm6 = vsmask.f32 7424 }
   0xe   :  { %44 = vst.msk [vmem:[#allocation2 + $0x68] sm:$0x1] %vm19_vm1, %v6312_v0  ;;  %47 = vst.msk [vmem:[#allocation2 + $0x74] sm:$0x1] %vm19_vm1, %v6312_v0  ;;  %v226_v18 = vrot.slane %v221_v9, 4  ;;  %v197_v19 = vshll.u32 %v126_v6, 16 }
   0xf   :  { %45 = vst.msk [vmem:[#allocation2 + $0x6c] sm:$0xf] %vm16_vm0, %v6312_v0  ;;  %46 = vst.msk [vmem:[#allocation2 + $0x70] sm:$0xf] %vm16_vm0, %v6312_v0  ;;  %v196_v20 = vrot.slane %v194_v11, 7  ;;  %v204_v21 = vrot.slane %v202_v13, 7 }
  0x10   :  { %48 = vst.msk [vmem:[#allocation2 + $0x78] sm:$0xf] %vm16_vm0, %v6312_v0  ;;  %49 = vst.msk [vmem:[#allocation2 + $0x7c] sm:$0xf] %vm16_vm0, %v6312_v0  ;;  %v228_v22 = vshrl.u32 %v130_v15, 16  ;;  %v231_v23 = vshll.u32 %v130_v15, 16 }
  0x11   :  { %50 = vst.msk [vmem:[#allocation2 + $0x80] sm:$0x1] %vm19_vm1, %v6312_v0  ;;  %53 = vst.msk [vmem:[#allocation2 + $0x8c] sm:$0x1] %vm19_vm1, %v6312_v0  ;;  %v1063_v24 = vld [vmem:[#allocation2] sm:$0xf]  ;;  %v207_v33 = vor.u32 %v205_v14, %v204_v21  ;;  %v199_v36 = vor.u32 %v197_v19, %v196_v20 }
  0x12   :  { %51 = vst.msk [vmem:[#allocation2 + $0x84] sm:$0xf] %vm16_vm0, %v6312_v0  ;;  %52 = vst.msk [vmem:[#allocation2 + $0x88] sm:$0xf] %vm16_vm0, %v6312_v0  ;;  %v6578_v25 = vld [vmem:[#allocation2 + $0x4] sm:$0xf] }
  0x13   :  { %54 = vst.msk [vmem:[#allocation2 + $0x90] sm:$0xf] %vm16_vm0, %v6312_v0  ;;  %55 = vst.msk [vmem:[#allocation2 + $0x94] sm:$0xf] %vm16_vm0, %v6312_v0  ;;  %v6583_v28 = vcombine.low %v1063_v24, %v6578_v25  ;;  %v200_v32 = vrot.slane %v196_v20, 4  ;;  %v209_v48 = vrot.slane %v204_v21, 4 }
  0x14   :  { %56 = vst.msk [vmem:[#allocation2 + $0x98] sm:$0x1] %vm19_vm1, %v6312_v0  ;;  %59 = vst.msk [vmem:[#allocation2 + $0xa4] sm:$0x1] %vm19_vm1, %v6312_v0  ;;  %v846_v35 = vld [vmem:[#allocation2 + $0x18] sm:$0xf] }
  0x15   :  { %57 = vst.msk [vmem:[#allocation2 + $0x9c] sm:$0xf] %vm16_vm0, %v6312_v0  ;;  %58 = vst.msk [vmem:[#allocation2 + $0xa0] sm:$0xf] %vm16_vm0, %v6312_v0  ;;  %v1386_v37 = vshrl.u32 %v6583_v28, 16  ;;  %v1388_v38 = vshll.u32 %v6583_v28, 16 }
  0x16   :  { %60 = vst.msk [vmem:[#allocation2 + $0xa8] sm:$0xf] %vm16_vm0, %v6312_v0  ;;  %61 = vst.msk [vmem:[#allocation2 + $0xac] sm:$0xf] %vm16_vm0, %v6312_v0  ;;  %v131_v43 = vld [vmem:[%s9425_s0 + $0x14] sm:$0xf] }
  0x17   :  { %62 = vst.msk [vmem:[#allocation2 + $0xb0] sm:$0x1] %vm19_vm1, %v6312_v0  ;;  %65 = vst.msk [vmem:[#allocation2 + $0xbc] sm:$0x1] %vm19_vm1, %v6312_v0  ;;  %v132_v44 = vld [vmem:[%s9425_s0 + $0x18] sm:$0xf] }
  0x18   :  { %63 = vst.msk [vmem:[#allocation2 + $0xb4] sm:$0xf] %vm16_vm0, %v6312_v0  ;;  %64 = vst.msk [vmem:[#allocation2 + $0xb8] sm:$0xf] %vm16_vm0, %v6312_v0  ;;  %v850_v46 = vld [vmem:[#allocation2 + $0x20] sm:$0x1] }
  0x19   :  { %66 = vst.msk [vmem:[#allocation2 + $0xc0] sm:$0xf] %vm16_vm0, %v6312_v0  ;;  %67 = vst.msk [vmem:[#allocation2 + $0xc4] sm:$0xf] %vm16_vm0, %v6312_v0  ;;  %v837_v49 = vld [vmem:[#allocation2 + $0xc] sm:$0xf] }
  0x1a   :  { %68 = vst.msk [vmem:[#allocation2 + $0xc8] sm:$0x1] %vm19_vm1, %v6312_v0  ;;  %71 = vst.msk [vmem:[#allocation2 + $0xd4] sm:$0x1] %vm19_vm1, %v6312_v0  ;;  %v230_v50 = vrot.slane %v228_v22, 7  ;;  %v1390_v51 = vrot.slane %v1388_v38, 1 }
  0x1b   :  { %69 = vst.msk [vmem:[#allocation2 + $0xcc] sm:$0xf] %vm16_vm0, %v6312_v0  ;;  %70 = vst.msk [vmem:[#allocation2 + $0xd0] sm:$0xf] %vm16_vm0, %v6312_v0  ;;  %v843_v55 = vld [vmem:[#allocation2 + $0x14] sm:$0x1] }
  0x1c   :  { %72 = vst.msk [vmem:[#allocation2 + $0xd8] sm:$0xf] %vm16_vm0, %v6312_v0  ;;  %73 = vst.msk [vmem:[#allocation2 + $0xdc] sm:$0xf] %vm16_vm0, %v6312_v0  ;;  %v853_v60 = vld [vmem:[#allocation2 + $0x24] sm:$0xf]  ;;  %v1391_v61 = vor.u32 %v1390_v51, %v1386_v37  ;;  %v233_v63 = vor.u32 %v231_v23, %v230_v50 }
  0x1d   :  { %74 = vst.msk [vmem:[#allocation2 + $0xe0] sm:$0x1] %vm19_vm1, %v6312_v0  ;;  %77 = vst.msk [vmem:[#allocation2 + $0xec] sm:$0x1] %vm19_vm1, %v6312_v0  ;;  %v133_v1 = vld [vmem:[%s9425_s0 + $0x1c] sm:$0xf] }
  0x1e   :  { %75 = vst.msk [vmem:[#allocation2 + $0xe4] sm:$0xf] %vm16_vm0, %v6312_v0  ;;  %76 = vst.msk [vmem:[#allocation2 + $0xe8] sm:$0xf] %vm16_vm0, %v6312_v0  ;;  %v236_v3 = vshrl.u32 %v131_v43, 16  ;;  %v239_v4 = vshll.u32 %v131_v43, 16 }
  0x1f   :  { %78 = vst.msk [vmem:[#allocation2 + $0xf0] sm:$0xf] %vm16_vm0, %v6312_v0  ;;  %79 = vst.msk [vmem:[#allocation2 + $0xf4] sm:$0xf] %vm16_vm0, %v6312_v0  ;;  %v245_v5 = vshrl.u32 %v132_v44, 16  ;;  %v248_v11 = vshll.u32 %v132_v44, 16 }
  0x20   :  { %80 = vst.msk [vmem:[#allocation2 + $0xf8] sm:$0x1] %vm19_vm1, %v6312_v0  ;;  %83 = vst.msk [vmem:[#allocation2 + $0x104] sm:$0x1] %vm19_vm1, %v6312_v0  ;;  %v134_v6 = vld [vmem:[%s9425_s0 + $0x20] sm:$0xf] }
  0x21   :  { %81 = vst.msk [vmem:[#allocation2 + $0xfc] sm:$0xf] %vm16_vm0, %v6312_v0  ;;  %82 = vst.msk [vmem:[#allocation2 + $0x100] sm:$0xf] %vm16_vm0, %v6312_v0  ;;  %v857_v10 = vld [vmem:[#allocation2 + $0x2c] sm:$0x1] }
  0x22   :  { %84 = vst.msk [vmem:[#allocation2 + $0x108] sm:$0xf] %vm16_vm0, %v6312_v0  ;;  %85 = vst.msk [vmem:[#allocation2 + $0x10c] sm:$0xf] %vm16_vm0, %v6312_v0  ;;  %v135_v13 = vld [vmem:[%s9425_s0 + $0x24] sm:$0xf] }
  0x23   :  { %86 = vst.msk [vmem:[#allocation2 + $0x110] sm:$0x1] %vm19_vm1, %v6312_v0  ;;  %89 = vst.msk [vmem:[#allocation2 + $0x11c] sm:$0x1] %vm19_vm1, %v6312_v0  ;;  %v1079_v30 = vld [vmem:[#allocation2 + $0xd8] sm:$0xf] }
  0x24   :  { %87 = vst.msk [vmem:[#allocation2 + $0x114] sm:$0xf] %vm16_vm0, %v6312_v0  ;;  %88 = vst.msk [vmem:[#allocation2 + $0x118] sm:$0xf] %vm16_vm0, %v6312_v0  ;;  %v6594_v34 = vld [vmem:[#allocation2 + $0xdc] sm:$0xf] }
  0x25   :  { %90 = vst.msk [vmem:[#allocation2 + $0x120] sm:$0xf] %vm16_vm0, %v6312_v0  ;;  %91 = vst.msk [vmem:[#allocation2 + $0x124] sm:$0xf] %vm16_vm0, %v6312_v0  ;;  %v6600_v40 = vcombine.low %v1079_v30, %v6594_v34  ;;  %v238_v15 = vrot.slane %v236_v3, 7  ;;  %v262_v21 = vshrl.u32 %v134_v6, 16 }
  0x26   :  { %92 = vst.msk [vmem:[#allocation2 + $0x128] sm:$0x1] %vm19_vm1, %v6312_v0  ;;  %95 = vst.msk [vmem:[#allocation2 + $0x134] sm:$0x1] %vm19_vm1, %v6312_v0  ;;  %v860_v20 = vld [vmem:[#allocation2 + $0x30] sm:$0xf] }
  0x27   :  { %93 = vst.msk [vmem:[#allocation2 + $0x12c] sm:$0xf] %vm16_vm0, %v6312_v0  ;;  %94 = vst.msk [vmem:[#allocation2 + $0x130] sm:$0xf] %vm16_vm0, %v6312_v0  ;;  %v1482_v53 = vshrl.u32 %v6600_v40, 16  ;;  %v1484_v54 = vshll.u32 %v6600_v40, 16 }
  0x28   :  { %96 = vst.msk [vmem:[#allocation2 + $0x138] sm:$0xf] %vm16_vm0, %v6312_v0  ;;  %97 = vst.msk [vmem:[#allocation2 + $0x13c] sm:$0xf] %vm16_vm0, %v6312_v0  ;;  %v265_v22 = vshll.u32 %v134_v6, 16  ;;  %v270_v23 = vshrl.u32 %v135_v13, 16 }
  0x29   :  { %98 = vst.msk [vmem:[#allocation2 + $0x140] sm:$0x1] %vm19_vm1, %v6312_v0  ;;  %101 = vst.msk [vmem:[#allocation2 + $0x14c] sm:$0x1] %vm19_vm1, %v6312_v0  ;;  %v1486_v62 = vrot.slane %v1484_v54, 1  ;;  %v264_v37 = vrot.slane %v262_v21, 7 }
  0x2a   :  { %99 = vst.msk [vmem:[#allocation2 + $0x144] sm:$0xf] %vm16_vm0, %v6312_v0  ;;  %100 = vst.msk [vmem:[#allocation2 + $0x148] sm:$0xf] %vm16_vm0, %v6312_v0  ;;  %v272_v38 = vrot.slane %v270_v23, 7  ;;  %vm1657_vm9 = vcmask 1046528  }
  0x2b   :  { %102 = vst.msk [vmem:[#allocation2 + $0x150] sm:$0xf] %vm16_vm0, %v6312_v0  ;;  %103 = vst.msk [vmem:[#allocation2 + $0x154] sm:$0xf] %vm16_vm0, %v6312_v0  ;;  %v1487_v8 = vor.u32 %v1486_v62, %v1482_v53  ;;  %v267_v53 = vor.u32 %v265_v22, %v264_v37  ;;  %v139_v22 = vld [vmem:[%s9425_s0 + $0x34] sm:$0xf] }
  0x2c   :  { %104 = vst.msk [vmem:[#allocation2 + $0x158] sm:$0x1] %vm19_vm1, %v6312_v0  ;;  %107 = vst.msk [vmem:[#allocation2 + $0x164] sm:$0x1] %vm19_vm1, %v6312_v0  ;;  %v277_v62 = vrot.slane %v272_v38, 4  ;;  %s6314_s16 = smov 8  }
  0x2d   :  { %105 = vst.msk [vmem:[#allocation2 + $0x15c] sm:$0xf] %vm16_vm0, %v6312_v0  ;;  %106 = vst.msk [vmem:[#allocation2 + $0x160] sm:$0xf] %vm16_vm0, %v6312_v0  ;;  %s6315_s25 = smov 12   ;;  %s6316_s30 = smov 16  }
  0x2e   :  { %108 = vst.msk [vmem:[#allocation2 + $0x168] sm:$0xf] %vm16_vm0, %v6312_v0  ;;  %109 = vst.msk [vmem:[#allocation2 + $0x16c] sm:$0xf] %vm16_vm0, %v6312_v0  ;;  %s6317_s13 = smov 20   ;;  %s6318_s26 = smov 24  }
  0x2f   :  { %110 = vst.msk [vmem:[#allocation2 + $0x170] sm:$0x1] %vm19_vm1, %v6312_v0  ;;  %113 = vst.msk [vmem:[#allocation2 + $0x17c] sm:$0x1] %vm19_vm1, %v6312_v0  ;;  %s6319_s6 = smov 28   ;;  %s6320_s11 = smov 32  }
  0x30   :  { %111 = vst.msk [vmem:[#allocation2 + $0x174] sm:$0xf] %vm16_vm0, %v6312_v0  ;;  %112 = vst.msk [vmem:[#allocation2 + $0x178] sm:$0xf] %vm16_vm0, %v6312_v0  ;;  %vm3086_vm10 = vcmask 1041408  }
  0x31   :  { %114 = vst.msk [vmem:[#allocation2 + $0x180] sm:$0xf] %vm16_vm0, %v6312_v0  ;;  %115 = vst.msk [vmem:[#allocation2 + $0x184] sm:$0xf] %vm16_vm0, %v6312_v0 }
  0x32   :  { %116 = vst.msk [vmem:[#allocation2 + $0x188] sm:$0x1] %vm19_vm1, %v6312_v0  ;;  %119 = vst.msk [vmem:[#allocation2 + $0x194] sm:$0x1] %vm19_vm1, %v6312_v0 }
  0x33   :  { %117 = vst.msk [vmem:[#allocation2 + $0x18c] sm:$0xf] %vm16_vm0, %v6312_v0  ;;  %118 = vst.msk [vmem:[#allocation2 + $0x190] sm:$0xf] %vm16_vm0, %v6312_v0 }
  0x34   :  { %120 = vst.msk [vmem:[#allocation2 + $0x198] sm:$0xf] %vm16_vm0, %v6312_v0  ;;  %121 = vst.msk [vmem:[#allocation2 + $0x19c] sm:$0xf] %vm16_vm0, %v6312_v0 }
  0x35   :  { %122 = vst.msk [vmem:[#allocation2 + $0x1a0] sm:$0x1] %vm19_vm1, %v6312_v0  ;;  %125 = vst.msk [vmem:[#allocation2 + $0x1ac] sm:$0x1] %vm19_vm1, %v6312_v0 }
  0x36   :  { %123 = vst.msk [vmem:[#allocation2 + $0x1a4] sm:$0xf] %vm16_vm0, %v6312_v0  ;;  %124 = vst.msk [vmem:[#allocation2 + $0x1a8] sm:$0xf] %vm16_vm0, %v6312_v0  ;;  %v234_v0 = vrot.slane %v230_v50, 4 }
  0x37   :  { %vm6571_vm4 = vmor %vm190_vm2, %vm191_vm3  ;;  %9454 = vst [vmem:[#allocation6_spill] sm:$0xff] %v6583_v28  ;;  %v6585_v29 = vld [vmem:[#allocation2 + $0x8] ss:$0 sps:$4 sm:$0x11]  }
  0x38   :  { %v225_v27 = vsel %vm6571_vm4, %v217_v16, %v224_v17  ;;  %vm6589_vm7 = vmand %vm16_vm0, %vm835_vm5  ;;  %v1393_v39 = vshll.u32 %v6585_v29, 16  ;;  %9457 = vst [vmem:[#allocation7_spill] sm:$0xff] %v6600_v40  ;;  %v6602_v41 = vld [vmem:[#allocation2 + $0xe0] ss:$0 sps:$4 sm:$0x11]   ;;  %v208_v47 = vsel %vm6571_vm4, %v200_v32, %v207_v33  ;;  %v247_v16 = vrot.slane %v245_v5, 7 }
  0x39   :  { %849 = vst.msk [vmem:[#allocation2 + $0x1c] sm:$0xf] %vm16_vm0, %v225_v27  ;;  %vm6606_vm8 = vmand %vm19_vm1, %vm190_vm2  ;;  %v847_v45 = vsel %vm6589_vm7, %v216_v26, %v846_v35  ;;  %v1489_v56 = vshll.u32 %v6602_v41, 16  ;;  %v838_v58 = vsel %vm6589_vm7, %v199_v36, %v837_v49  ;;  %v854_v9 = vsel %vm6589_vm7, %v233_v63, %v853_v60  ;;  %v871_v63 = vld [vmem:[#allocation2 + $0x44] sm:$0x1] }
  0x3a   :  { %v1395_v52 = vrot.slane %v1393_v39, 1  ;;  %848 = vst [vmem:[#allocation2 + $0x18] sm:$0xf] %v847_v45  ;;  %840 = vst.msk [vmem:[#allocation2 + $0x10] sm:$0xf] %vm16_vm0, %v208_v47  ;;  %v851_v57 = vsel %vm6606_vm8, %v226_v18, %v850_v46  ;;  %v844_v59 = vsel %vm6606_vm8, %v209_v48, %v843_v55  ;;  %v253_v17 = vshrl.u32 %v133_v1, 16 }
  0x3b   :  { %852 = vst [vmem:[#allocation2 + $0x20] sm:$0x1] %v851_v57  ;;  %839 = vst [vmem:[#allocation2 + $0xc] sm:$0xf] %v838_v58  ;;  %v1491_v2 = vrot.slane %v1489_v56, 1  ;;  %v256_v18 = vshll.u32 %v133_v1, 16  ;;  %v241_v26 = vor.u32 %v239_v4, %v238_v15  ;;  %v250_v30 = vor.u32 %v248_v11, %v247_v16 }
  0x3c   :  { %845 = vst [vmem:[#allocation2 + $0x14] sm:$0x1] %v844_v59  ;;  %v1396_v7 = vsel %vm1384_vm6, %v1391_v61, %v1395_v52  ;;  %855 = vst [vmem:[#allocation2 + $0x24] sm:$0xf] %v854_v9  ;;  %v243_v27 = vrot.slane %v238_v15, 4  ;;  %v251_v32 = vrot.slane %v247_v16, 4  ;;  %v872_v15 = vsel %vm6606_vm8, %v277_v62, %v871_v63 }
  0x3d   :  { %1577 = vrot.lane.b32.xlu0 %v1396_v7, %s6313_s5  ;;  %v1492_v19 = vsel %vm1384_vm6, %v1487_v8, %v1491_v2  ;;  %v255_v36 = vrot.slane %v253_v17, 7  ;;  %v242_v43 = vsel %vm6571_vm4, %v234_v0, %v241_v26  ;;  %v861_v45 = vsel %vm6589_vm7, %v250_v30, %v860_v20  ;;  %v864_v46 = vld [vmem:[#allocation2 + $0x38] sm:$0x1]  ;;  %v867_v48 = vld [vmem:[#allocation2 + $0x3c] sm:$0xf] }
  0x3e   :  { %v858_v44 = vsel %vm6606_vm8, %v243_v27, %v857_v10  ;;  %v273_v47 = vshll.u32 %v135_v13, 16  ;;  %856 = vst.msk [vmem:[#allocation2 + $0x28] sm:$0xf] %vm16_vm0, %v242_v43  ;;  %862 = vst [vmem:[#allocation2 + $0x30] sm:$0xf] %v861_v45  ;;  %v268_v58 = vrot.slane %v264_v37, 4  ;;  %v868_v10 = vsel %vm6589_vm7, %v267_v53, %v867_v48 }
  0x3f   :  { %859 = vst [vmem:[#allocation2 + $0x2c] sm:$0x1] %v858_v44  ;;  %v258_v52 = vor.u32 %v256_v18, %v255_v36  ;;  %v260_v57 = vrot.slane %v255_v36, 4  ;;  %v136_v0 = vld [vmem:[%s9425_s0 + $0x28] sm:$0xf] }
  0x40   :  { %v6643_v14 = vld [vmem:[#allocation2 + $0x1c] sm:$0xf]  ;;  %v275_v61 = vor.u32 %v273_v47, %v272_v38  ;;  %v137_v5 = vld [vmem:[%s9425_s0 + $0x2c] sm:$0xf]  ;;  %869 = vst [vmem:[#allocation2 + $0x3c] sm:$0xf] %v868_v10 }
  0x41   :  { %v1067_v24 = vld [vmem:[#allocation2 + $0x18] sm:$0xf]  ;;  %v6649_v35 = vld [vmem:[#allocation2 + $0x10] sm:$0xf]  ;;  %1593 = vrot.lane.b32.xlu0 %v1492_v19, %s6313_s5  ;;  %v259_v60 = vsel %vm6571_vm4, %v251_v32, %v258_v52  ;;  %v865_v8 = vsel %vm6606_vm8, %v260_v57, %v864_v46  ;;  %v279_v16 = vshrl.u32 %v136_v0, 16  ;;  %v282_v19 = vshll.u32 %v136_v0, 16 }
  0x42   :  { %v6647_v33 = vcombine.low %v1067_v24, %v6643_v14  ;;  %v6652_v39 = vld [vmem:[#allocation2 + $0x20] ss:$0 sps:$4 sm:$0x11]   ;;  %v1065_v51 = vld [vmem:[#allocation2 + $0xc] sm:$0xf]  ;;  %v276_v9 = vsel %vm6571_vm4, %v268_v58, %v275_v61  ;;  %v287_v20 = vshrl.u32 %v137_v5, 16 }
  0x43   :  { %v1417_v54 = vshll.u32 %v6652_v39, 16  ;;  %v6665_v55 = vcombine.low %v1065_v51, %v6649_v35  ;;  %v6667_v56 = vld [vmem:[#allocation2 + $0x14] ss:$0 sps:$4 sm:$0x11]   ;;  %863 = vst.msk [vmem:[#allocation2 + $0x34] sm:$0xf] %vm16_vm0, %v259_v60 }
  0x44   :  { %9460 = vst [vmem:[#allocation8_spill] sm:$0xff] %v6647_v33  ;;  %v1410_v49 = vshrl.u32 %v6647_v33, 16  ;;  %v1412_v50 = vshll.u32 %v6647_v33, 16  ;;  %v1405_v4 = vshll.u32 %v6667_v56, 16  ;;  %v1069_v7 = vld [vmem:[#allocation2 + $0x24] sm:$0xf] }
  0x45   :  { %9461 = vst [vmem:[#allocation9_spill] sm:$0xff] %v6665_v55  ;;  %v1419_v1 = vrot.slane %v1417_v54, 1  ;;  %v1398_v2 = vshrl.u32 %v6665_v55, 16  ;;  %v1400_v3 = vshll.u32 %v6665_v55, 16  ;;  %866 = vst [vmem:[#allocation2 + $0x38] sm:$0x1] %v865_v8 }
  0x46   :  { %v1414_v59 = vrot.slane %v1412_v50, 1  ;;  %v1407_v13 = vrot.slane %v1405_v4, 1  ;;  %870 = vst.msk [vmem:[#allocation2 + $0x40] sm:$0xf] %vm16_vm0, %v276_v9  ;;  %v138_v17 = vld [vmem:[%s9425_s0 + $0x30] sm:$0xf] }
  0x47   :  { %v1402_v11 = vrot.slane %v1400_v3, 1  ;;  %873 = vst [vmem:[#allocation2 + $0x44] sm:$0x1] %v872_v15  ;;  %v290_v21 = vshll.u32 %v137_v5, 16  ;;  %v6698_v24 = vld [vmem:[#allocation2 + $0x28] sm:$0xf] }
  0x48   :  { %v1415_v6 = vor.u32 %v1414_v59, %v1410_v49  ;;  %v1071_v26 = vld [vmem:[#allocation2 + $0x30] sm:$0xf]  ;;  %v874_v27 = vld [vmem:[#allocation2 + $0x48] sm:$0xf]  ;;  %v6701_v30 = vcombine.low %v1069_v7, %v6698_v24  ;;  %v281_v36 = vrot.slane %v279_v16, 7  ;;  %v289_v37 = vrot.slane %v287_v20, 7 }
  0x49   :  { %v1403_v23 = vor.u32 %v1402_v11, %v1398_v2  ;;  %v6703_v32 = vld [vmem:[#allocation2 + $0x2c] ss:$0 sps:$4 sm:$0x11]   ;;  %v296_v38 = vshrl.u32 %v138_v17, 16  ;;  %v878_v44 = vld [vmem:[#allocation2 + $0x50] sm:$0x1] }
  0x4a   :  { %v1420_v18 = vsel %vm1384_vm6, %v1415_v6, %v1419_v1  ;;  %9462 = vst [vmem:[#allocation10_spill] sm:$0xff] %v6701_v30  ;;  %v299_v45 = vshll.u32 %v138_v17, 16  ;;  %v304_v46 = vshrl.u32 %v139_v22, 16  ;;  %v307_v47 = vshll.u32 %v139_v22, 16  ;;  %v6710_v51 = vld [vmem:[#allocation2 + $0x34] sm:$0xf] }
  0x4b   :  { %1581 = vrot.lane.b32.xlu1 %v1420_v18, %s6313_s5  ;;  %v1408_v43 = vsel %vm1384_vm6, %v1403_v23, %v1407_v13  ;;  %v1422_v48 = vshrl.u32 %v6701_v30, 16  ;;  %v1424_v49 = vshll.u32 %v6701_v30, 16  ;;  %v1429_v50 = vshll.u32 %v6703_v32, 16  ;;  %v160_v59 = vld [vmem:[%s9425_s0 + $0x88] sm:$0xf] }
  0x4c   :  { %1579 = vrot.lane.b32.xlu0 %v1408_v43, %s6313_s5  ;;  %v284_v52 = vor.u32 %v282_v19, %v281_v36  ;;  %v6713_v53 = vcombine.low %v1071_v26, %v6710_v51  ;;  %v285_v54 = vrot.slane %v281_v36, 4  ;;  %v292_v57 = vor.u32 %v290_v21, %v289_v37  ;;  %v1073_v62 = vld [vmem:[#allocation2 + $0x3c] sm:$0xf]  ;;  %v6720_v0 = vld [vmem:[#allocation2 + $0x38] ss:$0 sps:$4 sm:$0x11]  }
  0x4d   :  { %v294_v58 = vrot.slane %v289_v37, 4  ;;  %v1426_v60 = vrot.slane %v1424_v49, 1  ;;  %v1431_v61 = vrot.slane %v1429_v50, 1  ;;  %v881_v5 = vld [vmem:[#allocation2 + $0x54] sm:$0xf]  ;;  %v298_v8 = vrot.slane %v296_v38, 7 }
  0x4e   :  { %9463 = vst [vmem:[#allocation11_spill] sm:$0xff] %v6713_v53  ;;  %v875_v63 = vsel %vm6589_vm7, %v284_v52, %v874_v27  ;;  %v1434_v1 = vshrl.u32 %v6713_v53, 16  ;;  %v1436_v2 = vshll.u32 %v6713_v53, 16  ;;  %v293_v3 = vsel %vm6571_vm4, %v285_v54, %v292_v57  ;;  %v6728_v7 = vld [vmem:[#allocation2 + $0x40] sm:$0xf] }
  0x4f   :  { %876 = vst [vmem:[#allocation2 + $0x48] sm:$0xf] %v875_v63  ;;  %v879_v4 = vsel %vm6606_vm8, %v294_v58, %v878_v44  ;;  %v1427_v6 = vor.u32 %v1426_v60, %v1422_v48  ;;  %877 = vst.msk [vmem:[#allocation2 + $0x4c] sm:$0xf] %vm16_vm0, %v293_v3  ;;  %v306_v9 = vrot.slane %v304_v46, 7  ;;  %v1441_v11 = vshll.u32 %v6720_v0, 16 }
  0x50   :  { %880 = vst [vmem:[#allocation2 + $0x50] sm:$0x1] %v879_v4  ;;  %v1438_v10 = vrot.slane %v1436_v2, 1  ;;  %v6733_v13 = vcombine.low %v1073_v62, %v6728_v7  ;;  %v6735_v15 = vld [vmem:[#allocation2 + $0x44] ss:$0 sps:$4 sm:$0x11]   ;;  %v301_v18 = vor.u32 %v299_v45, %v298_v8 }
  0x51   :  { %v483_v16 = vshrl.u32 %v160_v59, 16  ;;  %v1432_v17 = vsel %vm1384_vm6, %v1427_v6, %v1431_v61  ;;  %v302_v19 = vrot.slane %v298_v8, 4  ;;  %v309_v20 = vor.u32 %v307_v47, %v306_v9  ;;  %v885_v21 = vld [vmem:[#allocation2 + $0x5c] sm:$0x1]  ;;  %v161_v36 = vld [vmem:[%s9425_s0 + $0x8c] sm:$0xf] }
  0x52   :  { %9464 = vst [vmem:[#allocation12_spill] sm:$0xff] %v6733_v13  ;;  %1583 = vrot.lane.b32.xlu1 %v1432_v17, %s6313_s5  ;;  %v1439_v22 = vor.u32 %v1438_v10, %v1434_v1  ;;  %v1443_v23 = vrot.slane %v1441_v11, 1  ;;  %v1446_v26 = vshrl.u32 %v6733_v13, 16  ;;  %v1448_v27 = vshll.u32 %v6733_v13, 16  ;;  %v958_v45 = vld [vmem:[#allocation2 + $0xf0] sm:$0xf] }
  0x53   :  { %v1453_v37 = vshll.u32 %v6735_v15, 16  ;;  %v310_v38 = vsel %vm6571_vm4, %v302_v19, %v309_v20  ;;  %v311_v43 = vrot.slane %v306_v9, 4  ;;  %v882_v44 = vsel %vm6589_vm7, %v301_v18, %v881_v5  ;;  %v158_v46 = vld [vmem:[%s9425_s0 + $0x80] sm:$0xf]  ;;  %v159_v52 = vld [vmem:[%s9425_s0 + $0x84] sm:$0xf] }
  0x54   :  { %v1444_v47 = vsel %vm1384_vm6, %v1439_v22, %v1443_v23  ;;  %v1450_v48 = vrot.slane %v1448_v27, 1  ;;  %883 = vst [vmem:[#allocation2 + $0x54] sm:$0xf] %v882_v44  ;;  %884 = vst.msk [vmem:[#allocation2 + $0x58] sm:$0xf] %vm16_vm0, %v310_v38  ;;  %v485_v49 = vrot.slane %v483_v16, 7 }
  0x55   :  { %v486_v50 = vshll.u32 %v160_v59, 16  ;;  %1585 = vrot.lane.b32.xlu0 %v1444_v47, %s6313_s5  ;;  %v1455_v54 = vrot.slane %v1453_v37, 1  ;;  %v886_v58 = vsel %vm6606_vm8, %v311_v43, %v885_v21  ;;  %v491_v60 = vshrl.u32 %v161_v36, 16  ;;  %v962_v11 = vld [vmem:[#allocation2 + $0xf8] sm:$0x1] }
  0x56   :  { %v1075_v57 = vld [vmem:[#allocation2 + $0x48] sm:$0xf]  ;;  %v494_v61 = vshll.u32 %v161_v36, 16  ;;  %v1451_v62 = vor.u32 %v1450_v48, %v1446_v26  ;;  %v6760_v63 = vld [vmem:[#allocation2 + $0x4c] sm:$0xf]  ;;  %v489_v2 = vrot.slane %v485_v49, 4 }
  0x57   :  { %887 = vst [vmem:[#allocation2 + $0x5c] sm:$0x1] %v886_v58  ;;  %v488_v1 = vor.u32 %v486_v50, %v485_v49  ;;  %v466_v59 = vshrl.u32 %v158_v46, 16  ;;  %v6763_v3 = vcombine.low %v1075_v57, %v6760_v63  ;;  %v6765_v4 = vld [vmem:[#allocation2 + $0x50] ss:$0 sps:$4 sm:$0x11]  }
  0x58   :  { %v493_v5 = vrot.slane %v491_v60, 7  ;;  %v469_v6 = vshll.u32 %v158_v46, 16  ;;  %v474_v8 = vshrl.u32 %v159_v52, 16  ;;  %v1456_v9 = vsel %vm1384_vm6, %v1451_v62, %v1455_v54  ;;  %v951_v18 = vld [vmem:[#allocation2 + $0xe4] sm:$0xf] }
  0x59   :  { %9465 = vst [vmem:[#allocation13_spill] sm:$0xff] %v6763_v3  ;;  %v959_v10 = vsel %vm6589_vm7, %v488_v1, %v958_v45  ;;  %v468_v16 = vrot.slane %v466_v59, 7  ;;  %v477_v17 = vshll.u32 %v159_v52, 16  ;;  %1587 = vrot.lane.b32.xlu1 %v1456_v9, %s6313_s5  ;;  %v1458_v19 = vshrl.u32 %v6763_v3, 16  ;;  %v955_v23 = vld [vmem:[#allocation2 + $0xec] sm:$0x1] }
  0x5a   :  { %v1460_v20 = vshll.u32 %v6763_v3, 16  ;;  %v1465_v21 = vshll.u32 %v6765_v4, 16  ;;  %v496_v22 = vor.u32 %v494_v61, %v493_v5  ;;  %960 = vst [vmem:[#allocation2 + $0xf0] sm:$0xf] %v959_v10  ;;  %v498_v26 = vrot.slane %v493_v5, 4 }
  0x5b   :  { %v471_v27 = vor.u32 %v469_v6, %v468_v16  ;;  %v472_v36 = vrot.slane %v468_v16, 4  ;;  %v476_v37 = vrot.slane %v474_v8, 7  ;;  %v164_v38 = vld [vmem:[%s9425_s0 + $0x98] sm:$0xf]  ;;  %v1077_v45 = vld [vmem:[#allocation2 + $0x54] sm:$0xf] }
  0x5c   :  { %v1462_v43 = vrot.slane %v1460_v20, 1  ;;  %v1467_v44 = vrot.slane %v1465_v21, 1  ;;  %v6777_v46 = vld [vmem:[#allocation2 + $0x58] sm:$0xf]  ;;  %v497_v47 = vsel %vm6571_vm4, %v489_v2, %v496_v22  ;;  %v963_v49 = vsel %vm6606_vm8, %v498_v26, %v962_v11  ;;  %v165_v54 = vld [vmem:[%s9425_s0 + $0x9c] sm:$0xf] }
  0x5d   :  { %v6782_v48 = vcombine.low %v1077_v45, %v6777_v46  ;;  %961 = vst.msk [vmem:[#allocation2 + $0xf4] sm:$0xf] %vm16_vm0, %v497_v47  ;;  %v479_v50 = vor.u32 %v477_v17, %v476_v37  ;;  %v481_v52 = vrot.slane %v476_v37, 4  ;;  %v162_v57 = vld [vmem:[%s9425_s0 + $0x90] sm:$0xf]  ;;  %v952_v61 = vsel %vm6589_vm7, %v471_v27, %v951_v18 }
  0x5e   :  { %v1463_v58 = vor.u32 %v1462_v43, %v1458_v19  ;;  %v6793_v60 = vld [vmem:[#allocation2 + $0x5c] ss:$0 sps:$4 sm:$0x11]   ;;  %964 = vst [vmem:[#allocation2 + $0xf8] sm:$0x1] %v963_v49  ;;  %v517_v62 = vshrl.u32 %v164_v38, 16 }
  0x5f   :  { %9466 = vst [vmem:[#allocation14_spill] sm:$0xff] %v6782_v48  ;;  %v1470_v1 = vshrl.u32 %v6782_v48, 16  ;;  %v1472_v2 = vshll.u32 %v6782_v48, 16  ;;  %v480_v59 = vsel %vm6571_vm4, %v472_v36, %v479_v50  ;;  %953 = vst [vmem:[#allocation2 + $0xe4] sm:$0xf] %v952_v61  ;;  %v956_v5 = vsel %vm6606_vm8, %v481_v52, %v955_v23 }
  0x60   :  { %v972_v6 = vld [vmem:[#allocation2 + $0x108] sm:$0xf]  ;;  %v1468_v8 = vsel %vm1384_vm6, %v1463_v58, %v1467_v44  ;;  %v1477_v9 = vshll.u32 %v6793_v60, 16  ;;  %954 = vst.msk [vmem:[#allocation2 + $0xe8] sm:$0xf] %vm16_vm0, %v480_v59  ;;  %v519_v10 = vrot.slane %v517_v62, 7 }
  0x61   :  { %957 = vst [vmem:[#allocation2 + $0xec] sm:$0x1] %v956_v5  ;;  %v520_v11 = vshll.u32 %v164_v38, 16  ;;  %v163_v16 = vld [vmem:[%s9425_s0 + $0x94] sm:$0xf]  ;;  %1589 = vrot.lane.b32.xlu0 %v1468_v8, %s6313_s5  ;;  %v1474_v17 = vrot.slane %v1472_v2, 1 }
  0x62   :  { %v525_v18 = vshrl.u32 %v165_v54, 16  ;;  %v528_v19 = vshll.u32 %v165_v54, 16  ;;  %v500_v20 = vshrl.u32 %v162_v57, 16  ;;  %v168_v21 = vld [vmem:[%s9425_s0 + $0xa8] sm:$0xf]  ;;  %v1479_v22 = vrot.slane %v1477_v9, 1 }
  0x63   :  { %v1083_v23 = vld [vmem:[#allocation2 + $0xf0] sm:$0xf]  ;;  %v522_v26 = vor.u32 %v520_v11, %v519_v10  ;;  %v523_v27 = vrot.slane %v519_v10, 4  ;;  %v503_v36 = vshll.u32 %v162_v57, 16  ;;  %v1475_v37 = vor.u32 %v1474_v17, %v1470_v1  ;;  %v965_v52 = vld [vmem:[#allocation2 + $0xfc] sm:$0xf] }
  0x64   :  { %v527_v38 = vrot.slane %v525_v18, 7  ;;  %v976_v43 = vld [vmem:[#allocation2 + $0x110] sm:$0x1]  ;;  %v502_v44 = vrot.slane %v500_v20, 7  ;;  %v508_v45 = vshrl.u32 %v163_v16, 16  ;;  %v511_v50 = vshll.u32 %v163_v16, 16 }
  0x65   :  { %v6813_v47 = vld [vmem:[#allocation2 + $0xf4] sm:$0xf]  ;;  %v973_v49 = vsel %vm6589_vm7, %v522_v26, %v972_v6  ;;  %v551_v54 = vshrl.u32 %v168_v21, 16  ;;  %v554_v58 = vshll.u32 %v168_v21, 16  ;;  %v1480_v61 = vsel %vm1384_vm6, %v1475_v37, %v1479_v22  ;;  %v969_v9 = vld [vmem:[#allocation2 + $0x104] sm:$0x1] }
  0x66   :  { %v6819_v62 = vcombine.low %v1083_v23, %v6813_v47  ;;  %v6821_v57 = vld [vmem:[#allocation2 + $0xf8] ss:$0 sps:$4 sm:$0x11]   ;;  %v530_v1 = vor.u32 %v528_v19, %v527_v38  ;;  %v532_v2 = vrot.slane %v527_v38, 4  ;;  %974 = vst [vmem:[#allocation2 + $0x108] sm:$0xf] %v973_v49  ;;  %1591 = vrot.lane.b32.xlu1 %v1480_v61, %s6313_s5  ;;  %v505_v5 = vor.u32 %v503_v36, %v502_v44 }
  0x67   :  { %v1081_v59 = vld [vmem:[#allocation2 + $0xe4] sm:$0xf]  ;;  %v506_v8 = vrot.slane %v502_v44, 4  ;;  %v510_v6 = vrot.slane %v508_v45, 7  ;;  %v169_v10 = vld [vmem:[%s9425_s0 + $0xac] sm:$0xf] }
  0x68   :  { %9467 = vst [vmem:[#allocation15_spill] sm:$0xff] %v6819_v62  ;;  %v6827_v11 = vrot.slane %v551_v54, 7  ;;  %v1506_v16 = vshrl.u32 %v6819_v62, 16  ;;  %v1508_v17 = vshll.u32 %v6819_v62, 16  ;;  %v1513_v18 = vshll.u32 %v6821_v57, 16 }
  0x69   :  { %v6832_v19 = vld [vmem:[#allocation2 + $0xe8] sm:$0xf]  ;;  %v531_v20 = vsel %vm6571_vm4, %v523_v27, %v530_v1  ;;  %v6839_v22 = vld [vmem:[#allocation2 + $0xec] ss:$0 sps:$4 sm:$0x11]   ;;  %v977_v23 = vsel %vm6606_vm8, %v532_v2, %v976_v43  ;;  %v513_v26 = vor.u32 %v511_v50, %v510_v6  ;;  %v515_v36 = vrot.slane %v510_v6, 4 }
  0x6a   :  { %v6837_v21 = vcombine.low %v1081_v59, %v6832_v19  ;;  %975 = vst.msk [vmem:[#allocation2 + $0x10c] sm:$0xf] %vm16_vm0, %v531_v20  ;;  %v1510_v37 = vrot.slane %v1508_v17, 1  ;;  %v1515_v38 = vrot.slane %v1513_v18, 1  ;;  %978 = vst [vmem:[#allocation2 + $0x110] sm:$0x1] %v977_v23  ;;  %v966_v44 = vsel %vm6589_vm7, %v505_v5, %v965_v52 }
  0x6b   :  { %v556_v27 = vor.u32 %v554_v58, %v6827_v11  ;;  %v986_v45 = vld [vmem:[#allocation2 + $0x120] sm:$0xf]  ;;  %v1501_v61 = vshll.u32 %v6839_v22, 16  ;;  %v514_v43 = vsel %vm6571_vm4, %v506_v8, %v513_v26  ;;  %967 = vst [vmem:[#allocation2 + $0xfc] sm:$0xf] %v966_v44  ;;  %v970_v52 = vsel %vm6606_vm8, %v515_v36, %v969_v9 }
  0x6c   :  { %9468 = vst [vmem:[#allocation16_spill] sm:$0xff] %v6837_v21  ;;  %v1494_v49 = vshrl.u32 %v6837_v21, 16  ;;  %v1496_v54 = vshll.u32 %v6837_v21, 16  ;;  %v166_v50 = vld [vmem:[%s9425_s0 + $0xa0] sm:$0xf]  ;;  %v1511_v1 = vor.u32 %v1510_v37, %v1506_v16  ;;  %v557_v58 = vrot.slane %v6827_v11, 4 }
  0x6d   :  { %968 = vst.msk [vmem:[#allocation2 + $0x100] sm:$0xf] %vm16_vm0, %v514_v43  ;;  %v559_v2 = vshrl.u32 %v169_v10, 16  ;;  %v167_v59 = vld [vmem:[%s9425_s0 + $0xa4] sm:$0xf]  ;;  %v1503_v8 = vrot.slane %v1501_v61, 1  ;;  %v987_v16 = vsel %vm6589_vm7, %v556_v27, %v986_v45 }
  0x6e   :  { %v1498_v5 = vrot.slane %v1496_v54, 1  ;;  %971 = vst [vmem:[#allocation2 + $0x104] sm:$0x1] %v970_v52  ;;  %v562_v6 = vshll.u32 %v169_v10, 16  ;;  %v1111_v17 = vld [vmem:[#allocation2] sm:$0xe]  ;;  %v1516_v18 = vsel %vm1384_vm6, %v1511_v1, %v1515_v38 }
  0x6f   :  { %v1087_v20 = vld [vmem:[#allocation2 + $0x108] sm:$0xf]  ;;  %v561_v9 = vrot.slane %v559_v2, 7  ;;  %988 = vst [vmem:[#allocation2 + $0x120] sm:$0xf] %v987_v16  ;;  %v534_v11 = vshrl.u32 %v166_v50, 16  ;;  %1597 = vrot.lane.b32.xlu0 %v1516_v18, %s6313_s5  ;;  %v5605_v2 = vcombine.low %v1111_v17, %v6578_v25 }
  0x70   :  { %v537_v23 = vshll.u32 %v166_v50, 16  ;;  %v1499_v26 = vor.u32 %v1498_v5, %v1494_v49  ;;  %v990_v36 = vld [vmem:[#allocation2 + $0x128] sm:$0x1]  ;;  %v542_v37 = vshrl.u32 %v167_v59, 16  ;;  %v545_v44 = vshll.u32 %v167_v59, 16 }
  0x71   :  { %v979_v54 = vld [vmem:[#allocation2 + $0x114] sm:$0xf]  ;;  %v6866_v61 = vld [vmem:[#allocation2 + $0x10c] sm:$0xf]  ;;  %v564_v10 = vor.u32 %v562_v6, %v561_v9  ;;  %v566_v43 = vrot.slane %v561_v9, 4  ;;  %v536_v27 = vrot.slane %v534_v11, 7 }
  0x72   :  { %v1659_v45 = vrot.slane %v6585_v29, 1  ;;  %v1504_v38 = vsel %vm1384_vm6, %v1499_v26, %v1503_v8  ;;  %v6871_v1 = vcombine.low %v1087_v20, %v6866_v61  ;;  %v6873_v50 = vld [vmem:[#allocation2 + $0x110] ss:$0 sps:$4 sm:$0x11]   ;;  %v544_v52 = vrot.slane %v542_v37, 7 }
  0x73   :  { %v983_v49 = vld [vmem:[#allocation2 + $0x11c] sm:$0x1]  ;;  %1595 = vrot.lane.b32.xlu1 %v1504_v38, %s6313_s5  ;;  %v565_v5 = vsel %vm6571_vm4, %v557_v58, %v564_v10  ;;  %v991_v29 = vsel %vm6606_vm8, %v566_v43, %v990_v36  ;;  %v539_v6 = vor.u32 %v537_v23, %v536_v27  ;;  %v540_v8 = vrot.slane %v536_v27, 4  ;;  %v170_v16 = vld [vmem:[%s9425_s0 + $0xb0] sm:$0xf] }
  0x74   :  { %9469 = vst [vmem:[#allocation17_spill] sm:$0xff] %v6871_v1  ;;  %v1085_v59 = vld [vmem:[#allocation2 + $0xfc] sm:$0xf]  ;;  %v1113_v18 = vld [vmem:[#allocation2 + $0x18] sm:$0xe]  ;;  %v1530_v20 = vshrl.u32 %v6871_v1, 16  ;;  %v547_v58 = vor.u32 %v545_v44, %v544_v52 }
  0x75   :  { %v1532_v25 = vshll.u32 %v6871_v1, 16  ;;  %v1537_v17 = vshll.u32 %v6873_v50, 16  ;;  %v6887_v9 = vld [vmem:[#allocation2 + $0x100] sm:$0xf]  ;;  %989 = vst.msk [vmem:[#allocation2 + $0x124] sm:$0xf] %vm16_vm0, %v565_v5  ;;  %v980_v36 = vsel %vm6589_vm7, %v539_v6, %v979_v54  ;;  %v5607_v37 = vcombine.low %v1113_v18, %v6643_v14 }
  0x76   :  { %992 = vst [vmem:[#allocation2 + $0x128] sm:$0x1] %v991_v29  ;;  %v6891_v11 = vcombine.low %v1085_v59, %v6887_v9  ;;  %v6893_v23 = vld [vmem:[#allocation2 + $0x104] ss:$0 sps:$4 sm:$0x11]   ;;  %v549_v26 = vrot.slane %v544_v52, 4  ;;  %v548_v27 = vsel %vm6571_vm4, %v540_v8, %v547_v58 }
  0x77   :  { %v1534_v10 = vrot.slane %v1532_v25, 1  ;;  %v1539_v43 = vrot.slane %v1537_v17, 1  ;;  %981 = vst [vmem:[#allocation2 + $0x114] sm:$0xf] %v980_v36  ;;  %v1658_v38 = vrot.slane %v5605_v2, 1  ;;  %v1525_v5 = vshll.u32 %v6893_v23, 16 }
  0x78   :  { %9470 = vst [vmem:[#allocation18_spill] sm:$0xff] %v6891_v11  ;;  %v171_v44 = vld [vmem:[%s9425_s0 + $0xb4] sm:$0xf]  ;;  %v1518_v59 = vshrl.u32 %v6891_v11, 16  ;;  %v1520_v52 = vshll.u32 %v6891_v11, 16  ;;  %v984_v14 = vsel %vm6606_vm8, %v549_v26, %v983_v49  ;;  %v568_v2 = vshrl.u32 %v170_v16, 16 }
  0x79   :  { %982 = vst.msk [vmem:[#allocation2 + $0x118] sm:$0xf] %vm16_vm0, %v548_v27  ;;  %v1535_v54 = vor.u32 %v1534_v10, %v1530_v20  ;;  %985 = vst [vmem:[#allocation2 + $0x11c] sm:$0x1] %v984_v14  ;;  %v6910_v29 = vsel %vm1657_vm9, %v1658_v38, %v1659_v45  ;;  %v571_v6 = vshll.u32 %v170_v16, 16  ;;  %v1527_v25 = vrot.slane %v1525_v5, 1 }
  0x7a   :  { %v1112_v8 = vld [vmem:[#allocation2 + $0xc] sm:$0xe]  ;;  %v1522_v18 = vrot.slane %v1520_v52, 1  ;;  %v1091_v17 = vld [vmem:[#allocation2 + $0x120] sm:$0xf]  ;;  %v576_v58 = vshrl.u32 %v171_v44, 16 }
  0x7b   :  { %v579_v36 = vshll.u32 %v171_v44, 16  ;;  %v1540_v1 = vsel %vm1384_vm6, %v1535_v54, %v1539_v43  ;;  %v570_v11 = vrot.slane %v568_v2, 7  ;;  %v993_v27 = vld [vmem:[#allocation2 + $0x12c] sm:$0xf]  ;;  %v1664_v62 = vrot.slane %v5607_v37, 1 }
  0x7c   :  { %v1665_v49 = vrot.slane %v6652_v39, 1  ;;  %1601 = vrot.lane.b32.xlu0 %v1540_v1, %s6313_s5  ;;  %v1523_v20 = vor.u32 %v1522_v18, %v1518_v59  ;;  %v6915_v45 = vld [vmem:[#allocation2 + $0x124] sm:$0xf]  ;;  %v578_v26 = vrot.slane %v576_v58, 7  ;;  %v5606_v16 = vcombine.low %v1112_v8, %v6649_v35  ;;  %v997_v37 = vld [vmem:[#allocation2 + $0x134] sm:$0x1] }
  0x7d   :  { %v1662_v10 = vrot.slane %v6667_v56, 1  ;;  %v6920_v38 = vcombine.low %v1091_v17, %v6915_v45  ;;  %v6922_v44 = vld [vmem:[#allocation2 + $0x128] ss:$0 sps:$4 sm:$0x11]   ;;  %v573_v43 = vor.u32 %v571_v6, %v570_v11  ;;  %v574_v52 = vrot.slane %v570_v11, 4 }
  0x7e   :  { %v1666_v39 = vsel %vm1657_vm9, %v1664_v62, %v1665_v49  ;;  %v1528_v1 = vsel %vm1384_vm6, %v1523_v20, %v1527_v25  ;;  %v1089_v59 = vld [vmem:[#allocation2 + $0x114] sm:$0xf]  ;;  %v581_v5 = vor.u32 %v579_v36, %v578_v26  ;;  %v583_v14 = vrot.slane %v578_v26, 4  ;;  %v1114_v2 = vld [vmem:[#allocation2 + $0x24] sm:$0xe] }
  0x7f   :  { %9471 = vst [vmem:[#allocation19_spill] sm:$0xff] %v6920_v38  ;;  %v1661_v54 = vrot.slane %v5606_v16, 1  ;;  %1599 = vrot.lane.b32.xlu1 %v1528_v1, %s6313_s5  ;;  %v1554_v35 = vshrl.u32 %v6920_v38, 16  ;;  %v1556_v56 = vshll.u32 %v6920_v38, 16  ;;  %v1561_v8 = vshll.u32 %v6922_v44, 16 }
  0x80   :  { %v6930_v6 = vld [vmem:[#allocation2 + $0x118] sm:$0xf]  ;;  %v994_v62 = vsel %vm6589_vm7, %v573_v43, %v993_v27  ;;  %v6937_v18 = vld [vmem:[#allocation2 + $0x11c] ss:$0 sps:$4 sm:$0x11]   ;;  %v582_v25 = vsel %vm6571_vm4, %v574_v52, %v581_v5  ;;  %v998_v17 = vsel %vm6606_vm8, %v583_v14, %v997_v37  ;;  %v5608_v16 = vcombine.low %v1114_v2, %v6698_v24 }
  0x81   :  { %v6935_v11 = vcombine.low %v1089_v59, %v6930_v6  ;;  %995 = vst [vmem:[#allocation2 + $0x12c] sm:$0xf] %v994_v62  ;;  %v1663_v58 = vsel %vm1657_vm9, %v1661_v54, %v1662_v10  ;;  %v1558_v36 = vrot.slane %v1556_v56, 1  ;;  %v1563_v49 = vrot.slane %v1561_v8, 1  ;;  %996 = vst.msk [vmem:[#allocation2 + $0x130] sm:$0xf] %vm16_vm0, %v582_v25 }
  0x82   :  { %999 = vst [vmem:[#allocation2 + $0x134] sm:$0x1] %v998_v17  ;;  %v1549_v26 = vshll.u32 %v6937_v18, 16  ;;  %v1116_v43 = vld [vmem:[#allocation2 + $0x3c] sm:$0xe]  ;;  %v1668_v37 = vrot.slane %v6703_v32, 1 }
  0x83   :  { %9472 = vst [vmem:[#allocation20_spill] sm:$0xff] %v6935_v11  ;;  %v1542_v27 = vshrl.u32 %v6935_v11, 16  ;;  %v1544_v20 = vshll.u32 %v6935_v11, 16  ;;  %v1559_v52 = vor.u32 %v1558_v36, %v1554_v35  ;;  %v1115_v1 = vld [vmem:[#allocation2 + $0x30] sm:$0xe]  ;;  %v1667_v5 = vrot.slane %v5608_v16, 1 }
  0x84   :  { %v1551_v10 = vrot.slane %v1549_v26, 1  ;;  %v5610_v54 = vcombine.low %v1116_v43, %v6728_v7  ;;  %v5609_v8 = vcombine.low %v1115_v1, %v6710_v51  ;;  %v1674_v24 = vrot.slane %v6735_v15, 1  ;;  %v1117_v17 = vld [vmem:[#allocation2 + $0x48] sm:$0xe]  ;;  %v1119_v43 = vld [vmem:[#allocation2 + $0xd8] sm:$0xe] }
  0x85   :  { %v1546_v59 = vrot.slane %v1544_v20, 1  ;;  %v1564_v14 = vsel %vm1384_vm6, %v1559_v52, %v1563_v49  ;;  %v1669_v62 = vsel %vm1657_vm9, %v1667_v5, %v1668_v37  ;;  %v1671_v49 = vrot.slane %v6720_v0, 1  ;;  %v1121_v5 = vld [vmem:[#allocation2 + $0xf0] sm:$0xe]  ;;  %v1154_v38 = vld [vmem:[#allocation2 + $0x124] sm:$0xf] }
  0x86   :  { %1605 = vrot.lane.b32.xlu0 %v1564_v14, %s6313_s5  ;;  %v1673_v35 = vrot.slane %v5610_v54, 1  ;;  %v1670_v15 = vrot.slane %v5609_v8, 1  ;;  %v5611_v16 = vcombine.low %v1117_v17, %v6760_v63  ;;  %v1677_v37 = vrot.slane %v6765_v4, 1  ;;  %v1123_v8 = vld [vmem:[#allocation2 + $0x108] sm:$0xe] }
  0x87   :  { %v1547_v56 = vor.u32 %v1546_v59, %v1542_v27  ;;  %v5613_v0 = vcombine.low %v1119_v43, %v6594_v34  ;;  %v5615_v63 = vcombine.low %v1121_v5, %v6813_v47  ;;  %v1683_v4 = vrot.slane %v6602_v41, 1  ;;  %v140_v34 = vld [vmem:[%s9425_s0 + $0x38] sm:$0xf]  ;;  %v1122_v43 = vld [vmem:[#allocation2 + $0xfc] sm:$0xe] }
  0x88   :  { %v1093_v2 = vld [vmem:[#allocation2 + $0x12c] sm:$0xf]  ;;  %v6957_v25 = vld [vmem:[#allocation2 + $0x130] sm:$0xf]  ;;  %v1675_v51 = vsel %vm1657_vm9, %v1673_v35, %v1674_v24  ;;  %v1689_v47 = vrot.slane %v6821_v57, 1  ;;  %v5617_v17 = vcombine.low %v1123_v8, %v6866_v61  ;;  %v1695_v61 = vrot.slane %v6873_v50, 1 }
  0x89   :  { %v1552_v32 = vsel %vm1384_vm6, %v1547_v56, %v1551_v10  ;;  %v6961_v7 = vcombine.low %v1093_v2, %v6957_v25  ;;  %v6963_v36 = vld [vmem:[#allocation2 + $0x134] ss:$0 sps:$4 sm:$0x11]   ;;  %v1676_v10 = vrot.slane %v5611_v16, 1  ;;  %v1118_v56 = vld [vmem:[#allocation2 + $0x54] sm:$0xe]  ;;  %v5616_v50 = vcombine.low %v1122_v43, %v6887_v9 }
  0x8a   :  { %1603 = vrot.lane.b32.xlu1 %v1552_v32, %s6313_s5  ;;  %1706 = vrot.lane.b32.xlu0 %v6910_v29, %s6314_s16  ;;  %v1573_v26 = vshll.u32 %v6963_v36, 16  ;;  %v1672_v29 = vsel %vm1657_vm9, %v1670_v15, %v1671_v49  ;;  %v5612_v24 = vcombine.low %v1118_v56, %v6777_v46  ;;  %v1688_v2 = vrot.slane %v5615_v63, 1  ;;  %v141_v35 = vld [vmem:[%s9425_s0 + $0x3c] sm:$0xf]  ;;  %v1120_v32 = vld [vmem:[#allocation2 + $0xe4] sm:$0xe] }
  0x8b   :  { %9473 = vst [vmem:[#allocation21_spill] sm:$0xff] %v6961_v7  ;;  %v1566_v27 = vshrl.u32 %v6961_v7, 16  ;;  %v1568_v20 = vshll.u32 %v6961_v7, 16  ;;  %v1678_v54 = vsel %vm1657_vm9, %v1676_v10, %v1677_v37  ;;  %v1125_v15 = vld [vmem:[#allocation2 + $0x120] sm:$0xe]  ;;  %v313_v49 = vshrl.u32 %v140_v34, 16 }
  0x8c   :  { %v1575_v1 = vrot.slane %v1573_v26, 1  ;;  %v324_v26 = vshll.u32 %v141_v35, 16  ;;  %v1679_v46 = vrot.slane %v5612_v24, 1  ;;  %v1690_v57 = vsel %vm1657_vm9, %v1688_v2, %v1689_v47  ;;  %v172_v56 = vld [vmem:[%s9425_s0 + $0xb8] sm:$0xf] }
  0x8d   :  { %v1570_v52 = vrot.slane %v1568_v20, 1  ;;  %v321_v20 = vshrl.u32 %v141_v35, 16  ;;  %v5614_v16 = vcombine.low %v1120_v32, %v6832_v19  ;;  %v5619_v37 = vcombine.low %v1125_v15, %v6915_v45  ;;  %v7029_v2 = vld [vmem:[#allocation2 + $0x10] sm:$0xf]  ;;  %v1126_v47 = vld [vmem:[#allocation2 + $0x12c] sm:$0xe] }
  0x8e   :  { %1710 = vrot.lane.b32.xlu0 %v1666_v39, %s6314_s16  ;;  %v1682_v39 = vrot.slane %v5613_v0, 1  ;;  %v1691_v9 = vrot.slane %v5616_v50, 1  ;;  %v585_v35 = vshrl.u32 %v172_v56, 16  ;;  %v1139_v50 = vld [vmem:[#allocation2 + $0x54] sm:$0xf] }
  0x8f   :  { %v1571_v59 = vor.u32 %v1570_v52, %v1566_v27  ;;  %v316_v27 = vshll.u32 %v140_v34, 16  ;;  %v315_v52 = vrot.slane %v313_v49, 7  ;;  %v1685_v5 = vrot.slane %v5614_v16, 1  ;;  %v895_v55 = vld [vmem:[#allocation2 + $0x6c] sm:$0xf] }
  0x90   :  { %v1684_v41 = vsel %vm1657_vm9, %v1682_v39, %v1683_v4  ;;  %v1700_v63 = vrot.slane %v5619_v37, 1  ;;  %v1127_v39 = vld [vmem:[#allocation2 + $0xc] sm:$0xf]  ;;  %v1692_v4 = vrot.slane %v6893_v23, 1  ;;  %v1698_v49 = vrot.slane %v6937_v18, 1 }
  0x91   :  { %v1576_v14 = vsel %vm1384_vm6, %v1571_v59, %v1575_v1  ;;  %v1694_v1 = vrot.slane %v5617_v17, 1  ;;  %v7002_v59 = vrot.slane %v321_v20, 7  ;;  %v319_v10 = vrot.slane %v315_v52, 4  ;;  %v1000_v20 = vld [vmem:[#allocation2 + $0x138] sm:$0xf] }
  0x92   :  { %1607 = vrot.lane.b32.xlu1 %v1576_v14, %s6313_s5  ;;  %1714 = vrot.lane.b32.xlu0 %v1672_v29, %s6314_s16  ;;  %v318_v29 = vor.u32 %v316_v27, %v315_v52  ;;  %v587_v17 = vrot.slane %v585_v35, 7  ;;  %v1693_v15 = vsel %vm1657_vm9, %v1691_v9, %v1692_v4  ;;  %v7036_v27 = vcombine.low %v1127_v39, %v7029_v2  ;;  %v1143_v39 = vld [vmem:[#allocation2 + $0xe4] sm:$0xf]  ;;  %v7082_v9 = vld [vmem:[#allocation2 + $0xe8] sm:$0xf] }
  0x93   :  { %v326_v0 = vor.u32 %v324_v26, %v7002_v59  ;;  %v1696_v14 = vsel %vm1657_vm9, %v1694_v1, %v1695_v61 }
  0x94   :  { %v591_v43 = vrot.slane %v587_v17, 4 }
  0x96   :  { %1708 = vrot.lane.b32.xlu1 %v1663_v58, %s6314_s16  ;;  %1718 = vrot.lane.b32.xlu0 %v1678_v54, %s6314_s16  ;;  %v1680_v58 = vrot.slane %v6793_v60, 1  ;;  %v888_v60 = vld [vmem:[#allocation2 + $0x60] sm:$0xf]  ;;  %v1701_v54 = vrot.slane %v6922_v44, 1  ;;  %v173_v44 = vld [vmem:[%s9425_s0 + $0xbc] sm:$0xf] }
  0x97   :  { %v889_v45 = vsel %vm6589_vm7, %v318_v29, %v888_v60  ;;  %v593_v23 = vshrl.u32 %v173_v44, 16  ;;  %v596_v32 = vshll.u32 %v173_v44, 16  ;;  %v1704_v60 = vrot.slane %v6963_v36, 1  ;;  %v1135_v29 = vld [vmem:[#allocation2 + $0x3c] sm:$0xf] }
  0x98   :  { %v1681_v19 = vsel %vm1657_vm9, %v1679_v46, %v1680_v58  ;;  %890 = vst [vmem:[#allocation2 + $0x60] sm:$0xf] %v889_v45  ;;  %v1702_v34 = vsel %vm1657_vm9, %v1700_v63, %v1701_v54  ;;  %v5620_v46 = vcombine.low %v1126_v47, %v6957_v25  ;;  %v7068_v36 = vld [vmem:[#allocation2 + $0x58] sm:$0xf]  ;;  %v328_v45 = vrot.slane %v7002_v59, 4 }
  0x99   :  { %v7038_v58 = vrot.slane %v593_v23, 7  ;;  %v1133_v63 = vld [vmem:[#allocation2 + $0x30] sm:$0xf]  ;;  %v7077_v54 = vld [vmem:[#allocation2 + $0x34] sm:$0xf]  ;;  %v7094_v44 = vcombine.low %v1143_v39, %v7082_v9  ;;  %v1901_v47 = vshll.u32 %v7036_v27, 16 }
  0x9a   :  { %1712 = vrot.lane.b32.xlu1 %v1669_v62, %s6314_s16  ;;  %1722 = vrot.lane.b32.xlu0 %v1684_v41, %s6314_s16  ;;  %v1686_v62 = vrot.slane %v6839_v22, 1  ;;  %v327_v22 = vsel %vm6571_vm4, %v319_v10, %v326_v0  ;;  %v588_v41 = vshll.u32 %v172_v56, 16  ;;  %v1703_v37 = vrot.slane %v5620_v46, 1  ;;  %v7056_v10 = vld [vmem:[#allocation2 + $0x40] sm:$0xf] }
  0x9b   :  { %891 = vst.msk [vmem:[#allocation2 + $0x64] sm:$0xf] %vm16_vm0, %v327_v22  ;;  %v598_v52 = vor.u32 %v596_v32, %v7038_v58  ;;  %v7062_v0 = vld [vmem:[#allocation2 + $0x1c] sm:$0xf]  ;;  %v7080_v22 = vcombine.low %v1139_v50, %v7068_v36  ;;  %v7089_v4 = vcombine.low %v1133_v63, %v7077_v54  ;;  %v1137_v56 = vld [vmem:[#allocation2 + $0x48] sm:$0xf] }
  0x9c   :  { %v1687_v8 = vsel %vm1657_vm9, %v1685_v5, %v1686_v62  ;;  %v590_v16 = vor.u32 %v588_v41, %v587_v17  ;;  %v1129_v62 = vld [vmem:[#allocation2 + $0x18] sm:$0xf]  ;;  %v1705_v5 = vsel %vm1657_vm9, %v1703_v37, %v1704_v60  ;;  %v7119_v60 = vld [vmem:[#allocation2 + $0x2c] ss:$0 sps:$4 sm:$0x11]   ;;  %v1997_v63 = vshll.u32 %v7094_v44, 16 }
  0x9d   :  { %v599_v25 = vsel %vm6571_vm4, %v591_v43, %v598_v52  ;;  %v1145_v43 = vld [vmem:[#allocation2 + $0xf0] sm:$0xf]  ;;  %v1146_v52 = vld [vmem:[#allocation2 + $0xf4] sm:$0xf]  ;;  %v1149_v50 = vld [vmem:[#allocation2 + $0x108] sm:$0xf] }
  0x9e   :  { %1716 = vrot.lane.b32.xlu1 %v1675_v51, %s6314_s16  ;;  %1726 = vrot.lane.b32.xlu0 %v1690_v57, %s6314_s16  ;;  %v1124_v51 = vld [vmem:[#allocation2 + $0x114] sm:$0xe]  ;;  %v7041_v57 = vld [vmem:[#allocation2 + $0x28] sm:$0xf]  ;;  %v1001_v1 = vsel %vm6589_vm7, %v590_v16, %v1000_v20  ;;  %1003 = vst.msk [vmem:[#allocation2 + $0x13c] sm:$0xf] %vm16_vm0, %v599_v25 }
  0x9f   :  { %v5618_v24 = vcombine.low %v1124_v51, %v6930_v6  ;;  %v1131_v6 = vld [vmem:[#allocation2 + $0x24] sm:$0xf]  ;;  %1002 = vst [vmem:[#allocation2 + $0x138] sm:$0xf] %v1001_v1  ;;  %v892_v51 = vld [vmem:[#allocation2 + $0x68] sm:$0x1] }
  0xa0   :  { %v7050_v18 = vcombine.low %v1131_v6, %v7041_v57  ;;  %v893_v59 = vsel %vm6606_vm8, %v328_v45, %v892_v51  ;;  %v1151_v20 = vld [vmem:[#allocation2 + $0x114] sm:$0xf]  ;;  %v1141_v46 = vld [vmem:[#allocation2 + $0x60] sm:$0xf]  ;;  %v1155_v1 = vld [vmem:[#allocation2 + $0x12c] sm:$0xf] }
  0xa1   :  { %v1697_v26 = vrot.slane %v5618_v24, 1  ;;  %894 = vst [vmem:[#allocation2 + $0x68] sm:$0x1] %v893_v59  ;;  %v1148_v24 = vld [vmem:[#allocation2 + $0x100] sm:$0xf]  ;;  %v1899_v25 = vshrl.u32 %v7036_v27, 16  ;;  %v7136_v59 = vcombine.low %v1145_v43, %v1146_v52 }
  0xa2   :  { %1720 = vrot.lane.b32.xlu1 %v1681_v19, %s6314_s16  ;;  %1730 = vrot.lane.b32.xlu0 %v1696_v14, %s6314_s16  ;;  %v7065_v19 = vcombine.low %v1135_v29, %v7056_v10  ;;  %v7073_v14 = vcombine.low %v1129_v62, %v7062_v0  ;;  %v1925_v35 = vshll.u32 %v7050_v18, 16  ;;  %v7115_v16 = vld [vmem:[#allocation2 + $0x64] sm:$0xf]  ;;  %v7131_v45 = vld [vmem:[#allocation2 + $0x20] ss:$0 sps:$4 sm:$0x11]  }
  0xa3   :  { %v1699_v61 = vsel %vm1657_vm9, %v1697_v26, %v1698_v49  ;;  %v1152_v26 = vld [vmem:[#allocation2 + $0x118] sm:$0xf]  ;;  %9474 = vst [vmem:[#allocation22_spill] sm:$0xff] %v7115_v16  ;;  %v7125_v62 = vcombine.low %v1141_v46, %v7115_v16  ;;  %v7134_v51 = vld [vmem:[#allocation2 + $0x44] ss:$0 sps:$4 sm:$0x11]  }
  0xa4   :  { %v1913_v41 = vshll.u32 %v7073_v14, 16  ;;  %v1949_v23 = vshll.u32 %v7065_v19, 16  ;;  %v1004_v39 = vld [vmem:[#allocation2 + $0x140] sm:$0x1]  ;;  %v1930_v29 = vshll.u32 %v7119_v60, 16  ;;  %v1911_v43 = vshrl.u32 %v7073_v14, 16 }
  0xa5   :  { %v7143_v17 = vld [vmem:[#allocation2 + $0x38] ss:$0 sps:$4 sm:$0x11]   ;;  %v1947_v32 = vshrl.u32 %v7065_v19, 16  ;;  %v1158_v48 = vld [vmem:[#allocation2 + $0x13c] sm:$0xf] }
  0xa6   :  { %1724 = vrot.lane.b32.xlu1 %v1687_v8, %s6314_s16  ;;  %1734 = vrot.lane.b32.xlu0 %v1702_v34, %s6314_s16  ;;  %v7096_v8 = vld [vmem:[#allocation2 + $0x4c] sm:$0xf]  ;;  %v1147_v34 = vld [vmem:[#allocation2 + $0xfc] sm:$0xf]  ;;  %v1951_v7 = vrot.slane %v1949_v23, 1 }
  0xa7   :  { %v7109_v49 = vcombine.low %v1137_v56, %v7096_v8  ;;  %v7113_v6 = vcombine.low %v1147_v34, %v1148_v24  ;;  %v1150_v56 = vld [vmem:[#allocation2 + $0x10c] sm:$0xf]  ;;  %v1923_v34 = vshrl.u32 %v7050_v18, 16  ;;  %v1927_v24 = vrot.slane %v1925_v35, 1  ;;  %v899_v16 = vld [vmem:[#allocation2 + $0x74] sm:$0x1] }
  0xa9   :  { %v1928_v52 = vor.u32 %v1927_v24, %v1923_v34  ;;  %v1971_v24 = vshrl.u32 %v7080_v22, 16 }
  0xaa   :  { %1728 = vrot.lane.b32.xlu1 %v1693_v15, %s6314_s16  ;;  %1818 = vrot.lane.b32.xlu0 %v7036_v27, %s6315_s25  ;;  %v7104_v15 = vld [vmem:[#allocation2 + $0x14] ss:$0 sps:$4 sm:$0x11]   ;;  %v1156_v27 = vld [vmem:[#allocation2 + $0x130] sm:$0xf] }
  0xab   :  { %v1906_v37 = vshll.u32 %v7104_v15, 16  ;;  %v7140_v46 = vcombine.low %v1155_v1, %v1156_v27  ;;  %v7155_v1 = vcombine.low %v1149_v50, %v1150_v56  ;;  %v1153_v27 = vld [vmem:[#allocation2 + $0x120] sm:$0xf]  ;;  %v1915_v50 = vrot.slane %v1913_v41, 1 }
  0xac   :  { %v1942_v56 = vshll.u32 %v7143_v17, 16  ;;  %v142_v41 = vld [vmem:[%s9425_s0 + $0x40] sm:$0xf]  ;;  %v7183_v35 = vcombine.low %v1153_v27, %v1154_v38 }
  0xad   :  { %v330_v21 = vshrl.u32 %v142_v41, 16  ;;  %v333_v40 = vshll.u32 %v142_v41, 16  ;;  %v1916_v3 = vor.u32 %v1915_v50, %v1911_v43 }
  0xae   :  { %1732 = vrot.lane.b32.xlu1 %v1699_v61, %s6314_s16  ;;  %1822 = vrot.lane.b32.xlu0 %v7050_v18, %s6315_s25  ;;  %v1903_v61 = vrot.slane %v1901_v47, 1  ;;  %v600_v47 = vrot.slane %v7038_v58, 4  ;;  %v1918_v58 = vshll.u32 %v7131_v45, 16  ;;  %v1944_v11 = vrot.slane %v1942_v56, 1 }
  0xaf   :  { %v332_v13 = vrot.slane %v330_v21, 7 }
  0xb0   :  { %v1005_v18 = vsel %vm6606_vm8, %v600_v47, %v1004_v39  ;;  %v1932_v47 = vrot.slane %v1930_v29, 1  ;;  %v1920_v34 = vrot.slane %v1918_v58, 1  ;;  %v143_v58 = vld [vmem:[%s9425_s0 + $0x44] sm:$0xf] }
  0xb1   :  { %1006 = vst [vmem:[#allocation2 + $0x140] sm:$0x1] %v1005_v18  ;;  %v338_v27 = vshrl.u32 %v143_v58, 16  ;;  %v341_v41 = vshll.u32 %v143_v58, 16  ;;  %v336_v28 = vrot.slane %v332_v13, 4 }
  0xb2   :  { %1736 = vrot.lane.b32.xlu1 %v1705_v5, %s6314_s16  ;;  %1826 = vrot.lane.b32.xlu0 %v7065_v19, %s6315_s25  ;;  %v7129_v5 = vcombine.low %v1151_v20, %v1152_v26  ;;  %v1904_v20 = vor.u32 %v1903_v61, %v1899_v25  ;;  %v1908_v26 = vrot.slane %v1906_v37, 1  ;;  %v1954_v61 = vshll.u32 %v7134_v51, 16  ;;  %v7159_v37 = vld [vmem:[#allocation2 + $0x5c] ss:$0 sps:$4 sm:$0x11]  }
  0xb3   :  { %v9475_v19 = vshll.u32 %v7089_v4, 16  ;;  %v1978_v18 = vshll.u32 %v7159_v37, 16  ;;  %v7187_v25 = vld [vmem:[#allocation2 + $0xec] ss:$0 sps:$4 sm:$0x11]   ;;  %v1933_v56 = vsel %vm1384_vm6, %v1928_v52, %v1932_v47  ;;  %v7208_v52 = vpop.permute.xlu0 %1577 }
  0xb4   :  { %v1909_v39 = vsel %vm1384_vm6, %v1904_v20, %v1908_v26  ;;  %v1956_v29 = vrot.slane %v1954_v61, 1  ;;  %v9476_v20 = vshll.u32 %v7080_v22, 16  ;;  %v1959_v61 = vshrl.u32 %v7109_v49, 16 }
  0xb5   :  { %v1939_v23 = vrot.slane %v9475_v19, 1  ;;  %v7185_v19 = vld [vmem:[#allocation2 + $0x50] ss:$0 sps:$4 sm:$0x11]   ;;  %v2002_v33 = vshll.u32 %v7187_v25, 16 }
  0xb6   :  { %1820 = vrot.lane.b32.xlu1 %v7073_v14, %s6315_s25  ;;  %1830 = vrot.lane.b32.xlu0 %v7080_v22, %s6315_s25  ;;  %v1935_v14 = vshrl.u32 %v7089_v4, 16  ;;  %v1975_v26 = vrot.slane %v9476_v20, 1  ;;  %v9477_v22 = vshll.u32 %v7109_v49, 16  ;;  %v1157_v20 = vld [vmem:[#allocation2 + $0x138] sm:$0xf]  ;;  %v1966_v43 = vshll.u32 %v7185_v19, 16 }
  0xb7   :  { %v7204_v21 = vcombine.low %v1157_v20, %v1158_v48 }
  0xb8   :  { %v1963_v38 = vrot.slane %v9477_v22, 1  ;;  %v1940_v30 = vor.u32 %v1939_v23, %v1935_v14  ;;  %v335_v22 = vor.u32 %v333_v40, %v332_v13  ;;  %v145_v14 = vld [vmem:[%s9425_s0 + $0x4c] sm:$0xf]  ;;  %v6097_v13 = vld [vmem:[#allocation2 + $0x104] ss:$0 sps:$4 sm:$0x11]  }
  0xba   :  { %1824 = vrot.lane.b32.xlu1 %v7089_v4, %s6315_s25  ;;  %1834 = vrot.lane.b32.xlu0 %v7094_v44, %s6315_s25  ;;  %v1952_v4 = vor.u32 %v1951_v7, %v1947_v32  ;;  %v1995_v7 = vshrl.u32 %v7094_v44, 16  ;;  %v1999_v32 = vrot.slane %v1997_v63, 1  ;;  %v144_v44 = vld [vmem:[%s9425_s0 + $0x48] sm:$0xf]  ;;  %v1980_v63 = vrot.slane %v1978_v18, 1 }
  0xbb   :  { %v896_v23 = vsel %vm6589_vm7, %v335_v22, %v895_v55  ;;  %v350_v48 = vshll.u32 %v144_v44, 16  ;;  %v1964_v20 = vor.u32 %v1963_v38, %v1959_v61  ;;  %v146_v22 = vld [vmem:[%s9425_s0 + $0x50] sm:$0xf]  ;;  %v7238_v38 = vpop.permute.xlu0 %1593 }
  0xbc   :  { %v1957_v53 = vsel %vm1384_vm6, %v1952_v4, %v1956_v29  ;;  %v2000_v40 = vor.u32 %v1999_v32, %v1995_v7  ;;  %v347_v29 = vshrl.u32 %v144_v44, 16  ;;  %897 = vst [vmem:[#allocation2 + $0x6c] sm:$0xf] %v896_v23  ;;  %v1921_v4 = vsel %vm1384_vm6, %v1916_v3, %v1920_v34  ;;  %v7229_v3 = vld [vmem:[#allocation2 + $0x68] ss:$0 sps:$4 sm:$0x11]  }
  0xbd   :  { %v9478_v7 = vshll.u32 %v7113_v6, 16  ;;  %v902_v34 = vld [vmem:[#allocation2 + $0x78] sm:$0xf]  ;;  %9480 = vst [vmem:[#allocation23_spill] sm:$0xff] %v7238_v38 }
  0xbe   :  { %1828 = vrot.lane.b32.xlu1 %v7109_v49, %s6315_s25  ;;  %1838 = vrot.lane.b32.xlu0 %v7113_v6, %s6315_s25  ;;  %v1976_v49 = vor.u32 %v1975_v26, %v1971_v24  ;;  %v2004_v24 = vrot.slane %v2002_v33, 1  ;;  %v2019_v26 = vshrl.u32 %v7113_v6, 16  ;;  %v349_v55 = vrot.slane %v347_v29, 7 }
  0xbf   :  { %v2023_v32 = vrot.slane %v9478_v7, 1  ;;  %v355_v33 = vshrl.u32 %v145_v14, 16  ;;  %v358_v6 = vshll.u32 %v145_v14, 16  ;;  %v2033_v7 = vshll.u32 %v7155_v1, 16 }
  0xc1   :  { %v357_v44 = vrot.slane %v355_v33, 7 }
  0xc2   :  { %1832 = vrot.lane.b32.xlu1 %v7125_v62, %s6315_s25  ;;  %1842 = vrot.lane.b32.xlu0 %v7129_v5, %s6315_s25 }
  0xc3   :  { %v360_v14 = vor.u32 %v358_v6, %v357_v44  ;;  %v362_v23 = vrot.slane %v357_v44, 4  ;;  %v6100_v6 = vld [vmem:[#allocation2 + $0x110] ss:$0 sps:$4 sm:$0x11]   ;;  %v2067_v44 = vshrl.u32 %v7140_v46, 16 }
  0xc6   :  { %1836 = vrot.lane.b32.xlu1 %v7136_v59, %s6315_s25  ;;  %1846 = vrot.lane.b32.xlu0 %v7140_v46, %s6315_s25 }
  0xca   :  { %1840 = vrot.lane.b32.xlu1 %v7155_v1, %s6315_s25  ;;  %2090 = vrot.lane.b32.xlu0 %v1909_v39, %s6316_s30  ;;  %v340_v39 = vrot.slane %v338_v27, 7  ;;  %v6099_v27 = vld [vmem:[#allocation2 + $0x11c] ss:$0 sps:$4 sm:$0x11]  }
  0xcb   :  { %v2050_v29 = vshll.u32 %v6099_v27, 16 }
  0xcc   :  { %v343_v47 = vor.u32 %v341_v41, %v340_v39  ;;  %v345_v50 = vrot.slane %v340_v39, 4  ;;  %v352_v41 = vor.u32 %v350_v48, %v349_v55  ;;  %v353_v39 = vrot.slane %v349_v55, 4 }
  0xcd   :  { %v364_v48 = vshrl.u32 %v146_v22, 16  ;;  %v9482_v55 = vshll.u32 %v7136_v59, 16 }
  0xce   :  { %1844 = vrot.lane.b32.xlu1 %v7183_v35, %s6315_s25  ;;  %2094 = vrot.lane.b32.xlu0 %v1933_v56, %s6316_s30  ;;  %v344_v18 = vsel %vm6571_vm4, %v336_v28, %v343_v47  ;;  %v900_v58 = vsel %vm6606_vm8, %v345_v50, %v899_v16  ;;  %v1945_v28 = vsel %vm1384_vm6, %v1940_v30, %v1944_v11  ;;  %v2026_v56 = vshll.u32 %v6097_v13, 16  ;;  %v6098_v50 = vld [vmem:[#allocation2 + $0xf8] ss:$0 sps:$4 sm:$0x11]  }
  0xcf   :  { %898 = vst.msk [vmem:[#allocation2 + $0x70] sm:$0xf] %vm16_vm0, %v344_v18  ;;  %901 = vst [vmem:[#allocation2 + $0x74] sm:$0x1] %v900_v58  ;;  %v1981_v16 = vsel %vm1384_vm6, %v1976_v49, %v1980_v63  ;;  %v1968_v47 = vrot.slane %v1966_v43, 1  ;;  %v1983_v30 = vshrl.u32 %v7125_v62, 16  ;;  %v2024_v63 = vor.u32 %v2023_v32, %v2019_v26 }
  0xd0   :  { %v9479_v11 = vshll.u32 %v7125_v62, 16  ;;  %v906_v49 = vld [vmem:[#allocation2 + $0x80] sm:$0x1]  ;;  %v903_v13 = vsel %vm6589_vm7, %v352_v41, %v902_v34  ;;  %v2043_v43 = vshrl.u32 %v7129_v5, 16  ;;  %v2028_v26 = vrot.slane %v2026_v56, 1 }
  0xd1   :  { %904 = vst [vmem:[#allocation2 + $0x78] sm:$0xf] %v903_v13  ;;  %v6101_v18 = vld [vmem:[#allocation2 + $0x134] ss:$0 sps:$4 sm:$0x11]   ;;  %v361_v58 = vsel %vm6571_vm4, %v353_v39, %v360_v14  ;;  %v1969_v32 = vsel %vm1384_vm6, %v1964_v20, %v1968_v47  ;;  %v2011_v33 = vrot.slane %v9482_v55, 1  ;;  %v7262_v20 = vpop.permute.xlu1 %1581  ;;  %v7264_v39 = vpop.permute.xlu0 %1579 }
  0xd2   :  { %1848 = vrot.lane.b32.xlu1 %v7204_v21, %s6315_s25  ;;  %2098 = vrot.lane.b32.xlu0 %v1957_v53, %s6316_s30  ;;  %v2005_v53 = vsel %vm1384_vm6, %v2000_v40, %v2004_v24  ;;  %v1987_v61 = vrot.slane %v9479_v11, 1  ;;  %v9481_v40 = vshll.u32 %v7129_v5, 16  ;;  %v1990_v24 = vshll.u32 %v7229_v3, 16  ;;  %905 = vst.msk [vmem:[#allocation2 + $0x7c] sm:$0xf] %vm16_vm0, %v361_v58 }
  0xd3   :  { %v2007_v5 = vshrl.u32 %v7136_v59, 16  ;;  %v7258_v34 = vrot.slane %v364_v48, 7  ;;  %v2052_v41 = vrot.slane %v2050_v29, 1  ;;  %v367_v47 = vshll.u32 %v146_v22, 16  ;;  %v909_v14 = vld [vmem:[#allocation2 + $0x84] sm:$0xf] }
  0xd4   :  { %v2047_v62 = vrot.slane %v9481_v40, 1  ;;  %v1988_v27 = vor.u32 %v1987_v61, %v1983_v30  ;;  %v1175_v30 = vld [vmem:[#allocation2 + $0xc] sm:$0xe]  ;;  %v1992_v59 = vrot.slane %v1990_v24, 1  ;;  %v2029_v11 = vsel %vm1384_vm6, %v2024_v63, %v2028_v26  ;;  %v1177_v29 = vld [vmem:[#allocation2 + $0x24] sm:$0xe] }
  0xd5   :  { %v9483_v61 = vshll.u32 %v7140_v46, 16  ;;  %v2057_v13 = vshll.u32 %v7183_v35, 16  ;;  %v369_v40 = vor.u32 %v367_v47, %v7258_v34  ;;  %v5653_v22 = vcombine.low %v1175_v30, %v7029_v2  ;;  %v6103_v47 = vld [vmem:[#allocation2 + $0x140] ss:$0 sps:$4 sm:$0x11]  }
  0xd6   :  { %2092 = vrot.lane.b32.xlu1 %v1921_v4, %s6316_s30  ;;  %2102 = vrot.lane.b32.xlu0 %v1981_v16, %s6316_s30  ;;  %v907_v4 = vsel %vm6606_vm8, %v362_v23, %v906_v49  ;;  %v2014_v16 = vshll.u32 %v6098_v50, 16  ;;  %v2048_v56 = vor.u32 %v2047_v62, %v2043_v43  ;;  %v2074_v50 = vshll.u32 %v6101_v18, 16  ;;  %v6102_v43 = vld [vmem:[#allocation2 + $0x128] ss:$0 sps:$4 sm:$0x11]  }
  0xd7   :  { %908 = vst [vmem:[#allocation2 + $0x80] sm:$0x1] %v907_v4  ;;  %v2071_v49 = vrot.slane %v9483_v61, 1  ;;  %v2038_v23 = vshll.u32 %v6100_v6, 16  ;;  %v2012_v63 = vor.u32 %v2011_v33, %v2007_v5  ;;  %v1993_v48 = vsel %vm1384_vm6, %v1988_v27, %v1992_v59  ;;  %v1179_v18 = vld [vmem:[#allocation2 + $0x3c] sm:$0xe]  ;;  %v7283_v4 = vpop.permute.xlu1 %1583 }
  0xd8   :  { %v2016_v46 = vrot.slane %v2014_v16, 1  ;;  %v2053_v62 = vsel %vm1384_vm6, %v2048_v56, %v2052_v41  ;;  %v2076_v26 = vrot.slane %v2074_v50, 1  ;;  %v910_v2 = vsel %vm6589_vm7, %v369_v40, %v909_v14  ;;  %9484 = vst [vmem:[#allocation24_spill] sm:$0xff] %v7283_v4  ;;  %v1176_v59 = vld [vmem:[#allocation2 + $0x18] sm:$0xe] }
  0xd9   :  { %v2072_v24 = vor.u32 %v2071_v49, %v2067_v44  ;;  %911 = vst [vmem:[#allocation2 + $0x84] sm:$0xf] %v910_v2  ;;  %v2040_v5 = vrot.slane %v2038_v23, 1  ;;  %v2059_v55 = vrot.slane %v2057_v13, 1  ;;  %v2062_v33 = vshll.u32 %v6102_v43, 16 }
  0xda   :  { %2096 = vrot.lane.b32.xlu1 %v1945_v28, %s6316_s30  ;;  %2106 = vrot.lane.b32.xlu0 %v2005_v53, %s6316_s30  ;;  %v2031_v28 = vshrl.u32 %v7155_v1, 16  ;;  %v2035_v53 = vrot.slane %v2033_v7, 1  ;;  %v147_v1 = vld [vmem:[%s9425_s0 + $0x54] sm:$0xf]  ;;  %v7285_v7 = vpop.permute.xlu0 %1585  ;;  %v5655_v27 = vcombine.low %v1177_v29, %v7041_v57  ;;  %v2081_v6 = vshll.u32 %v7204_v21, 16 }
  0xdb   :  { %9485 = vst [vmem:[#allocation25_spill] sm:$0xff] %v7285_v7  ;;  %v372_v16 = vshrl.u32 %v147_v1, 16  ;;  %v2017_v56 = vsel %vm1384_vm6, %v2012_v63, %v2016_v46  ;;  %v2077_v41 = vsel %vm1384_vm6, %v2072_v24, %v2076_v26  ;;  %v2170_v44 = vrot.slane %v5653_v22, 1  ;;  %v1181_v50 = vld [vmem:[#allocation2 + $0x54] sm:$0xe] }
  0xdc   :  { %v2036_v58 = vor.u32 %v2035_v53, %v2031_v28  ;;  %v5657_v30 = vcombine.low %v1179_v18, %v7056_v10  ;;  %v2064_v61 = vrot.slane %v2062_v33, 1  ;;  %v7299_v28 = vpop.permute.xlu1 %1587  ;;  %v2083_v14 = vrot.slane %v2081_v6, 1  ;;  %v3330_v63 = vld [vmem:[#allocation2 + $0x6c] sm:$0xf]  ;;  %v7307_v46 = vld [vmem:[#allocation2 + $0x70] sm:$0xf] }
  0xdd   :  { %v374_v49 = vrot.slane %v372_v16, 7  ;;  %9486 = vst [vmem:[#allocation26_spill] sm:$0xff] %v7299_v28  ;;  %v370_v10 = vrot.slane %v7258_v34, 4  ;;  %v375_v13 = vshll.u32 %v147_v1, 16  ;;  %v2086_v43 = vshll.u32 %v6103_v47, 16 }
  0xde   :  { %2100 = vrot.lane.b32.xlu1 %v1969_v32, %s6316_s30  ;;  %2110 = vrot.lane.b32.xlu0 %v2029_v11, %s6316_s30  ;;  %v2055_v32 = vshrl.u32 %v7183_v35, 16  ;;  %v2171_v35 = vrot.slane %v7104_v15, 1  ;;  %v2041_v11 = vsel %vm1384_vm6, %v2036_v58, %v2040_v5  ;;  %v7301_v53 = vpop.permute.xlu0 %1589  ;;  %v2079_v15 = vshrl.u32 %v7204_v21, 16  ;;  %v913_v26 = vld [vmem:[#allocation2 + $0x8c] sm:$0x1] }
  0xdf   :  { %9487 = vst [vmem:[#allocation27_spill] sm:$0xff] %v7301_v53  ;;  %v2176_v40 = vrot.slane %v5655_v27, 1  ;;  %v2177_v22 = vrot.slane %v7119_v60, 1  ;;  %v5654_v29 = vcombine.low %v1176_v59, %v7062_v0  ;;  %v5659_v24 = vcombine.low %v1181_v50, %v7068_v36  ;;  %v1183_v34 = vld [vmem:[#allocation2 + $0xe4] sm:$0xe] }
  0xe0   :  { %v2060_v57 = vor.u32 %v2059_v55, %v2055_v32  ;;  %v2172_v23 = vsel %vm1657_vm9, %v2170_v44, %v2171_v35  ;;  %v2084_v1 = vor.u32 %v2083_v14, %v2079_v15  ;;  %v2182_v60 = vrot.slane %v5657_v30, 1  ;;  %v148_v5 = vld [vmem:[%s9425_s0 + $0x58] sm:$0xf]  ;;  %v1180_v33 = vld [vmem:[#allocation2 + $0x48] sm:$0xe]  ;;  %v7326_v16 = vpop.permute.xlu1 %1591 }
  0xe1   :  { %v379_v18 = vrot.slane %v374_v49, 4  ;;  %v2088_v58 = vrot.slane %v2086_v43, 1  ;;  %v2178_v0 = vsel %vm1657_vm9, %v2176_v40, %v2177_v22  ;;  %v2183_v36 = vrot.slane %v7134_v51, 1  ;;  %9488 = vst [vmem:[#allocation28_spill] sm:$0xff] %v7326_v16  ;;  %v3328_v6 = vld [vmem:[#allocation2 + $0x60] sm:$0xf] }
  0xe2   :  { %2104 = vrot.lane.b32.xlu1 %v1993_v48, %s6316_s30  ;;  %2114 = vrot.lane.b32.xlu0 %v2053_v62, %s6316_s30  ;;  %v377_v62 = vor.u32 %v375_v13, %v374_v49  ;;  %v1178_v48 = vld [vmem:[#allocation2 + $0x30] sm:$0xe]  ;;  %v2065_v21 = vsel %vm1384_vm6, %v2060_v57, %v2064_v61  ;;  %v7319_v32 = vcombine.low %v3330_v63, %v7307_v46  ;;  %v7328_v27 = vpop.permute.xlu0 %1597  ;;  %v2173_v44 = vrot.slane %v5654_v29, 1  ;;  %v7342_v59 = vld [vmem:[#allocation2 + $0x74] ss:$0 sps:$4 sm:$0x11]  }
  0xe3   :  { %v5656_v55 = vcombine.low %v1178_v48, %v7077_v54  ;;  %9489 = vst [vmem:[#allocation29_spill] sm:$0xff] %v7328_v27  ;;  %v914_v51 = vsel %vm6606_vm8, %v379_v18, %v913_v26  ;;  %v2174_v35 = vrot.slane %v7131_v45, 1  ;;  %v2188_v47 = vrot.slane %v5659_v24, 1  ;;  %v7337_v54 = vld [vmem:[#allocation2 + $0x64] sm:$0xf] }
  0xe4   :  { %v378_v2 = vsel %vm6571_vm4, %v370_v10, %v377_v62  ;;  %915 = vst [vmem:[#allocation2 + $0x8c] sm:$0x1] %v914_v51  ;;  %v2189_v30 = vrot.slane %v7159_v37, 1  ;;  %v384_v57 = vshll.u32 %v148_v5, 16  ;;  %v2089_v61 = vsel %vm1384_vm6, %v2084_v1, %v2088_v58  ;;  %v1182_v15 = vld [vmem:[#allocation2 + $0x60] sm:$0xe] }
  0xe5   :  { %912 = vst.msk [vmem:[#allocation2 + $0x88] sm:$0xf] %vm16_vm0, %v378_v2  ;;  %v3665_v45 = vshll.u32 %v7319_v32, 16  ;;  %v5658_v50 = vcombine.low %v1180_v33, %v7096_v8  ;;  %v2179_v14 = vrot.slane %v5656_v55, 1  ;;  %v7350_v43 = vcombine.low %v3328_v6, %v7337_v54  ;;  %v916_v22 = vld [vmem:[#allocation2 + $0x90] sm:$0xf]  ;;  %v7355_v62 = vpop.permute.xlu1 %1595 }
  0xe6   :  { %2108 = vrot.lane.b32.xlu1 %v2017_v56, %s6316_s30  ;;  %2118 = vrot.lane.b32.xlu0 %v2077_v41, %s6316_s30  ;;  %v149_v56 = vld [vmem:[%s9425_s0 + $0x5c] sm:$0xf]  ;;  %v5661_v41 = vcombine.low %v1183_v34, %v7082_v9  ;;  %v2184_v9 = vsel %vm1657_vm9, %v2182_v60, %v2183_v36  ;;  %v2175_v63 = vsel %vm1657_vm9, %v2173_v44, %v2174_v35  ;;  %v2195_v29 = vrot.slane %v7187_v25, 1  ;;  %v3377_v48 = vld [vmem:[#allocation2 + $0x6c] sm:$0xe]  ;;  %v9492_v58 = vld [vmem:[#allocation22_spill] sm:$0xff] }
  0xe7   :  { %v389_v49 = vshrl.u32 %v149_v56, 16  ;;  %v392_v13 = vshll.u32 %v149_v56, 16  ;;  %9490 = vst [vmem:[#allocation30_spill] sm:$0xff] %v7355_v62  ;;  %v2190_v26 = vsel %vm1657_vm9, %v2188_v47, %v2189_v30  ;;  %v3663_v34 = vshrl.u32 %v7319_v32, 16  ;;  %v3395_v18 = vld [vmem:[#allocation2 + $0x78] sm:$0xf] }
  0xe8   :  { %v2194_v37 = vrot.slane %v5661_v41, 1  ;;  %v3667_v1 = vrot.slane %v3665_v45, 1  ;;  %v3670_v60 = vshll.u32 %v7342_v59, 16  ;;  %v7363_v2 = vld [vmem:[#allocation2 + $0x68] ss:$0 sps:$4 sm:$0x11]   ;;  %v5770_v44 = vcombine.low %v3377_v48, %v7307_v46 }
  0xe9   :  { %v391_v40 = vrot.slane %v389_v49, 7  ;;  %v7366_v36 = vld [vmem:[#allocation2 + $0x7c] sm:$0xf]  ;;  %v2185_v6 = vrot.slane %v5658_v50, 1  ;;  %v3653_v51 = vshll.u32 %v7350_v43, 16  ;;  %v2186_v56 = vrot.slane %v7185_v19, 1 }
  0xea   :  { %2112 = vrot.lane.b32.xlu1 %v2041_v11, %s6316_s30  ;;  %2218 = vrot.lane.b32.xlu0 %v2172_v23, %s6317_s13  ;;  %v381_v11 = vshrl.u32 %v148_v5, 16  ;;  %v2180_v23 = vrot.slane %v7143_v17, 1  ;;  %v2196_v41 = vsel %vm1657_vm9, %v2194_v37, %v2195_v29  ;;  %v3668_v47 = vor.u32 %v3667_v1, %v3663_v34  ;;  %v1192_v1 = vld [vmem:[#allocation2 + $0x18] sm:$0xf] }
  0xeb   :  { %v394_v5 = vor.u32 %v392_v13, %v391_v40  ;;  %v396_v55 = vrot.slane %v391_v40, 4  ;;  %v3672_v30 = vrot.slane %v3670_v60, 1  ;;  %v2192_v46 = vrot.slane %v7229_v3, 1  ;;  %v3393_v13 = vld [vmem:[#allocation2 + $0x6c] sm:$0xf] }
  0xec   :  { %v383_v10 = vrot.slane %v381_v11, 7  ;;  %v2181_v33 = vsel %vm1657_vm9, %v2179_v14, %v2180_v23  ;;  %v7380_v11 = vcombine.low %v3395_v18, %v7366_v36  ;;  %v3651_v45 = vshrl.u32 %v7350_v43, 16  ;;  %v7395_v23 = vld [vmem:[#allocation2 + $0x70] sm:$0xf]  ;;  %v7417_v60 = vld [vmem:[#allocation2 + $0x1c] sm:$0xf] }
  0xed   :  { %v3655_v49 = vrot.slane %v3653_v51, 1  ;;  %v3658_v50 = vshll.u32 %v7363_v2, 16  ;;  %v3925_v14 = vrot.slane %v5770_v44, 1  ;;  %v2187_v37 = vsel %vm1657_vm9, %v2185_v6, %v2186_v56  ;;  %v7424_v6 = vld [vmem:[#allocation2 + $0x74] ss:$0 sps:$4 sm:$0x11]  }
  0xee   :  { %2116 = vrot.lane.b32.xlu1 %v2065_v21, %s6316_s30  ;;  %2222 = vrot.lane.b32.xlu0 %v2178_v0, %s6317_s13  ;;  %v7357_v8 = vpop.permute.xlu0 %1601  ;;  %v386_v17 = vor.u32 %v384_v57, %v383_v10  ;;  %v387_v24 = vrot.slane %v383_v10, 4  ;;  %v920_v21 = vld [vmem:[#allocation2 + $0x98] sm:$0x1]  ;;  %v5660_v0 = vcombine.low %v1182_v15, %v9492_v58  ;;  %v3376_v15 = vld [vmem:[#allocation2 + $0x60] sm:$0xe]  ;;  %v3926_v10 = vrot.slane %v7342_v59, 1 }
  0xef   :  { %9491 = vst [vmem:[#allocation31_spill] sm:$0xff] %v7357_v8  ;;  %v921_v57 = vsel %vm6606_vm8, %v396_v55, %v920_v21  ;;  %v3673_v3 = vsel %vm1384_vm6, %v3668_v47, %v3672_v30  ;;  %v4177_v40 = vshll.u32 %v7380_v11, 16  ;;  %v5769_v59 = vcombine.low %v3376_v15, %v7337_v54  ;;  %v151_v56 = vld [vmem:[%s9425_s0 + $0x64] sm:$0xf]  ;;  %v7442_v15 = vld [vmem:[#allocation2 + $0x7c] sm:$0xf] }
  0xf0   :  { %v917_v25 = vsel %vm6589_vm7, %v386_v17, %v916_v22  ;;  %v395_v35 = vsel %vm6571_vm4, %v387_v24, %v394_v5  ;;  %922 = vst [vmem:[#allocation2 + $0x98] sm:$0x1] %v921_v57  ;;  %v7400_v22 = vld [vmem:[#allocation2 + $0x80] ss:$0 sps:$4 sm:$0x11]   ;;  %v7410_v17 = vcombine.low %v3393_v13, %v7395_v23  ;;  %v3656_v21 = vor.u32 %v3655_v49, %v3651_v45 }
  0xf1   :  { %918 = vst [vmem:[#allocation2 + $0x90] sm:$0xf] %v917_v25  ;;  %919 = vst.msk [vmem:[#allocation2 + $0x94] sm:$0xf] %vm16_vm0, %v395_v35  ;;  %v3927_v34 = vsel %vm1657_vm9, %v3925_v14, %v3926_v10  ;;  %v4175_v58 = vshrl.u32 %v7380_v11, 16  ;;  %v4179_v54 = vrot.slane %v4177_v40, 1  ;;  %v7427_v51 = vcombine.low %v1192_v1, %v7417_v60 }
  0xf2   :  { %2120 = vrot.lane.b32.xlu1 %v2089_v61, %s6316_s30  ;;  %2226 = vrot.lane.b32.xlu0 %v2184_v9, %s6317_s13  ;;  %v7385_v61 = vpop.permute.xlu1 %1599  ;;  %v2191_v9 = vrot.slane %v5660_v0, 1  ;;  %v4182_v0 = vshll.u32 %v7400_v22, 16  ;;  %v3923_v44 = vrot.slane %v7363_v2, 1  ;;  %v7435_v35 = vld [vmem:[#allocation2 + $0x20] ss:$0 sps:$4 sm:$0x11]  }
  0xf3   :  { %9493 = vst [vmem:[#allocation22_spill] sm:$0xff] %v7385_v61  ;;  %v4180_v30 = vor.u32 %v4179_v54, %v4175_v58  ;;  %v406_v14 = vshrl.u32 %v151_v56, 16  ;;  %v4163_v10 = vshrl.u32 %v7410_v17, 16  ;;  %v4170_v2 = vshll.u32 %v7424_v6, 16  ;;  %v1241_v61 = vld [vmem:[#allocation2 + $0x24] sm:$0xe] }
  0xf4   :  { %v2193_v48 = vsel %vm1657_vm9, %v2191_v9, %v2192_v46  ;;  %v4184_v57 = vrot.slane %v4182_v0, 1  ;;  %v923_v46 = vld [vmem:[#allocation2 + $0x9c] sm:$0xf]  ;;  %v2411_v0 = vshrl.u32 %v7427_v51, 16 }
  0xf5   :  { %v408_v40 = vrot.slane %v406_v14, 7 }
  0xf6   :  { %2220 = vrot.lane.b32.xlu1 %v2175_v63, %s6317_s13  ;;  %2230 = vrot.lane.b32.xlu0 %v2190_v26, %s6317_s13  ;;  %v150_v63 = vld [vmem:[%s9425_s0 + $0x60] sm:$0xf]  ;;  %v3660_v26 = vrot.slane %v3658_v50, 1  ;;  %v3458_v50 = vld [vmem:[#allocation2 + $0x78] sm:$0xf] }
  0xf7   :  { %v398_v18 = vshrl.u32 %v150_v63, 16  ;;  %v401_v5 = vshll.u32 %v150_v63, 16  ;;  %v409_v63 = vshll.u32 %v151_v56, 16 }
  0xf8   :  { %v7387_v19 = vpop.permute.xlu0 %1605  ;;  %v3661_v47 = vsel %vm1384_vm6, %v3656_v21, %v3660_v26  ;;  %v3441_v21 = vld [vmem:[#allocation2 + $0x6c] sm:$0xe]  ;;  %v4185_v26 = vsel %vm1384_vm6, %v4180_v30, %v4184_v57  ;;  %v927_v30 = vld [vmem:[#allocation2 + $0xa4] sm:$0x1] }
  0xf9   :  { %9494 = vst [vmem:[#allocation32_spill] sm:$0xff] %v7387_v19  ;;  %v400_v55 = vrot.slane %v398_v18, 7  ;;  %v3442_v18 = vld [vmem:[#allocation2 + $0x78] sm:$0xe]  ;;  %v411_v54 = vor.u32 %v409_v63, %v408_v40  ;;  %v5817_v56 = vcombine.low %v3441_v21, %v7395_v23 }
  0xfa   :  { %2224 = vrot.lane.b32.xlu1 %v2181_v33, %s6317_s13  ;;  %2234 = vrot.lane.b32.xlu0 %v2196_v41, %s6317_s13  ;;  %v4165_v33 = vshll.u32 %v7410_v17, 16  ;;  %v3922_v41 = vrot.slane %v5769_v59, 1  ;;  %v5818_v57 = vcombine.low %v3442_v18, %v7366_v36  ;;  %v1240_v63 = vld [vmem:[#allocation2 + $0x18] sm:$0xe] }
  0xfb   :  { %v403_v9 = vor.u32 %v401_v5, %v400_v55 }
  0xfc   :  { %v7405_v29 = vpop.permute.xlu0 %1706  ;;  %v7413_v24 = vpop.permute.xlu1 %1603  ;;  %v4167_v13 = vrot.slane %v4165_v33, 1  ;;  %v3924_v59 = vsel %vm1657_vm9, %v3922_v41, %v3923_v44  ;;  %v7463_v33 = vld [vmem:[#allocation2 + $0x28] sm:$0xf]  ;;  %v4172_v44 = vrot.slane %v4170_v2, 1  ;;  %v7482_v2 = vld [vmem:[#allocation2 + $0x7c] sm:$0xf] }
  0xfd   :  { %9495 = vst [vmem:[#allocation33_spill] sm:$0xff] %v7413_v24 }
  0xfe   :  { %2228 = vrot.lane.b32.xlu1 %v2187_v37, %s6317_s13  ;;  %3844 = vrot.lane.b32.xlu0 %v3673_v3, %s6313_s5  ;;  %v2413_v37 = vshll.u32 %v7427_v51, 16  ;;  %v404_v3 = vrot.slane %v400_v55, 4  ;;  %v1194_v55 = vld [vmem:[#allocation2 + $0x24] sm:$0xf]  ;;  %v4168_v41 = vor.u32 %v4167_v13, %v4163_v10  ;;  %v3332_v13 = vld [vmem:[#allocation2 + $0x78] sm:$0xf] }
  0xff   :  { %v7480_v10 = vcombine.low %v1194_v55, %v7463_v33 }
 0x100   :  { %v7421_v25 = vpop.permute.xlu0 %1710  ;;  %v2415_v5 = vrot.slane %v2413_v37, 1 }
 0x102   :  { %2232 = vrot.lane.b32.xlu1 %v2193_v48, %s6317_s13  ;;  %3972 = vrot.lane.b32.xlu0 %v3927_v34, %s6314_s16  ;;  %v924_v48 = vsel %vm6589_vm7, %v403_v9, %v923_v46  ;;  %v7455_v34 = vcombine.low %v3458_v50, %v7442_v15  ;;  %v7472_v46 = vld [vmem:[#allocation2 + $0x80] ss:$0 sps:$4 sm:$0x11]   ;;  %v413_v50 = vrot.slane %v408_v40, 4  ;;  %v4173_v40 = vsel %vm1384_vm6, %v4168_v41, %v4172_v44  ;;  %v3506_v41 = vld [vmem:[#allocation2 + $0x78] sm:$0xe] }
 0x103   :  { %925 = vst [vmem:[#allocation2 + $0x9c] sm:$0xf] %v924_v48  ;;  %v4434_v48 = vrot.slane %v5817_v56, 1  ;;  %v2416_v21 = vor.u32 %v2415_v5, %v2411_v0  ;;  %v4438_v44 = vrot.slane %v7400_v22, 1  ;;  %v5701_v0 = vcombine.low %v1240_v63, %v7417_v60  ;;  %v3460_v5 = vld [vmem:[#allocation2 + $0x84] sm:$0xf] }
 0x104   :  { %v7438_v45 = vpop.permute.xlu1 %1607  ;;  %v7440_v49 = vpop.permute.xlu0 %1714  ;;  %v4677_v9 = vshll.u32 %v7455_v34, 16  ;;  %v928_v36 = vsel %vm6606_vm8, %v413_v50, %v927_v30  ;;  %v4675_v18 = vshrl.u32 %v7455_v34, 16  ;;  %v7508_v30 = vld [vmem:[#allocation2 + $0x2c] ss:$0 sps:$4 sm:$0x11]   ;;  %v2425_v50 = vshll.u32 %v7480_v10, 16 }
 0x105   :  { %9496 = vst [vmem:[#allocation34_spill] sm:$0xff] %v7438_v45  ;;  %9497 = vst [vmem:[#allocation35_spill] sm:$0xff] %v7440_v49  ;;  %v7522_v60 = vld [vmem:[%s9425_s0 + $0x6c] sm:$0xf] }
 0x106   :  { %3842 = vrot.lane.b32.xlu1 %v3661_v47, %s6313_s5  ;;  %4084 = vrot.lane.b32.xlu0 %v7380_v11, %s6315_s25  ;;  %v2418_v11 = vshll.u32 %v7435_v35, 16  ;;  %v412_v47 = vsel %vm6571_vm4, %v404_v3, %v411_v54  ;;  %v152_v3 = vld [vmem:[%s9425_s0 + $0x68] sm:$0xf]  ;;  %929 = vst [vmem:[#allocation2 + $0xa4] sm:$0x1] %v928_v36  ;;  %v4682_v54 = vshll.u32 %v7472_v46, 16 }
 0x107   :  { %926 = vst.msk [vmem:[#allocation2 + $0xa0] sm:$0xf] %vm16_vm0, %v412_v47  ;;  %v415_v56 = vshrl.u32 %v152_v3, 16  ;;  %v7506_v47 = vld [vmem:[#allocation2 + $0x88] sm:$0xf] }
 0x108   :  { %v7457_v1 = vpop.permute.xlu1 %1708  ;;  %v7459_v58 = vpop.permute.xlu0 %1718  ;;  %v2420_v37 = vrot.slane %v2418_v11, 1  ;;  %v4679_v11 = vrot.slane %v4677_v9, 1  ;;  %v3334_v9 = vld [vmem:[#allocation2 + $0x84] sm:$0xf]  ;;  %v4684_v45 = vrot.slane %v4682_v54, 1  ;;  %v2683_v54 = vrot.slane %v7435_v35, 1 }
 0x109   :  { %9498 = vst [vmem:[#allocation36_spill] sm:$0xff] %v7459_v58  ;;  %v7524_v36 = vrot.slane %v415_v56, 7  ;;  %v2427_v56 = vrot.slane %v2425_v50, 1  ;;  %v7559_v50 = vld [vmem:[#allocation2 + $0x8c] ss:$0 sps:$4 sm:$0x11]  }
 0x10a   :  { %3970 = vrot.lane.b32.xlu1 %v3924_v59, %s6314_s16  ;;  %4356 = vrot.lane.b32.xlu0 %v4185_v26, %s6316_s30  ;;  %v4435_v59 = vrot.slane %v7424_v6, 1  ;;  %v4437_v26 = vrot.slane %v5818_v57, 1  ;;  %v418_v6 = vshll.u32 %v152_v3, 16  ;;  %v7510_v57 = vld [vmem:[#allocation2 + $0x80] ss:$0 sps:$4 sm:$0x11]   ;;  %v2421_v22 = vsel %vm1384_vm6, %v2416_v21, %v2420_v37 }
 0x10b   :  { %v4680_v63 = vor.u32 %v4679_v11, %v4675_v18  ;;  %v7533_v21 = vcombine.low %v3460_v5, %v7506_v47  ;;  %v423_v11 = vshrl.u32 %v7522_v60, 16  ;;  %v3682_v5 = vshll.u32 %v7510_v57, 16 }
 0x10c   :  { %v7475_v14 = vpop.permute.xlu1 %1712  ;;  %v7477_v23 = vpop.permute.xlu0 %1722  ;;  %v4436_v3 = vsel %vm1657_vm9, %v4434_v48, %v4435_v59  ;;  %v420_v8 = vor.u32 %v418_v6, %v7524_v36  ;;  %v6177_v48 = vld [vmem:[%s9426_s1] sm:$0xff]   ;;  %v2682_v59 = vrot.slane %v5701_v0, 1 }
 0x10d   :  { %9499 = vst [vmem:[#allocation37_spill] sm:$0xff] %v7475_v14  ;;  %9500 = vst [vmem:[#allocation38_spill] sm:$0xff] %v7477_v23  ;;  %5935 = vmatprep.subr.bf16.mxu0 %v6177_v48  ;;  %5973 = vmatprep.subr.bf16.mxu1 %v6177_v48  ;;  %v4689_v35 = vshll.u32 %v7533_v21, 16 }
 0x10e   :  { %4082 = vrot.lane.b32.xlu1 %v7410_v17, %s6315_s25  ;;  %2330 = vrot.lane.b32.xlu0 %v7427_v51, %s6318_s26  ;;  %v7503_v51 = vcombine.low %v3332_v13, %v7482_v2  ;;  %v7517_v13 = vld [vmem:[#allocation2 + $0x88] sm:$0xf] }
 0x10f   :  { %v7542_v18 = vcombine.low %v3334_v9, %v7517_v13  ;;  %5936 = vmatpush3.bf16.msra.mxu0 %v6177_v48  ;;  %5974 = vmatpush3.bf16.msra.mxu1 %v6177_v48  ;;  %v421_v48 = vrot.slane %v7524_v36, 4 }
 0x110   :  { %v7497_v55 = vpop.permute.xlu1 %1716  ;;  %v7499_v17 = vpop.permute.xlu0 %1726  ;;  %9503 = vst [vmem:[#allocation41_spill] sm:$0xff] %v7503_v51  ;;  %v3677_v24 = vshll.u32 %v7503_v51, 16 }
 0x111   :  { %9501 = vst [vmem:[#allocation39_spill] sm:$0xff] %v7497_v55  ;;  %9502 = vst [vmem:[#allocation40_spill] sm:$0xff] %v7499_v17  ;;  %v3687_v36 = vshrl.u32 %v7542_v18, 16 }
 0x112   :  { %4354 = vrot.lane.b32.xlu1 %v4173_v40, %s6316_s30  ;;  %4594 = vrot.lane.b32.xlu0 %v7455_v34, %s6318_s26  ;;  %v5865_v40 = vcombine.low %v3506_v41, %v7442_v15  ;;  %v930_v34 = vld [vmem:[#allocation2 + $0xa8] sm:$0xf]  ;;  %v4439_v15 = vsel %vm1657_vm9, %v4437_v26, %v4438_v44  ;;  %9506 = vst [vmem:[#allocation44_spill] sm:$0xff] %v7542_v18  ;;  %v2423_v41 = vshrl.u32 %v7480_v10, 16  ;;  %v2430_v44 = vshll.u32 %v7508_v30, 16 }
 0x113   :  { %v931_v6 = vsel %vm6589_vm7, %v420_v8, %v930_v34  ;;  %v4685_v26 = vsel %vm1384_vm6, %v4680_v63, %v4684_v45  ;;  %v3675_v8 = vshrl.u32 %v7503_v51, 16  ;;  %v7562_v45 = vld [vmem:[#allocation2 + $0x8c] ss:$0 sps:$4 sm:$0x11]   ;;  %v425_v63 = vrot.slane %v423_v11, 7 }
 0x114   :  { %v7528_v19 = vpop.permute.xlu1 %1720  ;;  %v7530_v37 = vpop.permute.xlu0 %1730  ;;  %v4946_v0 = vrot.slane %v5865_v40, 1  ;;  %932 = vst [vmem:[#allocation2 + $0xa8] sm:$0xf] %v931_v6  ;;  %v3689_v40 = vshll.u32 %v7542_v18, 16  ;;  %v6180_v34 = vld [vmem:[%s9426_s1 + $0x8] sm:$0xff]   ;;  %v2684_v6 = vsel %vm1657_vm9, %v2682_v59, %v2683_v54  ;;  %v4687_v59 = vshrl.u32 %v7533_v21, 16 }
 0x115   :  { %9504 = vst [vmem:[#allocation42_spill] sm:$0xff] %v7528_v19  ;;  %9505 = vst [vmem:[#allocation43_spill] sm:$0xff] %v7530_v37  ;;  %v426_v37 = vshll.u32 %v7522_v60, 16  ;;  %v430_v17 = vrot.slane %v425_v63, 4  ;;  %5937 = vmatprep.subr.bf16.mxu0 %v6180_v34  ;;  %5975 = vmatprep.subr.bf16.mxu1 %v6180_v34  ;;  %v154_v60 = vld [vmem:[%s9425_s0 + $0x70] sm:$0xf] }
 0x116   :  { %4482 = vrot.lane.b32.xlu1 %v4436_v3, %s6317_s13  ;;  %2602 = vrot.lane.b32.xlu0 %v2421_v22, %s6319_s6  ;;  %v3679_v3 = vrot.slane %v3677_v24, 1  ;;  %v4947_v24 = vrot.slane %v7472_v46, 1 }
 0x117   :  { %5938 = vmatpush3.bf16.msra.mxu0 %v6180_v34  ;;  %5976 = vmatpush3.bf16.msra.mxu1 %v6180_v34  ;;  %v428_v54 = vor.u32 %v426_v37, %v425_v63  ;;  %v3399_v63 = vld [vmem:[#allocation2 + $0x90] sm:$0xf] }
 0x118   :  { %v7554_v9 = vpop.permute.xlu1 %1724  ;;  %v7556_v22 = vpop.permute.xlu0 %1734  ;;  %v3680_v46 = vor.u32 %v3679_v3, %v3675_v8  ;;  %v4948_v37 = vsel %vm1657_vm9, %v4946_v0, %v4947_v24  ;;  %v3694_v3 = vshll.u32 %v7562_v45, 16  ;;  %v432_v0 = vshrl.u32 %v154_v60, 16 }
 0x119   :  { %9507 = vst [vmem:[#allocation45_spill] sm:$0xff] %v7554_v9  ;;  %9508 = vst [vmem:[#allocation46_spill] sm:$0xff] %v7556_v22  ;;  %v934_v22 = vld [vmem:[#allocation2 + $0xb0] sm:$0x1]  ;;  %v2432_v9 = vrot.slane %v2430_v44, 1  ;;  %v3691_v44 = vrot.slane %v3689_v40, 1  ;;  %v429_v34 = vsel %vm6571_vm4, %v421_v48, %v428_v54 }
 0x11a   :  { %4484 = vrot.lane.b32.xlu1 %v4439_v15, %s6317_s13  ;;  %4866 = vrot.lane.b32.xlu0 %v4685_v26, %s6319_s6  ;;  %v2428_v15 = vor.u32 %v2427_v56, %v2423_v41  ;;  %v3684_v26 = vrot.slane %v3682_v5, 1  ;;  %v4691_v41 = vrot.slane %v4689_v35, 1  ;;  %v4694_v56 = vshll.u32 %v7559_v50, 16  ;;  %v3379_v5 = vld [vmem:[#allocation2 + $0x84] sm:$0xe] }
 0x11b   :  { %v935_v8 = vsel %vm6606_vm8, %v430_v17, %v934_v22  ;;  %v7598_v40 = vld [vmem:[#allocation2 + $0x94] sm:$0xf]  ;;  %933 = vst.msk [vmem:[#allocation2 + $0xac] sm:$0xf] %vm16_vm0, %v429_v34  ;;  %v5772_v48 = vcombine.low %v3379_v5, %v7517_v13  ;;  %v3692_v34 = vor.u32 %v3691_v44, %v3687_v36 }
 0x11c   :  { %v7574_v11 = vpop.permute.xlu1 %1728  ;;  %v7576_v27 = vpop.permute.xlu0 %1818  ;;  %936 = vst [vmem:[#allocation2 + $0xb0] sm:$0x1] %v935_v8  ;;  %v155_v17 = vld [vmem:[%s9425_s0 + $0x74] sm:$0xf]  ;;  %v2433_v22 = vsel %vm1384_vm6, %v2428_v15, %v2432_v9  ;;  %v3685_v24 = vsel %vm1384_vm6, %v3680_v46, %v3684_v26  ;;  %v4692_v54 = vor.u32 %v4691_v41, %v4687_v59  ;;  %v4696_v8 = vrot.slane %v4694_v56, 1 }
 0x11d   :  { %9509 = vst [vmem:[#allocation47_spill] sm:$0xff] %v7574_v11  ;;  %v3696_v11 = vrot.slane %v3694_v3, 1  ;;  %v7611_v23 = vcombine.low %v3399_v63, %v7598_v40  ;;  %v440_v9 = vshrl.u32 %v155_v17, 16  ;;  %v443_v15 = vshll.u32 %v155_v17, 16  ;;  %v937_v26 = vld [vmem:[#allocation2 + $0xb4] sm:$0xf] }
 0x11e   :  { %2332 = vrot.lane.b32.xlu1 %v7480_v10, %s6318_s26  ;;  %2730 = vrot.lane.b32.xlu0 %v2684_v6, %s6320_s11  ;;  %v5702_v10 = vcombine.low %v1241_v61, %v7463_v33  ;;  %v435_v61 = vshll.u32 %v154_v60, 16  ;;  %v3507_v33 = vld [vmem:[#allocation2 + $0x84] sm:$0xe]  ;;  %v3378_v60 = vld [vmem:[#allocation2 + $0x78] sm:$0xe]  ;;  %v3931_v44 = vrot.slane %v5772_v48, 1 }
 0x11f   :  { %v3397_v59 = vld [vmem:[#allocation2 + $0x84] sm:$0xf]  ;;  %v442_v36 = vrot.slane %v440_v9, 7  ;;  %v5866_v56 = vcombine.low %v3507_v33, %v7506_v47  ;;  %v3932_v3 = vrot.slane %v7562_v45, 1  ;;  %v7622_v63 = vld [vmem:[#allocation2 + $0x88] sm:$0xf]  ;;  %v5771_v45 = vcombine.low %v3378_v60, %v7482_v2 }
 0x120   :  { %v7594_v6 = vpop.permute.xlu1 %1732  ;;  %v7596_v35 = vpop.permute.xlu0 %1822  ;;  %v4201_v47 = vshll.u32 %v7611_v23, 16  ;;  %v1196_v48 = vld [vmem:[#allocation2 + $0x30] sm:$0xf]  ;;  %v4199_v9 = vshrl.u32 %v7611_v23, 16 }
 0x121   :  { %9510 = vst [vmem:[#allocation48_spill] sm:$0xff] %v7594_v6  ;;  %v434_v6 = vrot.slane %v432_v0, 7  ;;  %v445_v0 = vor.u32 %v443_v15, %v442_v36  ;;  %v4949_v33 = vrot.slane %v5866_v56, 1  ;;  %v3933_v2 = vsel %vm1657_vm9, %v3931_v44, %v3932_v3 }
 0x122   :  { %4596 = vrot.lane.b32.xlu1 %v7533_v21, %s6318_s26  ;;  %4994 = vrot.lane.b32.xlu0 %v4948_v37, %s6320_s11  ;;  %v2685_v21 = vrot.slane %v5702_v10, 1  ;;  %v2686_v37 = vrot.slane %v7508_v30, 1  ;;  %v4697_v10 = vsel %vm1384_vm6, %v4692_v54, %v4696_v8  ;;  %v3697_v30 = vsel %vm1384_vm6, %v3692_v34, %v3696_v11  ;;  %v7645_v34 = vld [vmem:[#allocation2 + $0x34] sm:$0xf] }
 0x123   :  { %v437_v5 = vor.u32 %v435_v61, %v434_v6  ;;  %v438_v41 = vrot.slane %v434_v6, 4  ;;  %v7628_v6 = vld [vmem:[#allocation2 + $0x98] ss:$0 sps:$4 sm:$0x11]   ;;  %v4950_v54 = vrot.slane %v7559_v50, 1  ;;  %v7643_v8 = vcombine.low %v3397_v59, %v7622_v63 }
 0x124   :  { %v7613_v46 = vpop.permute.xlu1 %1736  ;;  %v7615_v13 = vpop.permute.xlu0 %1826  ;;  %v2687_v11 = vsel %vm1657_vm9, %v2685_v21, %v2686_v37  ;;  %v4203_v15 = vrot.slane %v4201_v47, 1  ;;  %v5671_v50 = vcombine.low %v1196_v48, %v7645_v34  ;;  %v3928_v37 = vrot.slane %v5771_v45, 1  ;;  %v7667_v48 = vld [vmem:[#allocation2 + $0x94] sm:$0xf] }
 0x125   :  { %9511 = vst [vmem:[#allocation49_spill] sm:$0xff] %v7613_v46  ;;  %9512 = vst [vmem:[#allocation50_spill] sm:$0xff] %v7615_v13  ;;  %v938_v17 = vsel %vm6589_vm7, %v437_v5, %v937_v26  ;;  %v446_v61 = vsel %vm6571_vm4, %v438_v41, %v445_v0  ;;  %v4206_v26 = vshll.u32 %v7628_v6, 16  ;;  %v4951_v21 = vsel %vm1657_vm9, %v4949_v33, %v4950_v54  ;;  %v7660_v41 = vld [vmem:[#allocation2 + $0x8c] ss:$0 sps:$4 sm:$0x11]  }
 0x126   :  { %2604 = vrot.lane.b32.xlu1 %v2433_v22, %s6319_s6  ;;  %3846 = vrot.lane.b32.xlu0 %v3685_v24, %s6313_s5  ;;  %939 = vst [vmem:[#allocation2 + $0xb4] sm:$0xf] %v938_v17  ;;  %940 = vst.msk [vmem:[#allocation2 + $0xb8] sm:$0xf] %vm16_vm0, %v446_v61  ;;  %v3929_v59 = vrot.slane %v7510_v57, 1  ;;  %v4204_v56 = vor.u32 %v4203_v15, %v4199_v9  ;;  %v4189_v3 = vshll.u32 %v7643_v8, 16 }
 0x127   :  { %v4208_v44 = vrot.slane %v4206_v26, 1  ;;  %v447_v17 = vrot.slane %v442_v36, 4  ;;  %v3462_v0 = vld [vmem:[#allocation2 + $0x90] sm:$0xf]  ;;  %v2437_v45 = vshll.u32 %v5671_v50, 16  ;;  %v4187_v36 = vshrl.u32 %v7643_v8, 16 }
 0x128   :  { %v7631_v22 = vpop.permute.xlu1 %1820  ;;  %v7633_v24 = vpop.permute.xlu0 %1830  ;;  %v7669_v61 = vld [vmem:[#allocation2 + $0x38] ss:$0 sps:$4 sm:$0x11]   ;;  %v3930_v57 = vsel %vm1657_vm9, %v3928_v37, %v3929_v59  ;;  %v4194_v9 = vshll.u32 %v7660_v41, 16  ;;  %v5835_v15 = vcombine.low %v3462_v0, %v7667_v48  ;;  %v2435_v37 = vshrl.u32 %v5671_v50, 16 }
 0x129   :  { %9513 = vst [vmem:[#allocation51_spill] sm:$0xff] %v7633_v24  ;;  %v4209_v54 = vsel %vm1384_vm6, %v4204_v56, %v4208_v44  ;;  %v2439_v59 = vrot.slane %v2437_v45, 1  ;;  %v2442_v46 = vshll.u32 %v7669_v61, 16  ;;  %v156_v56 = vld [vmem:[%s9425_s0 + $0x78] sm:$0xf] }
 0x12a   :  { %4868 = vrot.lane.b32.xlu1 %v4697_v10, %s6319_s6  ;;  %3848 = vrot.lane.b32.xlu0 %v3697_v30, %s6313_s5  ;;  %v941_v10 = vld [vmem:[#allocation2 + $0xbc] sm:$0x1]  ;;  %v3444_v44 = vld [vmem:[#allocation2 + $0x90] sm:$0xe] }
 0x12b   :  { %v942_v33 = vsel %vm6606_vm8, %v447_v17, %v941_v10  ;;  %v4196_v10 = vrot.slane %v4194_v9, 1  ;;  %v1198_v0 = vld [vmem:[#allocation2 + $0x3c] sm:$0xf]  ;;  %v2440_v62 = vor.u32 %v2439_v59, %v2435_v37  ;;  %v2444_v38 = vrot.slane %v2442_v46, 1  ;;  %v7711_v46 = vld [vmem:[#allocation2 + $0x94] sm:$0xf] }
 0x12c   :  { %v7651_v60 = vpop.permute.xlu1 %1824  ;;  %v7653_v5 = vpop.permute.xlu0 %1834  ;;  %943 = vst [vmem:[#allocation2 + $0xbc] sm:$0x1] %v942_v33  ;;  %v4701_v33 = vshll.u32 %v5835_v15, 16  ;;  %v452_v37 = vshll.u32 %v156_v56, 16 }
 0x12d   :  { %9514 = vst [vmem:[#allocation52_spill] sm:$0xff] %v7651_v60  ;;  %9515 = vst [vmem:[#allocation53_spill] sm:$0xff] %v7653_v5  ;;  %v449_v5 = vshrl.u32 %v156_v56, 16  ;;  %v3464_v56 = vld [vmem:[#allocation2 + $0x9c] sm:$0xf] }
 0x12e   :  { %2732 = vrot.lane.b32.xlu1 %v2687_v11, %s6320_s11  ;;  %3976 = vrot.lane.b32.xlu0 %v3933_v2, %s6314_s16  ;;  %v3443_v11 = vld [vmem:[#allocation2 + $0x84] sm:$0xe]  ;;  %v4191_v2 = vrot.slane %v4189_v3, 1  ;;  %v7692_v3 = vld [vmem:[#allocation2 + $0x98] ss:$0 sps:$4 sm:$0x11]  }
 0x12f   :  { %v451_v9 = vrot.slane %v449_v5, 7  ;;  %v4444_v5 = vrot.slane %v7628_v6, 1  ;;  %v6183_v24 = vld [vmem:[%s9426_s1 + $0x10] ss:$0 sps:$4 sm:$0x33]  }
 0x130   :  { %v7663_v30 = vpop.permute.xlu1 %1828  ;;  %v7665_v47 = vpop.permute.xlu0 %1838  ;;  %v4192_v17 = vor.u32 %v4191_v2, %v4187_v36  ;;  %v157_v36 = vld [vmem:[%s9425_s0 + $0x7c] sm:$0xf]  ;;  %v4706_v2 = vshll.u32 %v7692_v3, 16  ;;  %6011 = vmatprep.subr.msk.bf16.mxu0 %vm3086_vm10, %v6183_v24  ;;  %6012 = vmatprep.subr.msk.bf16.mxu1 %vm3086_vm10, %v6183_v24 }
 0x131   :  { %9516 = vst [vmem:[#allocation54_spill] sm:$0xff] %v7663_v30  ;;  %9517 = vst [vmem:[#allocation55_spill] sm:$0xff] %v7665_v47  ;;  %v1242_v47 = vld [vmem:[#allocation2 + $0x30] sm:$0xe]  ;;  %v454_v6 = vor.u32 %v452_v37, %v451_v9 }
 0x132   :  { %4996 = vrot.lane.b32.xlu1 %v4951_v21, %s6320_s11  ;;  %4088 = vrot.lane.b32.xlu0 %v7611_v23, %s6315_s25  ;;  %v5819_v23 = vcombine.low %v3443_v11, %v7622_v63  ;;  %v4441_v11 = vrot.slane %v7660_v41, 1  ;;  %v4699_v41 = vshrl.u32 %v5835_v15, 16 }
 0x134   :  { %v7681_v26 = vpop.permute.xlu1 %1832  ;;  %v7683_v21 = vpop.permute.xlu0 %1842 }
 0x135   :  { %9518 = vst [vmem:[#allocation56_spill] sm:$0xff] %v7681_v26  ;;  %9519 = vst [vmem:[#allocation57_spill] sm:$0xff] %v7683_v21  ;;  %v7699_v21 = vld [vmem:[#allocation2 + $0x40] sm:$0xf]  ;;  %v3336_v26 = vld [vmem:[#allocation2 + $0x90] sm:$0xf] }
 0x136   :  { %3974 = vrot.lane.b32.xlu1 %v3930_v57, %s6314_s16  ;;  %4360 = vrot.lane.b32.xlu0 %v4209_v54, %s6316_s30  ;;  %v4440_v57 = vrot.slane %v5819_v23, 1  ;;  %v5820_v54 = vcombine.low %v3444_v44, %v7598_v40  ;;  %v4197_v23 = vsel %vm1384_vm6, %v4192_v17, %v4196_v10  ;;  %v5703_v40 = vcombine.low %v1242_v47, %v7645_v34  ;;  %v3508_v10 = vld [vmem:[#allocation2 + $0x90] sm:$0xe]  ;;  %v944_v34 = vld [vmem:[#allocation2 + $0xc0] sm:$0xf] }
 0x137   :  { %v2445_v17 = vsel %vm1384_vm6, %v2440_v62, %v2444_v38  ;;  %v4708_v47 = vrot.slane %v4706_v2, 1  ;;  %v948_v62 = vld [vmem:[#allocation2 + $0xc8] sm:$0x1]  ;;  %v460_v2 = vshll.u32 %v157_v36, 16  ;;  %v945_v37 = vsel %vm6589_vm7, %v454_v6, %v944_v34 }
 0x138   :  { %v7694_v63 = vpop.permute.xlu1 %1836  ;;  %v7696_v45 = vpop.permute.xlu0 %1846  ;;  %v4443_v19 = vrot.slane %v5820_v54, 1  ;;  %v2688_v16 = vrot.slane %v5703_v40, 1  ;;  %946 = vst [vmem:[#allocation2 + $0xc0] sm:$0xf] %v945_v37 }
 0x139   :  { %9520 = vst [vmem:[#allocation58_spill] sm:$0xff] %v7694_v63  ;;  %9521 = vst [vmem:[#allocation59_spill] sm:$0xff] %v7696_v45  ;;  %v4703_v45 = vrot.slane %v4701_v33, 1  ;;  %v4442_v63 = vsel %vm1657_vm9, %v4440_v57, %v4441_v11  ;;  %v7725_v33 = vld [vmem:[#allocation2 + $0xa0] sm:$0xf] }
 0x13a   :  { %4086 = vrot.lane.b32.xlu1 %v7643_v8, %s6315_s25  ;;  %2334 = vrot.lane.b32.xlu0 %v5671_v50, %s6318_s26  ;;  %v7718_v8 = vcombine.low %v1198_v0, %v7699_v21  ;;  %v457_v50 = vshrl.u32 %v157_v36, 16  ;;  %v7727_v0 = vld [vmem:[#allocation2 + $0x44] ss:$0 sps:$4 sm:$0x11]   ;;  %v3338_v11 = vld [vmem:[#allocation2 + $0x9c] sm:$0xf] }
 0x13b   :  { %v7732_v57 = vld [vmem:[#allocation2 + $0xa0] sm:$0xf]  ;;  %v4704_v54 = vor.u32 %v4703_v45, %v4699_v41  ;;  %v4445_v45 = vsel %vm1657_vm9, %v4443_v19, %v4444_v5  ;;  %v5867_v41 = vcombine.low %v3508_v10, %v7667_v48  ;;  %v2689_v36 = vrot.slane %v7669_v61, 1 }
 0x13c   :  { %v7713_v59 = vpop.permute.xlu1 %1840  ;;  %v7715_v44 = vpop.permute.xlu0 %2090  ;;  %v459_v38 = vrot.slane %v457_v50, 7  ;;  %v2449_v53 = vshll.u32 %v7718_v8, 16  ;;  %v2447_v40 = vshrl.u32 %v7718_v8, 16  ;;  %v5836_v19 = vcombine.low %v3464_v56, %v7725_v33 }
 0x13d   :  { %9522 = vst [vmem:[#allocation60_spill] sm:$0xff] %v7713_v59  ;;  %v7730_v59 = vcombine.low %v3336_v26, %v7711_v46  ;;  %v4709_v6 = vsel %vm1384_vm6, %v4704_v54, %v4708_v47  ;;  %v7758_v48 = vcombine.low %v3338_v11, %v7732_v57  ;;  %v2454_v10 = vshll.u32 %v7727_v0, 16 }
 0x13e   :  { %4358 = vrot.lane.b32.xlu1 %v4197_v23, %s6316_s30  ;;  %4598 = vrot.lane.b32.xlu0 %v5835_v15, %s6318_s26  ;;  %v7734_v23 = vld [vmem:[#allocation2 + $0x98] ss:$0 sps:$4 sm:$0x11]   ;;  %v455_v15 = vrot.slane %v451_v9, 4  ;;  %v464_v50 = vrot.slane %v459_v38, 4  ;;  %v462_v9 = vor.u32 %v460_v2, %v459_v38  ;;  %v4953_v38 = vrot.slane %v7692_v3, 1 }
 0x13f   :  { %9523 = vst [vmem:[#allocation61_spill] sm:$0xff] %v7730_v59  ;;  %9525 = vst [vmem:[#allocation63_spill] sm:$0xff] %v7758_v48  ;;  %v4952_v47 = vrot.slane %v5867_v41, 1  ;;  %v3706_v56 = vshll.u32 %v7734_v23, 16 }
 0x140   :  { %v7739_v58 = vpop.permute.xlu1 %1844  ;;  %v7741_v26 = vpop.permute.xlu0 %2094  ;;  %v949_v34 = vsel %vm6606_vm8, %v464_v50, %v948_v62 }
 0x141   :  { %9524 = vst [vmem:[#allocation62_spill] sm:$0xff] %v7739_v58  ;;  %v3701_v58 = vshll.u32 %v7730_v59, 16  ;;  %950 = vst [vmem:[#allocation2 + $0xc8] sm:$0x1] %v949_v34 }
 0x142   :  { %4486 = vrot.lane.b32.xlu1 %v4442_v63, %s6317_s13  ;;  %2606 = vrot.lane.b32.xlu0 %v2445_v17, %s6319_s6  ;;  %v463_v63 = vsel %vm6571_vm4, %v455_v15, %v462_v9  ;;  %v2451_v17 = vrot.slane %v2449_v53, 1 }
 0x143   :  { %947 = vst.msk [vmem:[#allocation2 + $0xc4] sm:$0xf] %vm16_vm0, %v463_v63 }
 0x144   :  { %v7762_v5 = vpop.permute.xlu1 %1848  ;;  %v7764_v61 = vpop.permute.xlu0 %2098 }
 0x145   :  { %9526 = vst [vmem:[#allocation64_spill] sm:$0xff] %v7762_v5  ;;  %9527 = vst [vmem:[#allocation65_spill] sm:$0xff] %v7764_v61 }
 0x146   :  { %8 = vsyncpa [#allocation4], 0  ;;  %4488 = vrot.lane.b32.xlu1 %v4445_v45, %s6317_s13  ;;  %4870 = vrot.lane.b32.xlu0 %v4709_v6, %s6319_s6  ;;  %v7772_v11 = vld [vmem:[#allocation2 + $0xa4] ss:$0 sps:$4 sm:$0x11]   ;;  %v3699_v53 = vshrl.u32 %v7730_v59, 16  ;;  %v2690_v3 = vsel %vm1657_vm9, %v2688_v16, %v2689_v36  ;;  %v2452_v41 = vor.u32 %v2451_v17, %v2447_v40  ;;  %v4954_v16 = vsel %vm1657_vm9, %v4952_v47, %v4953_v38 }
 0x147   :  { %v3703_v62 = vrot.slane %v3701_v58, 1  ;;  %v3088_v54 = vsel %vm3086_vm10, %v6183_v24, 0  ;;  %v4713_v15 = vshll.u32 %v5836_v19, 16  ;;  %v7776_v2 = vld [vmem:[#allocation2 + $0xa4] ss:$0 sps:$4 sm:$0x11]  }
 0x148   :  { %v3713_v37 = vshll.u32 %v7758_v48, 16  ;;  %5940 = vmatpush3.bf16.msra.mxu0 %v3088_v54  ;;  %5978 = vmatpush3.bf16.msra.mxu1 %v3088_v54  ;;  %v7779_v50 = vpop.permute.xlu1 %2092  ;;  %v7781_v45 = vpop.permute.xlu0 %2102  ;;  %v2456_v9 = vrot.slane %v2454_v10, 1  ;;  %v3708_v34 = vrot.slane %v3706_v56, 1  ;;  %v1243_v6 = vld [vmem:[#allocation2 + $0x3c] sm:$0xe]  ;;  %v4711_v58 = vshrl.u32 %v5836_v19, 16 }
 0x149   :  { %9528 = vst [vmem:[#allocation66_spill] sm:$0xff] %v7781_v45  ;;  %v4718_v24 = vshll.u32 %v7772_v11, 16  ;;  %v3704_v36 = vor.u32 %v3703_v62, %v3699_v53  ;;  %v3381_v63 = vld [vmem:[#allocation2 + $0x9c] sm:$0xe]  ;;  %v4715_v54 = vrot.slane %v4713_v15, 1  ;;  %v3711_v5 = vshrl.u32 %v7758_v48, 16 }
 0x14a   :  { %2336 = vrot.lane.b32.xlu1 %v7718_v8, %s6318_s26  ;;  %2734 = vrot.lane.b32.xlu0 %v2690_v3, %s6320_s11  ;;  %v3715_v45 = vrot.slane %v3713_v37, 1  ;;  %v3718_v40 = vshll.u32 %v7776_v2, 16  ;;  %v3403_v8 = vld [vmem:[#allocation2 + $0xa8] sm:$0xf]  ;;  %v7794_v56 = vld [vmem:[#allocation2 + $0xac] sm:$0xf]  ;;  %v5704_v38 = vcombine.low %v1243_v6, %v7699_v21  ;;  %v2457_v47 = vsel %vm1384_vm6, %v2452_v41, %v2456_v9 }
 0x14b   :  { %v4720_v53 = vrot.slane %v4718_v24, 1  ;;  %v3709_v62 = vsel %vm1384_vm6, %v3704_v36, %v3708_v34  ;;  %v5774_v3 = vcombine.low %v3381_v63, %v7732_v57  ;;  %v3401_v15 = vld [vmem:[#allocation2 + $0x9c] sm:$0xf]  ;;  %v7802_v37 = vld [vmem:[#allocation2 + $0xa0] sm:$0xf]  ;;  %v7805_v21 = vcombine.low %v3403_v8, %v7794_v56 }
 0x14c   :  { %v7790_v17 = vpop.permute.xlu1 %2096  ;;  %v7792_v10 = vpop.permute.xlu0 %2106  ;;  %v3716_v30 = vor.u32 %v3715_v45, %v3711_v5  ;;  %v3720_v55 = vrot.slane %v3718_v40, 1  ;;  %v3509_v48 = vld [vmem:[#allocation2 + $0x9c] sm:$0xe]  ;;  %v3380_v28 = vld [vmem:[#allocation2 + $0x90] sm:$0xe]  ;;  %v2691_v9 = vrot.slane %v5704_v38, 1  ;;  %v7813_v57 = vcombine.low %v3401_v15, %v7802_v37 }
 0x14d   :  { %9529 = vst [vmem:[#allocation67_spill] sm:$0xff] %v7790_v17  ;;  %9530 = vst [vmem:[#allocation68_spill] sm:$0xff] %v7792_v10  ;;  %v4716_v10 = vor.u32 %v4715_v54, %v4711_v58  ;;  %v2692_v34 = vrot.slane %v7727_v0, 1  ;;  %v5868_v5 = vcombine.low %v3509_v48, %v7725_v33  ;;  %v3937_v45 = vrot.slane %v5774_v3, 1  ;;  %v1200_v33 = vld [vmem:[#allocation2 + $0x48] sm:$0xf] }
 0x14e   :  { %4600 = vrot.lane.b32.xlu1 %v5836_v19, %s6318_s26  ;;  %4998 = vrot.lane.b32.xlu0 %v4954_v16, %s6320_s11  ;;  %v3938_v6 = vrot.slane %v7776_v2, 1  ;;  %v5773_v16 = vcombine.low %v3380_v28, %v7711_v46  ;;  %v3721_v24 = vsel %vm1384_vm6, %v3716_v30, %v3720_v55  ;;  %v7822_v36 = vld [vmem:[#allocation2 + $0xb0] ss:$0 sps:$4 sm:$0x11]   ;;  %v4225_v0 = vshll.u32 %v7805_v21, 16 }
 0x14f   :  { %v4721_v58 = vsel %vm1384_vm6, %v4716_v10, %v4720_v53  ;;  %v3935_v40 = vrot.slane %v7734_v23, 1  ;;  %v174_v48 = vld [vmem:[%s9425_s0 + $0xc0] sm:$0xf]  ;;  %v2693_v28 = vsel %vm1657_vm9, %v2691_v9, %v2692_v34  ;;  %v7834_v46 = vld [vmem:[#allocation2 + $0xa4] ss:$0 sps:$4 sm:$0x11]  }
 0x150   :  { %v7807_v19 = vpop.permute.xlu1 %2100  ;;  %v7809_v41 = vpop.permute.xlu0 %2110  ;;  %v4213_v55 = vshll.u32 %v7813_v57, 16  ;;  %v175_v30 = vld [vmem:[%s9425_s0 + $0xc4] sm:$0xf]  ;;  %v4955_v23 = vrot.slane %v5868_v5, 1  ;;  %v4956_v2 = vrot.slane %v7772_v11, 1  ;;  %v3939_v10 = vsel %vm1657_vm9, %v3937_v45, %v3938_v6 }
 0x151   :  { %9531 = vst [vmem:[#allocation69_spill] sm:$0xff] %v7807_v19  ;;  %9532 = vst [vmem:[#allocation70_spill] sm:$0xff] %v7809_v41  ;;  %v3934_v8 = vrot.slane %v5773_v16, 1  ;;  %v7844_v38 = vld [vmem:[#allocation2 + $0x4c] sm:$0xf]  ;;  %v4227_v53 = vrot.slane %v4225_v0, 1 }
 0x152   :  { %2608 = vrot.lane.b32.xlu1 %v2457_v47, %s6319_s6  ;;  %3850 = vrot.lane.b32.xlu0 %v3709_v62, %s6313_s5  ;;  %v4223_v47 = vshrl.u32 %v7805_v21, 16  ;;  %v4230_v62 = vshll.u32 %v7822_v36, 16  ;;  %v602_v3 = vshrl.u32 %v174_v48, 16  ;;  %v605_v34 = vshll.u32 %v174_v48, 16  ;;  %v176_v11 = vld [vmem:[%s9425_s0 + $0xc8] sm:$0xf] }
 0x153   :  { %v613_v5 = vshll.u32 %v175_v30, 16  ;;  %v4211_v45 = vshrl.u32 %v7813_v57, 16  ;;  %v4215_v6 = vrot.slane %v4213_v55, 1  ;;  %v4218_v16 = vshll.u32 %v7834_v46, 16  ;;  %v7860_v0 = vld [vmem:[#allocation2 + $0x9c] sm:$0xe] }
 0x154   :  { %v7825_v63 = vpop.permute.xlu1 %2104  ;;  %v7827_v54 = vpop.permute.xlu0 %2114  ;;  %v3936_v48 = vsel %vm1657_vm9, %v3934_v8, %v3935_v40  ;;  %v4957_v55 = vsel %vm1657_vm9, %v4955_v23, %v4956_v2  ;;  %v7868_v19 = vld [vmem:[#allocation2 + $0x50] ss:$0 sps:$4 sm:$0x11]   ;;  %v1011_v61 = vld [vmem:[#allocation2 + $0x14c] sm:$0x1]  ;;  %v619_v59 = vshrl.u32 %v176_v11, 16  ;;  %v5821_v2 = vcombine.low %v7860_v0, %v7802_v37 }
 0x155   :  { %9533 = vst [vmem:[#allocation71_spill] sm:$0xff] %v7825_v63  ;;  %9534 = vst [vmem:[#allocation72_spill] sm:$0xff] %v7827_v54  ;;  %v604_v54 = vrot.slane %v602_v3, 7  ;;  %v4232_v63 = vrot.slane %v4230_v62, 1  ;;  %v177_v3 = vld [vmem:[%s9425_s0 + $0xcc] sm:$0xf] }
 0x156   :  { %4872 = vrot.lane.b32.xlu1 %v4721_v58, %s6319_s6  ;;  %3852 = vrot.lane.b32.xlu0 %v3721_v24, %s6313_s5  ;;  %v610_v58 = vshrl.u32 %v175_v30, 16  ;;  %v7858_v24 = vcombine.low %v1200_v33, %v7844_v38  ;;  %v3466_v30 = vld [vmem:[#allocation2 + $0xa8] sm:$0xf]  ;;  %v1007_v33 = vld [vmem:[#allocation2 + $0x144] sm:$0xf]  ;;  %v4220_v23 = vrot.slane %v4218_v16, 1 }
 0x157   :  { %v608_v40 = vrot.slane %v604_v54, 4  ;;  %v178_v62 = vld [vmem:[%s9425_s0 + $0xd0] sm:$0xf]  ;;  %v627_v16 = vshrl.u32 %v177_v3, 16  ;;  %v630_v0 = vshll.u32 %v177_v3, 16  ;;  %v4447_v17 = vrot.slane %v7834_v46, 1 }
 0x158   :  { %v7848_v15 = vpop.permute.xlu1 %2108  ;;  %v7850_v9 = vpop.permute.xlu0 %2118  ;;  %v612_v41 = vrot.slane %v610_v58, 7  ;;  %v7921_v60 = vld [vmem:[#allocation2 + $0x58] sm:$0xf]  ;;  %v3340_v46 = vld [vmem:[#allocation2 + $0xa8] sm:$0xf]  ;;  %vm2762_vm11 = vcmask 31744  }
 0x159   :  { %9535 = vst [vmem:[#allocation73_spill] sm:$0xff] %v7848_v15  ;;  %9536 = vst [vmem:[#allocation74_spill] sm:$0xff] %v7850_v9  ;;  %v7865_v9 = vld [vmem:[#allocation2 + $0xac] sm:$0xf]  ;;  %v4228_v15 = vor.u32 %v4227_v53, %v4223_v47  ;;  %v2461_v53 = vshll.u32 %v7858_v24, 16  ;;  %vm2795_vm12 = vcmask 64512  }
 0x15a   :  { %2736 = vrot.lane.b32.xlu1 %v2693_v28, %s6320_s11  ;;  %3980 = vrot.lane.b32.xlu0 %v3939_v10, %s6314_s16  ;;  %v607_v10 = vor.u32 %v605_v34, %v604_v54  ;;  %v615_v8 = vor.u32 %v613_v5, %v612_v41  ;;  %v617_v49 = vrot.slane %v612_v41, 4  ;;  %v7880_v47 = vcombine.low %v3466_v30, %v7865_v9 }
 0x15b   :  { %v621_v34 = vrot.slane %v619_v59, 7  ;;  %v4233_v58 = vsel %vm1384_vm6, %v4228_v15, %v4232_v63  ;;  %v622_v5 = vshll.u32 %v176_v11, 16  ;;  %v1014_v59 = vld [vmem:[#allocation2 + $0x150] sm:$0xf]  ;;  %v639_v63 = vshll.u32 %v178_v62, 16 }
 0x15c   :  { %v7870_v13 = vpop.permute.xlu1 %2112  ;;  %v7872_v28 = vpop.permute.xlu0 %2218  ;;  %v616_v41 = vsel %vm6571_vm4, %v608_v40, %v615_v8  ;;  %v1008_v37 = vsel %vm6589_vm7, %v607_v10, %v1007_v33  ;;  %v1012_v54 = vsel %vm6606_vm8, %v617_v49, %v1011_v61  ;;  %v4216_v33 = vor.u32 %v4215_v6, %v4211_v45  ;;  %v7906_v10 = vld [vmem:[#allocation2 + $0xb0] ss:$0 sps:$4 sm:$0x11]  }
 0x15d   :  { %9537 = vst [vmem:[#allocation75_spill] sm:$0xff] %v7870_v13  ;;  %1009 = vst [vmem:[#allocation2 + $0x144] sm:$0xf] %v1008_v37  ;;  %v2459_v49 = vshrl.u32 %v7858_v24, 16  ;;  %v636_v61 = vshrl.u32 %v178_v62, 16  ;;  %v2466_v15 = vshll.u32 %v7868_v19, 16  ;;  %v624_v11 = vor.u32 %v622_v5, %v621_v34 }
 0x15e   :  { %5000 = vrot.lane.b32.xlu1 %v4957_v55, %s6320_s11  ;;  %4092 = vrot.lane.b32.xlu0 %v7805_v21, %s6315_s25  ;;  %1010 = vst.msk [vmem:[#allocation2 + $0x148] sm:$0xf] %vm16_vm0, %v616_v41  ;;  %1013 = vst [vmem:[#allocation2 + $0x14c] sm:$0x1] %v1012_v54  ;;  %v179_v21 = vld [vmem:[%s9425_s0 + $0xd4] sm:$0xf] }
 0x15f   :  { %v625_v40 = vrot.slane %v621_v34, 4  ;;  %v629_v8 = vrot.slane %v627_v16, 7  ;;  %v2463_v3 = vrot.slane %v2461_v53, 1  ;;  %v1018_v41 = vld [vmem:[#allocation2 + $0x158] sm:$0x1]  ;;  %v638_v37 = vrot.slane %v636_v61, 7 }
 0x160   :  { %v7900_v30 = vpop.permute.xlu1 %2116  ;;  %v7902_v55 = vpop.permute.xlu0 %2222  ;;  %v644_v45 = vshrl.u32 %v179_v21, 16  ;;  %v647_v6 = vshll.u32 %v179_v21, 16  ;;  %v3446_v54 = vld [vmem:[#allocation2 + $0xa8] sm:$0xe]  ;;  %v1015_v13 = vsel %vm6589_vm7, %v624_v11, %v1014_v59  ;;  %v1021_v5 = vld [vmem:[#allocation2 + $0x15c] sm:$0xf]  ;;  %v4221_v21 = vsel %vm1384_vm6, %v4216_v33, %v4220_v23 }
 0x161   :  { %9538 = vst [vmem:[#allocation76_spill] sm:$0xff] %v7900_v30  ;;  %v4725_v30 = vshll.u32 %v7880_v47, 16  ;;  %v632_v62 = vor.u32 %v630_v0, %v629_v8  ;;  %v634_v7 = vrot.slane %v629_v8, 4  ;;  %1016 = vst [vmem:[#allocation2 + $0x150] sm:$0xf] %v1015_v13  ;;  %v641_v53 = vor.u32 %v639_v63, %v638_v37 }
 0x162   :  { %3978 = vrot.lane.b32.xlu1 %v3936_v48, %s6314_s16  ;;  %4364 = vrot.lane.b32.xlu0 %v4233_v58, %s6316_s30  ;;  %v4446_v48 = vrot.slane %v5821_v2, 1  ;;  %v642_v58 = vrot.slane %v638_v37, 4  ;;  %v7917_v61 = vrot.slane %v644_v45, 7  ;;  %v1202_v0 = vld [vmem:[#allocation2 + $0x54] sm:$0xf]  ;;  %v5822_v13 = vcombine.low %v3446_v54, %v7794_v56 }
 0x163   :  { %v633_v59 = vsel %vm6571_vm4, %v625_v40, %v632_v62  ;;  %v1019_v11 = vsel %vm6606_vm8, %v634_v7, %v1018_v41  ;;  %v4730_v23 = vshll.u32 %v7906_v10, 16  ;;  %v1022_v33 = vsel %vm6589_vm7, %v641_v53, %v1021_v5  ;;  %v7938_v8 = vld [vmem:[#allocation2 + $0xac] sm:$0xf]  ;;  %v1244_v37 = vld [vmem:[#allocation2 + $0x48] sm:$0xe] }
 0x164   :  { %v7913_v34 = vpop.permute.xlu1 %2120  ;;  %v7915_v16 = vpop.permute.xlu0 %2226  ;;  %1017 = vst.msk [vmem:[#allocation2 + $0x154] sm:$0xf] %vm16_vm0, %v633_v59  ;;  %1020 = vst [vmem:[#allocation2 + $0x158] sm:$0x1] %v1019_v11  ;;  %v649_v2 = vor.u32 %v647_v6, %v7917_v61  ;;  %v2464_v7 = vor.u32 %v2463_v3, %v2459_v49  ;;  %v2468_v63 = vrot.slane %v2466_v15, 1  ;;  %v4727_v40 = vrot.slane %v4725_v30, 1 }
 0x165   :  { %9539 = vst [vmem:[#allocation77_spill] sm:$0xff] %v7913_v34  ;;  %9540 = vst [vmem:[#allocation78_spill] sm:$0xff] %v7915_v16  ;;  %v5674_v41 = vcombine.low %v1202_v0, %v7921_v60  ;;  %v3510_v6 = vld [vmem:[#allocation2 + $0xa8] sm:$0xe]  ;;  %v4449_v30 = vrot.slane %v5822_v13, 1  ;;  %v4450_v49 = vrot.slane %v7822_v36, 1  ;;  %v7953_v54 = vcombine.low %v3340_v46, %v7938_v8 }
 0x166   :  { %4090 = vrot.lane.b32.xlu1 %v7813_v57, %s6315_s25  ;;  %2338 = vrot.lane.b32.xlu0 %v7858_v24, %s6318_s26  ;;  %v4723_v57 = vshrl.u32 %v7880_v47, 16  ;;  %1023 = vst [vmem:[#allocation2 + $0x15c] sm:$0xf] %v1022_v33  ;;  %v650_v45 = vsel %vm6571_vm4, %v642_v58, %v649_v2  ;;  %v4732_v15 = vrot.slane %v4730_v23, 1  ;;  %v3468_v3 = vld [vmem:[#allocation2 + $0xb4] sm:$0xf]  ;;  %v4448_v62 = vsel %vm1657_vm9, %v4446_v48, %v4447_v17 }
 0x167   :  { %1024 = vst.msk [vmem:[#allocation2 + $0x160] sm:$0xf] %vm16_vm0, %v650_v45  ;;  %9542 = vst [vmem:[#allocation80_spill] sm:$0xff] %v7953_v54  ;;  %v2469_v5 = vsel %vm1384_vm6, %v2464_v7, %v2468_v63  ;;  %v7957_v58 = vld [vmem:[#allocation2 + $0xb8] sm:$0xf]  ;;  %v2473_v13 = vshll.u32 %v5674_v41, 16  ;;  %v5869_v23 = vcombine.low %v3510_v6, %v7865_v9  ;;  %v4451_v2 = vsel %vm1657_vm9, %v4449_v30, %v4450_v49 }
 0x168   :  { %v7940_v56 = vpop.permute.xlu1 %2220  ;;  %v7942_v24 = vpop.permute.xlu0 %2230  ;;  %v4728_v53 = vor.u32 %v4727_v40, %v4723_v57  ;;  %v3342_v0 = vld [vmem:[#allocation2 + $0xb4] sm:$0xf]  ;;  %v7960_v59 = vld [vmem:[#allocation2 + $0xb8] sm:$0xf]  ;;  %v3725_v48 = vshll.u32 %v7953_v54, 16  ;;  %v2695_v9 = vrot.slane %v7868_v19, 1 }
 0x169   :  { %9541 = vst [vmem:[#allocation79_spill] sm:$0xff] %v7942_v24  ;;  %v7966_v11 = vld [vmem:[#allocation2 + $0x5c] ss:$0 sps:$4 sm:$0x11]   ;;  %v7976_v46 = vcombine.low %v3342_v0, %v7960_v59  ;;  %v2471_v40 = vshrl.u32 %v5674_v41, 16  ;;  %v4958_v6 = vrot.slane %v5869_v23, 1 }
 0x16a   :  { %4362 = vrot.lane.b32.xlu1 %v4221_v21, %s6316_s30  ;;  %4602 = vrot.lane.b32.xlu0 %v7880_v47, %s6318_s26  ;;  %v5705_v21 = vcombine.low %v1244_v37, %v7844_v38  ;;  %v7969_v17 = vld [vmem:[#allocation2 + $0xb0] ss:$0 sps:$4 sm:$0x11]   ;;  %v5838_v38 = vcombine.low %v3468_v3, %v7957_v58  ;;  %v4733_v33 = vsel %vm1384_vm6, %v4728_v53, %v4732_v15  ;;  %v2475_v37 = vrot.slane %v2473_v13, 1  ;;  %v1245_v34 = vld [vmem:[#allocation2 + $0x54] sm:$0xe] }
 0x16b   :  { %9545 = vst [vmem:[#allocation83_spill] sm:$0xff] %v7976_v46  ;;  %v2478_v45 = vshll.u32 %v7966_v11, 16  ;;  %v4959_v3 = vrot.slane %v7906_v10, 1  ;;  %v3723_v19 = vshrl.u32 %v7953_v54, 16  ;;  %v3727_v49 = vrot.slane %v3725_v48, 1 }
 0x16c   :  { %v7962_v47 = vpop.permute.xlu1 %2224  ;;  %v7964_v36 = vpop.permute.xlu0 %2234  ;;  %v2694_v7 = vrot.slane %v5705_v21, 1  ;;  %v4737_v30 = vshll.u32 %v5838_v38, 16  ;;  %v3737_v15 = vshll.u32 %v7976_v46, 16  ;;  %v7993_v53 = vld [vmem:[#allocation2 + $0xbc] ss:$0 sps:$4 sm:$0x11]   ;;  %v2476_v13 = vor.u32 %v2475_v37, %v2471_v40 }
 0x16d   :  { %9543 = vst [vmem:[#allocation81_spill] sm:$0xff] %v7962_v47  ;;  %9544 = vst [vmem:[#allocation82_spill] sm:$0xff] %v7964_v36  ;;  %v7995_v21 = vld [vmem:[#allocation2 + $0xbc] ss:$0 sps:$4 sm:$0x11]   ;;  %v2480_v23 = vrot.slane %v2478_v45, 1 }
 0x16e   :  { %4490 = vrot.lane.b32.xlu1 %v4448_v62, %s6317_s13  ;;  %2610 = vrot.lane.b32.xlu0 %v2469_v5, %s6319_s6  ;;  %v3730_v62 = vshll.u32 %v7969_v17, 16  ;;  %v2696_v5 = vsel %vm1657_vm9, %v2694_v7, %v2695_v9  ;;  %v4735_v48 = vshrl.u32 %v5838_v38, 16  ;;  %v4739_v7 = vrot.slane %v4737_v30, 1  ;;  %v1025_v24 = vld [vmem:[#allocation2 + $0x164] sm:$0x1] }
 0x16f   :  { %v3728_v9 = vor.u32 %v3727_v49, %v3723_v19  ;;  %v3735_v36 = vshrl.u32 %v7976_v46, 16  ;;  %v3739_v54 = vrot.slane %v3737_v15, 1  ;;  %v3742_v40 = vshll.u32 %v7995_v21, 16  ;;  %v3383_v37 = vld [vmem:[#allocation2 + $0xb4] sm:$0xe] }
 0x170   :  { %v7981_v63 = vpop.permute.xlu1 %2228  ;;  %v7983_v57 = vpop.permute.xlu0 %3844  ;;  %v651_v45 = vrot.slane %v7917_v61, 4  ;;  %v2481_v30 = vsel %vm1384_vm6, %v2476_v13, %v2480_v23  ;;  %v5706_v19 = vcombine.low %v1245_v34, %v7921_v60  ;;  %v3382_v49 = vld [vmem:[#allocation2 + $0xa8] sm:$0xe]  ;;  %v4740_v61 = vor.u32 %v4739_v7, %v4735_v48  ;;  %v3511_v46 = vld [vmem:[#allocation2 + $0xb4] sm:$0xe] }
 0x171   :  { %9546 = vst [vmem:[#allocation84_spill] sm:$0xff] %v7981_v63  ;;  %v5776_v63 = vcombine.low %v3383_v37, %v7960_v59  ;;  %v3405_v16 = vld [vmem:[#allocation2 + $0xb4] sm:$0xf]  ;;  %v8022_v47 = vld [vmem:[#allocation2 + $0xb8] sm:$0xf]  ;;  %v3740_v60 = vor.u32 %v3739_v54, %v3735_v36  ;;  %v3744_v34 = vrot.slane %v3742_v40, 1  ;;  %v5870_v59 = vcombine.low %v3511_v46, %v7957_v58 }
 0x172   :  { %4492 = vrot.lane.b32.xlu1 %v4451_v2, %s6317_s13  ;;  %4874 = vrot.lane.b32.xlu0 %v4733_v33, %s6319_s6  ;;  %v4960_v2 = vsel %vm1657_vm9, %v4958_v6, %v4959_v3  ;;  %v3732_v33 = vrot.slane %v3730_v62, 1  ;;  %v8012_v62 = vld [vmem:[#allocation2 + $0xc4] sm:$0xf]  ;;  %v1026_v15 = vsel %vm6606_vm8, %v651_v45, %v1025_v24  ;;  %vm2828_vm13 = vcmask 97280   ;;  %v1204_v54 = vld [vmem:[#allocation2 + $0x60] sm:$0xf] }
 0x173   :  { %1027 = vst [vmem:[#allocation2 + $0x164] sm:$0x1] %v1026_v15  ;;  %vm2861_vm14 = vcmask 130048   ;;  %v2697_v36 = vrot.slane %v5706_v19, 1  ;;  %v3943_v48 = vrot.slane %v5776_v63, 1  ;;  %v3944_v7 = vrot.slane %v7995_v21, 1 }
 0x174   :  { %v7997_v0 = vpop.permute.xlu1 %2232  ;;  %v7999_v10 = vpop.permute.xlu0 %3972  ;;  %v8044_v46 = vld [vmem:[#allocation2 + $0xc8] ss:$0 sps:$4 sm:$0x11]   ;;  %v9548_v40 = vld [vmem:[#allocation6_spill] sm:$0xff]  ;;  %v1206_v21 = vld [vmem:[#allocation2 + $0x6c] sm:$0xf] }
 0x175   :  { %9547 = vst [vmem:[#allocation85_spill] sm:$0xff] %v7997_v0  ;;  %v4742_v0 = vshll.u32 %v7993_v53, 16  ;;  %v2764_v37 = vsel %vm2762_vm11, %v9548_v40, %v7208_v52  ;;  %v3447_v63 = vld [vmem:[#allocation2 + $0xb4] sm:$0xe]  ;;  %vm2894_vm15 = vcmask 162816   ;;  %vm2927_vm1 = vcmask 195584  }
 0x176   :  { %2340 = vrot.lane.b32.xlu1 %v5674_v41, %s6318_s26  ;;  %2738 = vrot.lane.b32.xlu0 %v2696_v5, %s6320_s11  ;;  %v3407_v41 = vld [vmem:[#allocation2 + $0xc0] sm:$0xf]  ;;  %v3733_v5 = vsel %vm1384_vm6, %v3728_v9, %v3732_v33  ;;  %v8034_v33 = vcombine.low %v3405_v16, %v8022_v47  ;;  %v8040_v9 = vld [vmem:[#allocation2 + $0x64] sm:$0xf]  ;;  %vm2960_vm2 = vcmask 228352   ;;  %vm2993_vm3 = vcmask 261120  }
 0x177   :  { %v4744_v13 = vrot.slane %v4742_v0, 1  ;;  %v8025_v23 = vcombine.low %v3407_v41, %v8012_v62  ;;  %v2698_v0 = vrot.slane %v7966_v11, 1  ;;  %v8054_v41 = vld [vmem:[#allocation2 + $0x70] sm:$0xf]  ;;  %vm3053_vm5 = vcmask 293888  }
 0x178   :  { %v8008_v6 = vpop.permute.xlu1 %3842  ;;  %v8010_v3 = vpop.permute.xlu0 %4084  ;;  %v4237_v15 = vshll.u32 %v8034_v33, 16 }
 0x179   :  { %v4745_v58 = vsel %vm1384_vm6, %v4740_v61, %v4744_v13  ;;  %v4249_v16 = vshll.u32 %v8025_v23, 16  ;;  %v2797_v61 = vsel %vm2795_vm12, %v2764_v37, %v7405_v29  ;;  %v2699_v52 = vsel %vm1657_vm9, %v2697_v36, %v2698_v0  ;;  %v8064_v13 = vld [vmem:[#allocation2 + $0xbc] ss:$0 sps:$4 sm:$0x11]  }
 0x17a   :  { %4604 = vrot.lane.b32.xlu1 %v5838_v38, %s6318_s26  ;;  %5002 = vrot.lane.b32.xlu0 %v4960_v2, %s6320_s11  ;;  %v5775_v2 = vcombine.low %v3382_v49, %v7938_v8  ;;  %v3745_v8 = vsel %vm1384_vm6, %v3740_v60, %v3744_v34  ;;  %v3941_v49 = vrot.slane %v7969_v17, 1  ;;  %v8067_v60 = vcombine.low %v1204_v54, %v8040_v9  ;;  %v180_v54 = vld [vmem:[%s9425_s0 + $0xd8] sm:$0xf] }
 0x17b   :  { %v3945_v17 = vsel %vm1657_vm9, %v3943_v48, %v3944_v7  ;;  %v4247_v34 = vshrl.u32 %v8025_v23, 16  ;;  %v4254_v29 = vshll.u32 %v8044_v46, 16  ;;  %v4235_v7 = vshrl.u32 %v8034_v33, 16 }
 0x17c   :  { %v8027_v24 = vpop.permute.xlu1 %3970  ;;  %v8029_v38 = vpop.permute.xlu0 %4356  ;;  %v3940_v19 = vrot.slane %v5775_v2, 1  ;;  %v2830_v2 = vsel %vm2828_vm13, %v2797_v61, %v7576_v27  ;;  %v5823_v27 = vcombine.low %v3447_v63, %v8022_v47  ;;  %v4242_v37 = vshll.u32 %v8064_v13, 16 }
 0x17d   :  { %v4256_v63 = vrot.slane %v4254_v29, 1  ;;  %v653_v61 = vshrl.u32 %v180_v54, 16 }
 0x17e   :  { %2612 = vrot.lane.b32.xlu1 %v2481_v30, %s6319_s6  ;;  %3854 = vrot.lane.b32.xlu0 %v3733_v5, %s6313_s5  ;;  %v4961_v30 = vrot.slane %v5870_v59, 1  ;;  %v4962_v5 = vrot.slane %v7993_v53, 1  ;;  %v4251_v59 = vrot.slane %v4249_v16, 1  ;;  %v8077_v53 = vcombine.low %v1206_v21, %v8054_v41  ;;  %v3470_v21 = vld [vmem:[#allocation2 + $0xc0] sm:$0xf] }
 0x17f   :  { %v3942_v48 = vsel %vm1657_vm9, %v3940_v19, %v3941_v49  ;;  %v2863_v16 = vsel %vm2861_vm14, %v2830_v2, %v7715_v44  ;;  %v8094_v19 = vld [vmem:[#allocation2 + $0xc4] sm:$0xf]  ;;  %v8096_v49 = vld [vmem:[#allocation2 + $0x68] ss:$0 sps:$4 sm:$0x11]   ;;  %v8099_v18 = vrot.slane %v5823_v27, 1 }
 0x180   :  { %v8050_v45 = vpop.permute.xlu1 %4082  ;;  %v8052_v11 = vpop.permute.xlu0 %2330  ;;  %v4963_v40 = vsel %vm1657_vm9, %v4961_v30, %v4962_v5  ;;  %v4252_v47 = vor.u32 %v4251_v59, %v4247_v34  ;;  %v8103_v4 = vcombine.low %v3470_v21, %v8094_v19  ;;  %v4244_v34 = vrot.slane %v4242_v37, 1  ;;  %v1028_v21 = vld [vmem:[#allocation2 + $0x168] sm:$0xf] }
 0x181   :  { %v2483_v59 = vshrl.u32 %v8067_v60, 16  ;;  %v655_v29 = vrot.slane %v653_v61, 7 }
 0x182   :  { %4876 = vrot.lane.b32.xlu1 %v4745_v58, %s6319_s6  ;;  %3856 = vrot.lane.b32.xlu0 %v3745_v8, %s6313_s5  ;;  %v4239_v58 = vrot.slane %v4237_v15, 1  ;;  %v181_v8 = vld [vmem:[%s9425_s0 + $0xdc] sm:$0xf]  ;;  %v2485_v15 = vshll.u32 %v8067_v60, 16 }
 0x183   :  { %v661_v30 = vshrl.u32 %v181_v8, 16  ;;  %v664_v5 = vshll.u32 %v181_v8, 16  ;;  %v2490_v8 = vshll.u32 %v8096_v49, 16  ;;  %v659_v14 = vrot.slane %v655_v29, 4 }
 0x184   :  { %v4355_v36 = vpop.permute.xlu1 %4354  ;;  %v8074_v0 = vpop.permute.xlu0 %4594  ;;  %v2487_v27 = vrot.slane %v2485_v15, 1 }
 0x186   :  { %2740 = vrot.lane.b32.xlu1 %v2699_v52, %s6320_s11  ;;  %3984 = vrot.lane.b32.xlu0 %v3945_v17, %s6314_s16  ;;  %v656_v52 = vshll.u32 %v180_v54, 16  ;;  %v4240_v17 = vor.u32 %v4239_v58, %v4235_v7  ;;  %v663_v54 = vrot.slane %v661_v30, 7  ;;  %v5027_v7 = vsel %vm2762_vm11, %v7350_v43, %v8008_v6  ;;  %v1032_v43 = vld [vmem:[#allocation2 + $0x170] sm:$0x1] }
 0x187   :  { %v4257_v58 = vsel %vm1384_vm6, %v4252_v47, %v4256_v63  ;;  %v2896_v6 = vsel %vm2894_vm15, %v2863_v16, %v7872_v28  ;;  %v4749_v63 = vshll.u32 %v8103_v4, 16 }
 0x188   :  { %v4483_v44 = vpop.permute.xlu1 %4482  ;;  %v2603_v2 = vpop.permute.xlu0 %2602  ;;  %v658_v30 = vor.u32 %v656_v52, %v655_v29  ;;  %v666_v51 = vor.u32 %v664_v5, %v663_v54  ;;  %v668_v15 = vrot.slane %v663_v54, 4  ;;  %v2929_v16 = vsel %vm2927_vm1, %v2896_v6, %v8052_v11  ;;  %v3448_v29 = vld [vmem:[#allocation2 + $0xc0] sm:$0xe]  ;;  %v8139_v54 = vld [vmem:[#allocation2 + $0xc8] ss:$0 sps:$4 sm:$0x11]  }
 0x189   :  { %v2488_v6 = vor.u32 %v2487_v27, %v2483_v59  ;;  %v4751_v59 = vrot.slane %v4749_v63, 1  ;;  %v1039_v27 = vld [vmem:[#allocation2 + $0x17c] sm:$0x1] }
 0x18a   :  { %5004 = vrot.lane.b32.xlu1 %v4963_v40, %s6320_s11  ;;  %4096 = vrot.lane.b32.xlu0 %v8025_v23, %s6315_s25  ;;  %v182_v40 = vld [vmem:[%s9425_s0 + $0xe0] sm:$0xf]  ;;  %v5059_v23 = vsel %vm2795_vm12, %v5027_v7, %v8027_v24  ;;  %v183_v24 = vld [vmem:[%s9425_s0 + $0xe4] sm:$0xf]  ;;  %v667_v52 = vsel %vm6571_vm4, %v659_v14, %v666_v51  ;;  %v1029_v28 = vsel %vm6589_vm7, %v658_v30, %v1028_v21 }
 0x18b   :  { %v5091_v47 = vsel %vm2828_vm13, %v5059_v23, %v8050_v45  ;;  %v670_v45 = vshrl.u32 %v182_v40, 16  ;;  %1030 = vst [vmem:[#allocation2 + $0x168] sm:$0xf] %v1029_v28  ;;  %1031 = vst.msk [vmem:[#allocation2 + $0x16c] sm:$0xf] %vm16_vm0, %v667_v52  ;;  %v2962_v14 = vsel %vm2960_vm2, %v2929_v16, %v2603_v2  ;;  %v678_v11 = vshrl.u32 %v183_v24, 16 }
 0x18c   :  { %v8119_v37 = vpop.permute.xlu1 %4484  ;;  %v4867_v61 = vpop.permute.xlu0 %4866  ;;  %v5123_v7 = vsel %vm2861_vm14, %v5091_v47, %v4355_v36  ;;  %v1033_v36 = vsel %vm6606_vm8, %v668_v15, %v1032_v43  ;;  %v681_v23 = vshll.u32 %v183_v24, 16  ;;  %v2492_v47 = vrot.slane %v2490_v8, 1  ;;  %v8154_v43 = vld [vmem:[#allocation2 + $0x13c] sm:$0xf] }
 0x18d   :  { %v5155_v5 = vsel %vm2894_vm15, %v5123_v7, %v4483_v44  ;;  %1034 = vst [vmem:[#allocation2 + $0x170] sm:$0x1] %v1033_v36  ;;  %v672_v21 = vrot.slane %v670_v45, 7  ;;  %v4245_v44 = vsel %vm1384_vm6, %v4240_v17, %v4244_v34  ;;  %v1035_v7 = vld [vmem:[#allocation2 + $0x174] sm:$0xf]  ;;  %v5824_v2 = vcombine.low %v3448_v29, %v8012_v62 }
 0x18e   :  { %3982 = vrot.lane.b32.xlu1 %v3942_v48, %s6314_s16  ;;  %4368 = vrot.lane.b32.xlu0 %v4257_v58, %s6316_s30  ;;  %v673_v48 = vshll.u32 %v182_v40, 16  ;;  %v3344_v40 = vld [vmem:[#allocation2 + $0x138] sm:$0xf]  ;;  %v680_v52 = vrot.slane %v678_v11, 7  ;;  %v5187_v17 = vsel %vm2927_vm1, %v5155_v5, %v8074_v0  ;;  %v4747_v34 = vshrl.u32 %v8103_v4, 16 }
 0x18f   :  { %v676_v24 = vrot.slane %v672_v21, 4  ;;  %v9549_v0 = vrot.slane %v8064_v13, 1  ;;  %v1246_v29 = vld [vmem:[#allocation2 + $0x60] sm:$0xe]  ;;  %v8172_v36 = vcombine.low %v3344_v40, %v8154_v43  ;;  %v4456_v11 = vrot.slane %v8044_v46, 1 }
 0x190   :  { %v8145_v51 = vpop.permute.xlu1 %2332  ;;  %v2731_v58 = vpop.permute.xlu0 %2730  ;;  %v675_v15 = vor.u32 %v673_v48, %v672_v21  ;;  %v683_v28 = vor.u32 %v681_v23, %v680_v52  ;;  %v685_v16 = vrot.slane %v680_v52, 4  ;;  %v3472_v48 = vld [vmem:[#allocation2 + $0xcc] sm:$0xf]  ;;  %v3512_v13 = vld [vmem:[#allocation2 + $0xc0] sm:$0xe]  ;;  %v4455_v21 = vrot.slane %v5824_v2, 1 }
 0x191   :  { %v2995_v30 = vsel %vm2993_vm3, %v2962_v14, %v2731_v58  ;;  %v4454_v5 = vsel %vm1657_vm9, %v8099_v18, %v9549_v0  ;;  %v8178_v14 = vld [vmem:[#allocation2 + $0xd0] sm:$0xf]  ;;  %v4752_v23 = vor.u32 %v4751_v59, %v4747_v34  ;;  %v5707_v2 = vcombine.low %v1246_v29, %v8040_v9  ;;  %v8196_v40 = vld [vmem:[#allocation2 + $0x74] ss:$0 sps:$4 sm:$0x11]  }
 0x192   :  { %4094 = vrot.lane.b32.xlu1 %v8034_v33, %s6315_s25  ;;  %2342 = vrot.lane.b32.xlu0 %v8067_v60, %s6318_s26  ;;  %v4754_v33 = vshll.u32 %v8139_v54, 16  ;;  %v5219_v60 = vsel %vm2960_vm2, %v5187_v17, %v4867_v61  ;;  %v1036_v45 = vsel %vm6589_vm7, %v675_v15, %v1035_v7  ;;  %v2493_v61 = vsel %vm1384_vm6, %v2488_v6, %v2492_v47  ;;  %v8201_v52 = vld [vmem:[#allocation2 + $0x148] sm:$0xf]  ;;  %v8215_v34 = vld [vmem:[#allocation2 + $0x140] ss:$0 sps:$4 sm:$0x11]  }
 0x193   :  { %5941 = vmatprep.mubr.msk.bf16.mxu0 %vm3053_vm5, %v2995_v30  ;;  %1037 = vst [vmem:[#allocation2 + $0x174] sm:$0xf] %v1036_v45  ;;  %v684_v18 = vsel %vm6571_vm4, %v676_v24, %v683_v28  ;;  %v1040_v58 = vsel %vm6606_vm8, %v685_v16, %v1039_v27  ;;  %v5029_v6 = vsel %vm2762_vm11, %v7319_v32, %v7983_v57  ;;  %v2497_v46 = vshll.u32 %v8077_v53, 16  ;;  %v3346_v24 = vld [vmem:[#allocation2 + $0x144] sm:$0xf] }
 0x194   :  { %v8162_v62 = vpop.permute.xlu1 %4596  ;;  %v4995_v8 = vpop.permute.xlu0 %4994  ;;  %1038 = vst.msk [vmem:[#allocation2 + $0x178] sm:$0xf] %vm16_vm0, %v684_v18  ;;  %1041 = vst [vmem:[#allocation2 + $0x17c] sm:$0x1] %v1040_v58  ;;  %v8208_v32 = vcombine.low %v3472_v48, %v8178_v14  ;;  %v5871_v57 = vcombine.low %v3512_v13, %v8094_v19  ;;  %v5061_v9 = vsel %vm2795_vm12, %v5029_v6, %v7999_v10  ;;  %v2700_v27 = vrot.slane %v5707_v2, 1 }
 0x195   :  { %v5251_v63 = vsel %vm2993_vm3, %v5219_v60, %v4995_v8  ;;  %v2701_v60 = vrot.slane %v8096_v49, 1  ;;  %v2495_v8 = vshrl.u32 %v8077_v53, 16  ;;  %v8223_v19 = vcombine.low %v3346_v24, %v8201_v52  ;;  %v8229_v0 = vld [vmem:[#allocation2 + $0xd4] ss:$0 sps:$4 sm:$0x11]  }
 0x196   :  { %4366 = vrot.lane.b32.xlu1 %v4245_v44, %s6316_s30  ;;  %4606 = vrot.lane.b32.xlu0 %v8103_v4, %s6318_s26  ;;  %v4756_v44 = vrot.slane %v4754_v33, 1  ;;  %v9550_v4 = vld [vmem:[#allocation9_spill] sm:$0xff]  ;;  %v2499_v28 = vrot.slane %v2497_v46, 1  ;;  %v2502_v45 = vshll.u32 %v8196_v40, 16  ;;  %v4965_v16 = vrot.slane %v8139_v54, 1 }
 0x197   :  { %5979 = vmatprep.mubr.msk.bf16.mxu1 %vm3053_vm5, %v5251_v63  ;;  %v2766_v30 = vsel %vm2762_vm11, %v9550_v4, %v7264_v39  ;;  %v5093_v49 = vsel %vm2828_vm13, %v5061_v9, %v8010_v3  ;;  %v4964_v63 = vrot.slane %v5871_v57, 1  ;;  %v3747_v54 = vshrl.u32 %v8172_v36, 16  ;;  %v8246_v58 = vld [vmem:[#allocation2 + $0x14c] ss:$0 sps:$4 sm:$0x11]  }
 0x198   :  { %v2605_v47 = vpop.permute.xlu1 %2604  ;;  %v8193_v7 = vpop.permute.xlu0 %3846  ;;  %v2799_v15 = vsel %vm2795_vm12, %v2766_v30, %v7457_v1  ;;  %v4457_v1 = vsel %vm1657_vm9, %v4455_v21, %v4456_v11  ;;  %v4757_v17 = vsel %vm1384_vm6, %v4752_v23, %v4756_v44  ;;  %v3754_v48 = vshll.u32 %v8215_v34, 16  ;;  %v1184_v11 = vld [vmem:[#allocation2 + $0xf0] sm:$0xe]  ;;  %v1247_v46 = vld [vmem:[#allocation2 + $0x6c] sm:$0xe] }
 0x199   :  { %v2832_v39 = vsel %vm2828_vm13, %v2799_v15, %v7631_v22  ;;  %v3749_v22 = vshll.u32 %v8172_v36, 16  ;;  %v2702_v3 = vsel %vm1657_vm9, %v2700_v27, %v2701_v60  ;;  %v3761_v21 = vshll.u32 %v8223_v19, 16  ;;  %v3411_v27 = vld [vmem:[#allocation2 + $0x150] sm:$0xf]  ;;  %v8268_v60 = vld [vmem:[#allocation2 + $0x154] sm:$0xf] }
 0x19a   :  { %4494 = vrot.lane.b32.xlu1 %v4454_v5, %s6317_s13  ;;  %2614 = vrot.lane.b32.xlu0 %v2493_v61, %s6319_s6  ;;  %v2865_v10 = vsel %vm2861_vm14, %v2832_v39, %v7779_v50  ;;  %v4761_v50 = vshll.u32 %v8208_v32, 16  ;;  %v2500_v44 = vor.u32 %v2499_v28, %v2495_v8  ;;  %v2504_v4 = vrot.slane %v2502_v45, 1  ;;  %v3385_v39 = vld [vmem:[#allocation2 + $0x144] sm:$0xe] }
 0x19b   :  { %v2898_v5 = vsel %vm2894_vm15, %v2865_v10, %v7940_v56  ;;  %v3751_v61 = vrot.slane %v3749_v22, 1  ;;  %v4966_v6 = vsel %vm1657_vm9, %v4964_v63, %v4965_v16  ;;  %v4766_v2 = vshll.u32 %v8229_v0, 16  ;;  %v6274_v10 = vld [vmem:[#allocation2 + $0xf4] sm:$0xf] }
 0x19c   :  { %v4869_v59 = vpop.permute.xlu1 %4868  ;;  %v8218_v33 = vpop.permute.xlu0 %3848  ;;  %v2931_v29 = vsel %vm2927_vm1, %v2898_v5, %v8145_v51  ;;  %v5125_v51 = vsel %vm2861_vm14, %v5093_v49, %v8029_v38  ;;  %v4763_v15 = vrot.slane %v4761_v50, 1  ;;  %v3756_v24 = vrot.slane %v3754_v48, 1 }
 0x19d   :  { %v2964_v56 = vsel %vm2960_vm2, %v2931_v29, %v2605_v47  ;;  %v5157_v30 = vsel %vm2894_vm15, %v5125_v51, %v8119_v37  ;;  %v4759_v47 = vshrl.u32 %v8208_v32, 16  ;;  %v3759_v37 = vshrl.u32 %v8223_v19, 16 }
 0x19e   :  { %4496 = vrot.lane.b32.xlu1 %v4457_v1, %s6317_s13  ;;  %4878 = vrot.lane.b32.xlu0 %v4757_v17, %s6319_s6  ;;  %v5189_v38 = vsel %vm2927_vm1, %v5157_v30, %v8162_v62  ;;  %v3752_v1 = vor.u32 %v3751_v61, %v3747_v54  ;;  %v3763_v17 = vrot.slane %v3761_v21, 1  ;;  %v3766_v22 = vshll.u32 %v8246_v58, 16  ;;  %v9551_v21 = vld [vmem:[#allocation8_spill] sm:$0xff] }
 0x19f   :  { %v5708_v8 = vcombine.low %v1247_v46, %v8054_v41  ;;  %v5662_v28 = vcombine.low %v1184_v11, %v6274_v10  ;;  %v5778_v45 = vcombine.low %v3385_v39, %v8201_v52  ;;  %v2505_v16 = vsel %vm1384_vm6, %v2500_v44, %v2504_v4  ;;  %v184_v52 = vld [vmem:[%s9425_s0 + $0xe8] sm:$0xf]  ;;  %v3409_v46 = vld [vmem:[#allocation2 + $0x144] sm:$0xf] }
 0x1a0   :  { %v2733_v13 = vpop.permute.xlu1 %2732  ;;  %v8243_v18 = vpop.permute.xlu0 %3976  ;;  %v4764_v5 = vor.u32 %v4763_v15, %v4759_v47  ;;  %v4768_v49 = vrot.slane %v4766_v2, 1  ;;  %v8279_v63 = vcombine.low %v3411_v27, %v8268_v60  ;;  %v3764_v29 = vor.u32 %v3763_v17, %v3759_v37  ;;  %v1046_v10 = vld [vmem:[#allocation2 + $0x188] sm:$0x1] }
 0x1a1   :  { %v2997_v23 = vsel %vm2993_vm3, %v2964_v56, %v2733_v13  ;;  %v3768_v54 = vrot.slane %v3766_v22, 1  ;;  %v2703_v61 = vrot.slane %v5708_v8, 1  ;;  %v2704_v48 = vrot.slane %v8196_v40, 1  ;;  %v185_v13 = vld [vmem:[%s9425_s0 + $0xec] sm:$0xf] }
 0x1a2   :  { %2344 = vrot.lane.b32.xlu1 %v8077_v53, %s6318_s26  ;;  %5942 = vmatmul.mubr.msk.bf16.vlgmr.msra.gmra.mrb[0].mxu0 %vm3053_vm5, %v2997_v23  ;;  %v5221_v53 = vsel %vm2960_vm2, %v5189_v38, %v4869_v59  ;;  %v3513_v59 = vld [vmem:[#allocation2 + $0xcc] sm:$0xe]  ;;  %v2768_v11 = vsel %vm2762_vm11, %v9551_v21, %v7262_v20  ;;  %v3949_v51 = vrot.slane %v5778_v45, 1  ;;  %v3384_v23 = vld [vmem:[#allocation2 + $0x138] sm:$0xe]  ;;  %v4769_v44 = vsel %vm1384_vm6, %v4764_v5, %v4768_v49 }
 0x1a3   :  { %2742 = vrot.lane.b32.xlu0 %v2702_v3, %s6320_s11  ;;  %v5872_v56 = vcombine.low %v3513_v59, %v8178_v14  ;;  %v8294_v3 = vrot.slane %v5662_v28, 1  ;;  %v3950_v14 = vrot.slane %v8246_v58, 1  ;;  %v8303_v40 = vld [vmem:[#allocation2 + $0x158] ss:$0 sps:$4 sm:$0x11]   ;;  %v4273_v4 = vshll.u32 %v8279_v63, 16 }
 0x1a4   :  { %v4997_v57 = vpop.permute.xlu1 %4996  ;;  %v8265_v9 = vpop.permute.xlu0 %4088  ;;  %v687_v30 = vshrl.u32 %v184_v52, 16  ;;  %v3769_v2 = vsel %vm1384_vm6, %v3764_v29, %v3768_v54  ;;  %v8313_v38 = vld [vmem:[#allocation2 + $0x148] sm:$0xf]  ;;  %v690_v15 = vshll.u32 %v184_v52, 16  ;;  %v2705_v58 = vsel %vm1657_vm9, %v2703_v61, %v2704_v48  ;;  %v1208_v59 = vld [vmem:[#allocation2 + $0xf0] sm:$0xf] }
 0x1a5   :  { %v5253_v62 = vsel %vm2993_vm3, %v5221_v53, %v4997_v57  ;;  %v4967_v37 = vrot.slane %v5872_v56, 1  ;;  %v4968_v39 = vrot.slane %v8229_v0, 1  ;;  %v5777_v53 = vcombine.low %v3384_v23, %v8154_v43  ;;  %v1042_v0 = vld [vmem:[#allocation2 + $0x180] sm:$0xf]  ;;  %v8336_v61 = vld [vmem:[#allocation2 + $0xf4] sm:$0xf] }
 0x1a6   :  { %4608 = vrot.lane.b32.xlu1 %v8208_v32, %s6318_s26  ;;  %5980 = vmatmul.mubr.msk.bf16.vlgmr.msra.gmra.mrb[0].mxu1 %vm3053_vm5, %v5253_v62  ;;  %v3757_v32 = vsel %vm1384_vm6, %v3752_v1, %v3756_v24  ;;  %v695_v24 = vshrl.u32 %v185_v13, 16  ;;  %v689_v57 = vrot.slane %v687_v30, 7  ;;  %v698_v17 = vshll.u32 %v185_v13, 16  ;;  %v187_v48 = vld [vmem:[%s9425_s0 + $0xf4] sm:$0xf] }
 0x1a7   :  { %5006 = vrot.lane.b32.xlu0 %v4966_v6, %s6320_s11  ;;  %v2801_v6 = vsel %vm2795_vm12, %v2768_v11, %v7421_v25  ;;  %v4271_v25 = vshrl.u32 %v8279_v63, 16  ;;  %v3951_v22 = vsel %vm1657_vm9, %v3949_v51, %v3950_v14  ;;  %v8323_v27 = vcombine.low %v3409_v46, %v8313_v38  ;;  %v8344_v13 = vld [vmem:[#allocation2 + $0x14c] ss:$0 sps:$4 sm:$0x11]   ;;  %v1210_v21 = vld [vmem:[#allocation2 + $0xfc] sm:$0xf] }
 0x1a8   :  { %v8281_v41 = vpop.permute.xlu1 %3974  ;;  %v8283_v50 = vpop.permute.xlu0 %4360  ;;  %v697_v1 = vrot.slane %v695_v24, 7  ;;  %v4275_v62 = vrot.slane %v4273_v4, 1  ;;  %v4278_v8 = vshll.u32 %v8303_v40, 16  ;;  %v692_v45 = vor.u32 %v690_v15, %v689_v57 }
 0x1a9   :  { %v2834_v29 = vsel %vm2828_vm13, %v2801_v6, %v7596_v35  ;;  %v3946_v54 = vrot.slane %v5777_v53, 1  ;;  %v3947_v52 = vrot.slane %v8215_v34, 1  ;;  %v4969_v51 = vsel %vm1657_vm9, %v4967_v37, %v4968_v39  ;;  %v3450_v39 = vld [vmem:[#allocation2 + $0x150] sm:$0xe] }
 0x1aa   :  { %2616 = vrot.lane.b32.xlu1 %v2505_v16, %s6319_s6  ;;  %v693_v16 = vrot.slane %v689_v57, 4  ;;  %v700_v5 = vor.u32 %v698_v17, %v697_v1  ;;  %v702_v49 = vrot.slane %v697_v1, 4  ;;  %v2867_v56 = vsel %vm2861_vm14, %v2834_v29, %v7741_v26 }
 0x1ab   :  { %3858 = vrot.lane.b32.xlu0 %v3757_v32, %s6313_s5  ;;  %v186_v32 = vld [vmem:[%s9425_s0 + $0xf0] sm:$0xf]  ;;  %v1043_v34 = vsel %vm6589_vm7, %v692_v45, %v1042_v0  ;;  %v4280_v23 = vrot.slane %v4278_v8, 1  ;;  %v4261_v26 = vshll.u32 %v8323_v27, 16  ;;  %v4276_v6 = vor.u32 %v4275_v62, %v4271_v25  ;;  %v1049_v62 = vld [vmem:[#allocation2 + $0x18c] sm:$0xf] }
 0x1ac   :  { %v8308_v47 = vpop.permute.xlu1 %4086  ;;  %v8310_v20 = vpop.permute.xlu0 %2334  ;;  %v701_v35 = vsel %vm6571_vm4, %v693_v16, %v700_v5  ;;  %v1047_v11 = vsel %vm6606_vm8, %v702_v49, %v1046_v10  ;;  %1044 = vst [vmem:[#allocation2 + $0x180] sm:$0xf] %v1043_v34  ;;  %v704_v14 = vshrl.u32 %v186_v32, 16  ;;  %v712_v46 = vshrl.u32 %v187_v48, 16  ;;  %v3449_v10 = vld [vmem:[#allocation2 + $0x144] sm:$0xe] }
 0x1ad   :  { %1045 = vst.msk [vmem:[#allocation2 + $0x184] sm:$0xf] %vm16_vm0, %v701_v35  ;;  %1048 = vst [vmem:[#allocation2 + $0x188] sm:$0x1] %v1047_v11  ;;  %v715_v15 = vshll.u32 %v187_v48, 16  ;;  %v3948_v24 = vsel %vm1657_vm9, %v3946_v54, %v3947_v52  ;;  %v8360_v53 = vcombine.low %v1208_v59, %v8336_v61  ;;  %v2900_v1 = vsel %vm2894_vm15, %v2867_v56, %v7902_v55  ;;  %v9552_v55 = vld [vmem:[#allocation41_spill] sm:$0xff] }
 0x1ae   :  { %4880 = vrot.lane.b32.xlu1 %v4769_v44, %s6319_s6  ;;  %v8355_v44 = vld [vmem:[#allocation2 + $0x100] sm:$0xf]  ;;  %v706_v57 = vrot.slane %v704_v14, 7  ;;  %v4266_v17 = vshll.u32 %v8344_v13, 16  ;;  %v4259_v8 = vshrl.u32 %v8323_v27, 16  ;;  %v4263_v0 = vrot.slane %v4261_v26, 1 }
 0x1af   :  { %3860 = vrot.lane.b32.xlu0 %v3769_v2, %s6313_s5  ;;  %v707_v2 = vshll.u32 %v186_v32, 16  ;;  %v8367_v25 = vcombine.low %v1210_v21, %v8355_v44  ;;  %v5031_v16 = vsel %vm2762_vm11, %v9552_v55, %v8193_v7  ;;  %v4281_v32 = vsel %vm1384_vm6, %v4276_v6, %v4280_v23  ;;  %v1053_v52 = vld [vmem:[#allocation2 + $0x194] sm:$0x1]  ;;  %v3474_v6 = vld [vmem:[#allocation2 + $0x150] sm:$0xf] }
 0x1b0   :  { %v8326_v43 = vpop.permute.xlu1 %4358  ;;  %v8328_v28 = vpop.permute.xlu0 %4598  ;;  %v710_v45 = vrot.slane %v706_v57, 4  ;;  %v5826_v29 = vcombine.low %v3450_v39, %v8268_v60  ;;  %v4268_v35 = vrot.slane %v4266_v17, 1  ;;  %v5825_v60 = vcombine.low %v3449_v10, %v8313_v38  ;;  %v9554_v10 = vld [vmem:[#allocation10_spill] sm:$0xff] }
 0x1b1   :  { %v709_v59 = vor.u32 %v707_v2, %v706_v57  ;;  %v4264_v11 = vor.u32 %v4263_v0, %v4259_v8  ;;  %v8406_v2 = vld [vmem:[#allocation2 + $0xf8] ss:$0 sps:$4 sm:$0x11]   ;;  %v2507_v8 = vshrl.u32 %v8360_v53, 16  ;;  %v9553_v0 = vld [vmem:[#allocation24_spill] sm:$0xff] }
 0x1b2   :  { %2744 = vrot.lane.b32.xlu1 %v2705_v58, %s6320_s11  ;;  %v6275_v58 = vld [vmem:[#allocation2 + $0xf8] ss:$0 sps:$4 sm:$0x11]   ;;  %v4461_v14 = vrot.slane %v5826_v29, 1  ;;  %v2514_v55 = vshll.u32 %v8406_v2, 16  ;;  %v2519_v29 = vshrl.u32 %v8367_v25, 16 }
 0x1b3   :  { %3988 = vrot.lane.b32.xlu0 %v3951_v22, %s6314_s16  ;;  %v2198_v37 = vrot.slane %v6275_v58, 1  ;;  %v714_v22 = vrot.slane %v712_v46, 7  ;;  %v1050_v56 = vsel %vm6589_vm7, %v709_v59, %v1049_v62  ;;  %v8416_v58 = vld [vmem:[#allocation2 + $0x104] ss:$0 sps:$4 sm:$0x11]   ;;  %v4269_v39 = vsel %vm1384_vm6, %v4264_v11, %v4268_v35 }
 0x1b4   :  { %v4487_v4 = vpop.permute.xlu1 %4486  ;;  %v2607_v30 = vpop.permute.xlu0 %2606  ;;  %1051 = vst [vmem:[#allocation2 + $0x18c] sm:$0xf] %v1050_v56  ;;  %v2770_v59 = vsel %vm2762_vm11, %v9554_v10, %v9553_v0  ;;  %v9556_v56 = vld [vmem:[#allocation44_spill] sm:$0xff]  ;;  %v1249_v11 = vld [vmem:[#allocation2 + $0xfc] sm:$0xe] }
 0x1b5   :  { %v717_v54 = vor.u32 %v715_v15, %v714_v22  ;;  %v2199_v48 = vsel %vm1657_vm9, %v8294_v3, %v2198_v37  ;;  %v719_v21 = vrot.slane %v714_v22, 4  ;;  %v2933_v3 = vsel %vm2927_vm1, %v2900_v1, %v8310_v20  ;;  %v8404_v20 = vld [vmem:[#allocation2 + $0x154] sm:$0xf]  ;;  %v3476_v15 = vld [vmem:[#allocation2 + $0x15c] sm:$0xf] }
 0x1b6   :  { %5008 = vrot.lane.b32.xlu1 %v4969_v51, %s6320_s11  ;;  %v2966_v51 = vsel %vm2960_vm2, %v2933_v3, %v2607_v30  ;;  %v4459_v30 = vrot.slane %v8344_v13, 1  ;;  %v8423_v57 = vcombine.low %v3474_v6, %v8404_v20 }
 0x1b7   :  { %4100 = vrot.lane.b32.xlu0 %v8279_v63, %s6315_s25  ;;  %v5063_v63 = vsel %vm2795_vm12, %v5031_v16, %v8281_v41  ;;  %v718_v34 = vsel %vm6571_vm4, %v710_v45, %v717_v54  ;;  %v2526_v16 = vshll.u32 %v8416_v58, 16 }
 0x1b8   :  { %v8375_v5 = vpop.permute.xlu1 %4488  ;;  %v4871_v49 = vpop.permute.xlu0 %4870  ;;  %v5095_v7 = vsel %vm2828_vm13, %v5063_v63, %v8308_v47  ;;  %1052 = vst.msk [vmem:[#allocation2 + $0x190] sm:$0xf] %vm16_vm0, %v718_v34  ;;  %v1054_v47 = vsel %vm6606_vm8, %v719_v21, %v1053_v52  ;;  %v4773_v52 = vshll.u32 %v8423_v57, 16  ;;  %v9555_v63 = vld [vmem:[#allocation37_spill] sm:$0xff]  ;;  %v5033_v21 = vsel %vm2762_vm11, %v9556_v56, %v8218_v33  ;;  %v189_v56 = vld [vmem:[%s9425_s0 + $0xfc] sm:$0xf] }
 0x1b9   :  { %v5127_v41 = vsel %vm2861_vm14, %v5095_v7, %v8326_v43  ;;  %v4462_v43 = vrot.slane %v8303_v40, 1  ;;  %1055 = vst [vmem:[#allocation2 + $0x194] sm:$0x1] %v1054_v47  ;;  %v2509_v40 = vshll.u32 %v8360_v53, 16  ;;  %v5065_v33 = vsel %vm2795_vm12, %v5033_v21, %v8243_v18 }
 0x1ba   :  { %3986 = vrot.lane.b32.xlu1 %v3948_v24, %s6314_s16  ;;  %v5159_v38 = vsel %vm2894_vm15, %v5127_v41, %v4487_v4  ;;  %v8409_v24 = vld [vmem:[#allocation2 + $0x160] sm:$0xf]  ;;  %v4458_v4 = vrot.slane %v5825_v60, 1  ;;  %v8453_v60 = vld [vmem:[#allocation2 + $0x164] ss:$0 sps:$4 sm:$0x11]  }
 0x1bb   :  { %4372 = vrot.lane.b32.xlu0 %v4281_v32, %s6316_s30  ;;  %v5191_v37 = vsel %vm2927_vm1, %v5159_v38, %v8328_v28  ;;  %v4463_v22 = vsel %vm1657_vm9, %v4461_v14, %v4462_v43  ;;  %v5842_v62 = vcombine.low %v3476_v15, %v8409_v24  ;;  %v2511_v45 = vrot.slane %v2509_v40, 1  ;;  %v9557_v41 = vld [vmem:[#allocation52_spill] sm:$0xff] }
 0x1bc   :  { %v8401_v23 = vpop.permute.xlu1 %2336  ;;  %v2735_v26 = vpop.permute.xlu0 %2734  ;;  %v5223_v1 = vsel %vm2960_vm2, %v5191_v37, %v4871_v49  ;;  %v8440_v49 = vld [vmem:[#allocation2 + $0x158] ss:$0 sps:$4 sm:$0x11]   ;;  %v4460_v32 = vsel %vm1657_vm9, %v4458_v4, %v4459_v30  ;;  %v2516_v38 = vrot.slane %v2514_v55, 1  ;;  %v4775_v43 = vrot.slane %v4773_v52, 1 }
 0x1bd   :  { %v2999_v46 = vsel %vm2993_vm3, %v2966_v51, %v2735_v26  ;;  %v4785_v34 = vshll.u32 %v5842_v62, 16  ;;  %v2512_v47 = vor.u32 %v2511_v45, %v2507_v8  ;;  %v2528_v51 = vrot.slane %v2526_v16, 1  ;;  %v3515_v8 = vld [vmem:[#allocation2 + $0x15c] sm:$0xe]  ;;  %v3514_v45 = vld [vmem:[#allocation2 + $0x150] sm:$0xe] }
 0x1be   :  { %4098 = vrot.lane.b32.xlu1 %v8323_v27, %s6315_s25  ;;  %5945 = vmatprep.mubr.msk.bf16.mxu0 %vm3053_vm5, %v2999_v46  ;;  %v2521_v27 = vshll.u32 %v8367_v25, 16  ;;  %v4771_v26 = vshrl.u32 %v8423_v57, 16  ;;  %v4778_v6 = vshll.u32 %v8440_v49, 16  ;;  %v1248_v46 = vld [vmem:[#allocation2 + $0xf0] sm:$0xe]  ;;  %v4783_v30 = vshrl.u32 %v5842_v62, 16 }
 0x1bf   :  { %2236 = vrot.lane.b32.xlu0 %v2199_v48, %s6317_s13  ;;  %v2803_v48 = vsel %vm2795_vm12, %v2770_v59, %v9555_v63  ;;  %v4787_v40 = vrot.slane %v4785_v34, 1  ;;  %v4790_v37 = vshll.u32 %v8453_v60, 16  ;;  %v3348_v55 = vld [vmem:[#allocation2 + $0x150] sm:$0xf]  ;;  %v2710_v63 = vrot.slane %v8416_v58, 1 }
 0x1c0   :  { %v8427_v17 = vpop.permute.xlu1 %4600  ;;  %v4999_v13 = vpop.permute.xlu0 %4998  ;;  %v2523_v54 = vrot.slane %v2521_v27, 1  ;;  %v2836_v3 = vsel %vm2828_vm13, %v2803_v48, %v9557_v41  ;;  %v9558_v27 = vld [vmem:[#allocation67_spill] sm:$0xff]  ;;  %v4776_v10 = vor.u32 %v4775_v43, %v4771_v26  ;;  %v4780_v59 = vrot.slane %v4778_v6, 1  ;;  %v8505_v58 = vld [vmem:[#allocation2 + $0x150] sm:$0xe] }
 0x1c1   :  { %v5255_v28 = vsel %vm2993_vm3, %v5223_v1, %v4999_v13  ;;  %v2869_v18 = vsel %vm2861_vm14, %v2836_v3, %v9558_v27  ;;  %v9559_v1 = vld [vmem:[#allocation81_spill] sm:$0xff]  ;;  %v5097_v13 = vsel %vm2828_vm13, %v5065_v33, %v8265_v9  ;;  %v5874_v48 = vcombine.low %v3515_v8, %v8409_v24  ;;  %v8514_v3 = vld [vmem:[#allocation2 + $0x160] sm:$0xf] }
 0x1c2   :  { %4370 = vrot.lane.b32.xlu1 %v4269_v39, %s6316_s30  ;;  %5983 = vmatprep.mubr.msk.bf16.mxu1 %vm3053_vm5, %v5255_v28  ;;  %v2524_v14 = vor.u32 %v2523_v54, %v2519_v29  ;;  %v5710_v39 = vcombine.low %v1249_v11, %v8355_v44  ;;  %v5709_v28 = vcombine.low %v1248_v46, %v8336_v61  ;;  %v4792_v29 = vrot.slane %v4790_v37, 1  ;;  %v8485_v54 = vld [vmem:[#allocation2 + $0x154] sm:$0xf] }
 0x1c3   :  { %4500 = vrot.lane.b32.xlu0 %v4463_v22, %s6317_s13  ;;  %v2517_v22 = vsel %vm1384_vm6, %v2512_v47, %v2516_v38  ;;  %v5873_v34 = vcombine.low %v3514_v45, %v8404_v20  ;;  %v4971_v41 = vrot.slane %v8440_v49, 1  ;;  %v729_v33 = vshrl.u32 %v189_v56, 16 }
 0x1c4   :  { %v2609_v7 = vpop.permute.xlu1 %2608  ;;  %v8451_v35 = vpop.permute.xlu0 %3850  ;;  %v2529_v0 = vsel %vm1384_vm6, %v2524_v14, %v2528_v51  ;;  %v2709_v61 = vrot.slane %v5710_v39, 1  ;;  %v3413_v51 = vld [vmem:[#allocation2 + $0x15c] sm:$0xf]  ;;  %v4781_v43 = vsel %vm1384_vm6, %v4776_v10, %v4780_v59  ;;  %v4973_v46 = vrot.slane %v5874_v48, 1 }
 0x1c5   :  { %v731_v37 = vrot.slane %v729_v33, 7  ;;  %v732_v39 = vshll.u32 %v189_v56, 16  ;;  %v4974_v27 = vrot.slane %v8453_v60, 1  ;;  %v4970_v45 = vrot.slane %v5873_v34, 1 }
 0x1c6   :  { %4498 = vrot.lane.b32.xlu1 %v4460_v32, %s6317_s13  ;;  %v4788_v32 = vor.u32 %v4787_v40, %v4783_v30  ;;  %v2711_v6 = vsel %vm1657_vm9, %v2709_v61, %v2710_v63  ;;  %v6214_v30 = vld [vmem:[#allocation2 + $0x158] ss:$0 sps:$4 sm:$0x11]   ;;  %v8557_v48 = vld [vmem:[#allocation2 + $0x164] ss:$0 sps:$4 sm:$0x11]  }
 0x1c7   :  { %2348 = vrot.lane.b32.xlu0 %v8367_v25, %s6318_s26  ;;  %v2902_v25 = vsel %vm2894_vm15, %v2869_v18, %v9559_v1  ;;  %v734_v10 = vor.u32 %v732_v39, %v731_v37  ;;  %v736_v59 = vrot.slane %v731_v37, 4  ;;  %v3778_v60 = vshll.u32 %v6214_v30, 16  ;;  %v8579_v33 = vld [vmem:[#allocation2 + $0x170] ss:$0 sps:$4 sm:$0x11]  }
 0x1c8   :  { %v4873_v15 = vpop.permute.xlu1 %4872  ;;  %v8464_v4 = vpop.permute.xlu0 %3852  ;;  %v2935_v44 = vsel %vm2927_vm1, %v2902_v25, %v8401_v23  ;;  %v188_v23 = vld [vmem:[%s9425_s0 + $0xf8] sm:$0xf]  ;;  %v4793_v38 = vsel %vm1384_vm6, %v4788_v32, %v4792_v29  ;;  %v8545_v32 = vld [vmem:[#allocation2 + $0x164] ss:$0 sps:$4 sm:$0x11]   ;;  %v4975_v42 = vsel %vm1657_vm9, %v4973_v46, %v4974_v27 }
 0x1c9   :  { %v2968_v9 = vsel %vm2960_vm2, %v2935_v44, %v2609_v7  ;;  %v2706_v7 = vrot.slane %v5709_v28, 1  ;;  %v721_v11 = vshrl.u32 %v188_v23, 16  ;;  %v724_v26 = vshll.u32 %v188_v23, 16 }
 0x1ca   :  { %2346 = vrot.lane.b32.xlu1 %v8360_v53, %s6318_s26  ;;  %v3780_v34 = vrot.slane %v3778_v60, 1 }
 0x1cb   :  { %4612 = vrot.lane.b32.xlu0 %v5842_v62, %s6318_s26  ;;  %v5129_v62 = vsel %vm2861_vm14, %v5097_v13, %v8283_v50  ;;  %v2707_v50 = vrot.slane %v8406_v2, 1  ;;  %v723_v40 = vrot.slane %v721_v11, 7  ;;  %v1056_v13 = vld [vmem:[#allocation2 + $0x198] sm:$0xf]  ;;  %v3790_v11 = vshll.u32 %v8545_v32, 16 }
 0x1cc   :  { %v2737_v16 = vpop.permute.xlu1 %2736  ;;  %v8483_v53 = vpop.permute.xlu0 %3980  ;;  %v5161_v21 = vsel %vm2894_vm15, %v5129_v62, %v8375_v5  ;;  %v8512_v5 = vcombine.low %v3348_v55, %v8485_v54  ;;  %v3415_v55 = vld [vmem:[#allocation2 + $0x168] sm:$0xf] }
 0x1cd   :  { %v3001_v52 = vsel %vm2993_vm3, %v2968_v9, %v2737_v16  ;;  %v5193_v24 = vsel %vm2927_vm1, %v5161_v21, %v8427_v17  ;;  %v8520_v17 = vld [vmem:[#allocation2 + $0x160] sm:$0xf]  ;;  %v726_v44 = vor.u32 %v724_v26, %v723_v40  ;;  %v8542_v9 = vld [vmem:[#allocation2 + $0x16c] sm:$0xf]  ;;  %v3953_v16 = vrot.slane %v6214_v30, 1 }
 0x1ce   :  { %4610 = vrot.lane.b32.xlu1 %v8423_v57, %s6318_s26  ;;  %5946 = vmatmul.mubr.msk.bf16.gmra.mrb[4].mxu0 %vm3053_vm5, %v3001_v52  ;;  %v3350_v57 = vld [vmem:[#allocation2 + $0x15c] sm:$0xf]  ;;  %v5225_v2 = vsel %vm2960_vm2, %v5193_v24, %v4873_v15  ;;  %v5779_v15 = vcombine.low %v8505_v58, %v8485_v54  ;;  %v3773_v18 = vshll.u32 %v8512_v5, 16  ;;  %v8536_v25 = vcombine.low %v3413_v51, %v8520_v17 }
 0x1cf   :  { %2620 = vrot.lane.b32.xlu0 %v2529_v0, %s6319_s6  ;;  %v8533_v1 = vcombine.low %v3350_v57, %v8514_v3  ;;  %v727_v0 = vrot.slane %v723_v40, 4  ;;  %v1057_v61 = vsel %vm6589_vm7, %v726_v44, %v1056_v13  ;;  %v2708_v23 = vsel %vm1657_vm9, %v2706_v7, %v2707_v50  ;;  %v9560_v44 = vld [vmem:[#allocation25_spill] sm:$0xff] }
 0x1d0   :  { %v5001_v47 = vpop.permute.xlu1 %5000  ;;  %v8517_v20 = vpop.permute.xlu0 %4092  ;;  %v3771_v62 = vshrl.u32 %v8512_v5, 16  ;;  %v3775_v52 = vrot.slane %v3773_v18, 1  ;;  %1058 = vst [vmem:[#allocation2 + $0x198] sm:$0xf] %v1057_v61  ;;  %v3952_v56 = vrot.slane %v5779_v15, 1  ;;  %v4285_v21 = vshll.u32 %v8536_v25, 16 }
 0x1d1   :  { %v5257_v14 = vsel %vm2993_vm3, %v5225_v2, %v5001_v47  ;;  %v735_v29 = vsel %vm6571_vm4, %v727_v0, %v734_v10  ;;  %v3785_v63 = vshll.u32 %v8533_v1, 16  ;;  %v8565_v7 = vcombine.low %v3415_v55, %v8542_v9  ;;  %v3387_v2 = vld [vmem:[#allocation2 + $0x15c] sm:$0xe]  ;;  %v6276_v10 = vld [vmem:[#allocation2 + $0x10c] sm:$0xf] }
 0x1d2   :  { %2618 = vrot.lane.b32.xlu1 %v2517_v22, %s6319_s6  ;;  %5984 = vmatmul.mubr.msk.bf16.gmra.mrb[4].mxu1 %vm3053_vm5, %v5257_v14  ;;  %v1060_v22 = vld [vmem:[#allocation2 + $0x1a0] sm:$0x1]  ;;  %1059 = vst.msk [vmem:[#allocation2 + $0x19c] sm:$0xf] %vm16_vm0, %v735_v29  ;;  %v4972_v50 = vsel %vm1657_vm9, %v4970_v45, %v4971_v41  ;;  %v3783_v58 = vshrl.u32 %v8533_v1, 16  ;;  %v3776_v24 = vor.u32 %v3775_v52, %v3771_v62  ;;  %v4290_v47 = vshll.u32 %v8557_v48, 16 }
 0x1d3   :  { %4884 = vrot.lane.b32.xlu0 %v4793_v38, %s6319_s6  ;;  %v1061_v54 = vsel %vm6606_vm8, %v736_v59, %v1060_v22  ;;  %v3787_v57 = vrot.slane %v3785_v63, 1  ;;  %v3954_v26 = vsel %vm1657_vm9, %v3952_v56, %v3953_v16  ;;  %v4283_v49 = vshrl.u32 %v8536_v25, 16  ;;  %v9561_v0 = vld [vmem:[#allocation11_spill] sm:$0xff]  ;;  %v9563_v16 = vld [vmem:[#allocation50_spill] sm:$0xff]  ;;  %v9564_v62 = vld [vmem:[#allocation61_spill] sm:$0xff] }
 0x1d4   :  { %v8538_v28 = vpop.permute.xlu1 %3978  ;;  %v8540_v8 = vpop.permute.xlu0 %4364  ;;  %1062 = vst [vmem:[#allocation2 + $0x1a0] sm:$0x1] %v1061_v54  ;;  %v4287_v41 = vrot.slane %v4285_v21, 1  ;;  %v4297_v14 = vshll.u32 %v8565_v7, 16  ;;  %v3781_v46 = vsel %vm1384_vm6, %v3776_v24, %v3780_v34  ;;  %v3792_v15 = vrot.slane %v3790_v11, 1  ;;  %v9562_v45 = vld [vmem:[#allocation35_spill] sm:$0xff] }
 0x1d5   :  { %v3788_v30 = vor.u32 %v3787_v57, %v3783_v58  ;;  %v4292_v40 = vrot.slane %v4290_v47, 1  ;;  %v4295_v18 = vshrl.u32 %v8565_v7, 16  ;;  %v4302_v22 = vshll.u32 %v8579_v33, 16  ;;  %v1185_v55 = vld [vmem:[#allocation2 + $0xfc] sm:$0xe]  ;;  %v9565_v34 = vld [vmem:[#allocation65_spill] sm:$0xff] }
 0x1d6   :  { %4882 = vrot.lane.b32.xlu1 %v4781_v43, %s6319_s6  ;;  %v5780_v43 = vcombine.low %v3387_v2, %v8514_v3  ;;  %v4288_v27 = vor.u32 %v4287_v41, %v4283_v49  ;;  %v4299_v13 = vrot.slane %v4297_v14, 1  ;;  %v2772_v3 = vsel %vm2762_vm11, %v9561_v0, %v9560_v44  ;;  %v3452_v24 = vld [vmem:[#allocation2 + $0x168] sm:$0xe]  ;;  %v6277_v57 = vld [vmem:[#allocation2 + $0x100] sm:$0xf]  ;;  %v9566_v2 = vld [vmem:[#allocation78_spill] sm:$0xff] }
 0x1d7   :  { %2748 = vrot.lane.b32.xlu0 %v2711_v6, %s6320_s11  ;;  %v1186_v6 = vld [vmem:[#allocation2 + $0x108] sm:$0xe]  ;;  %v2805_v60 = vsel %vm2795_vm12, %v2772_v3, %v9562_v45  ;;  %v3793_v61 = vsel %vm1384_vm6, %v3788_v30, %v3792_v15  ;;  %v5035_v52 = vsel %vm2762_vm11, %v9564_v62, %v8451_v35  ;;  %v8634_v44 = vld [vmem:[#allocation2 + $0x10c] sm:$0xf]  ;;  %vm5555_vm0 = vcmask 1041409  }
 0x1d8   :  { %v4091_v12 = vpop.permute.xlu1 %4090  ;;  %v8560_v31 = vpop.permute.xlu0 %2338  ;;  %v5664_v59 = vcombine.low %v1186_v6, %v6276_v10  ;;  %v2838_v29 = vsel %vm2828_vm13, %v2805_v60, %v9563_v16  ;;  %v3955_v54 = vrot.slane %v5780_v43, 1  ;;  %v4293_v56 = vsel %vm1384_vm6, %v4288_v27, %v4292_v40  ;;  %v3451_v43 = vld [vmem:[#allocation2 + $0x15c] sm:$0xe]  ;;  %v1214_v40 = vld [vmem:[#allocation2 + $0x114] sm:$0xf] }
 0x1d9   :  { %v4300_v21 = vor.u32 %v4299_v13, %v4295_v18  ;;  %v2871_v58 = vsel %vm2861_vm14, %v2838_v29, %v9565_v34  ;;  %v6279_v13 = vld [vmem:[#allocation2 + $0x104] ss:$0 sps:$4 sm:$0x11]   ;;  %v4468_v60 = vrot.slane %v8579_v33, 1  ;;  %v8643_v16 = vld [vmem:[#allocation2 + $0x178] sm:$0xf] }
 0x1da   :  { %2746 = vrot.lane.b32.xlu1 %v2708_v23, %s6320_s11  ;;  %v3956_v23 = vrot.slane %v8545_v32, 1  ;;  %v5663_v32 = vcombine.low %v1185_v55, %v6277_v57  ;;  %v2203_v11 = vrot.slane %v5664_v59, 1  ;;  %v2904_v35 = vsel %vm2894_vm15, %v2871_v58, %v9566_v2  ;;  %v3480_v55 = vld [vmem:[#allocation2 + $0x174] sm:$0xf]  ;;  %v3478_v58 = vld [vmem:[#allocation2 + $0x168] sm:$0xf] }
 0x1db   :  { %5012 = vrot.lane.b32.xlu0 %v4975_v42, %s6320_s11  ;;  %v2937_v49 = vsel %vm2927_vm1, %v2904_v35, %v8560_v31  ;;  %v8625_v31 = vld [vmem:[#allocation2 + $0x118] sm:$0xf]  ;;  %v8652_v33 = vld [vmem:[#allocation2 + $0x11c] ss:$0 sps:$4 sm:$0x11]  }
 0x1dc   :  { %v4363_v38 = vpop.permute.xlu1 %4362  ;;  %v8575_v51 = vpop.permute.xlu0 %4602  ;;  %v3957_v41 = vsel %vm1657_vm9, %v3955_v54, %v3956_v23  ;;  %v2200_v18 = vrot.slane %v5663_v32, 1  ;;  %v5680_v0 = vcombine.low %v1214_v40, %v8625_v31  ;;  %v9570_v57 = vld [vmem:[#allocation39_spill] sm:$0xff]  ;;  %v8672_v35 = vld [vmem:[#allocation2 + $0x110] ss:$0 sps:$4 sm:$0x11]   ;;  %v9573_v40 = vld [vmem:[#allocation84_spill] sm:$0xff] }
 0x1de   :  { %5010 = vrot.lane.b32.xlu1 %v4972_v50, %s6320_s11  ;;  %v4304_v50 = vrot.slane %v4302_v22, 1  ;;  %v2201_v22 = vrot.slane %v6279_v13, 1  ;;  %v2545_v62 = vshll.u32 %v5680_v0, 16  ;;  %v1251_v13 = vld [vmem:[#allocation2 + $0x114] sm:$0xe] }
 0x1df   :  { %3990 = vrot.lane.b32.xlu0 %v3954_v26, %s6314_s16 }
 0x1e0   :  { %v4491_v37 = vpop.permute.xlu1 %4490  ;;  %v2611_v39 = vpop.permute.xlu0 %2610  ;;  %v4305_v15 = vsel %vm1384_vm6, %v4300_v21, %v4304_v50  ;;  %v2202_v23 = vsel %vm1657_vm9, %v2200_v18, %v2201_v22 }
 0x1e2   :  { %3862 = vrot.lane.b32.xlu1 %v3781_v46, %s6313_s5  ;;  %v2970_v46 = vsel %vm2960_vm2, %v2937_v49, %v2611_v39 }
 0x1e3   :  { %4102 = vrot.lane.b32.xlu0 %v8536_v25, %s6315_s25  ;;  %v5067_v25 = vsel %vm2795_vm12, %v5035_v52, %v8538_v28  ;;  %v6278_v28 = vld [vmem:[#allocation2 + $0x110] ss:$0 sps:$4 sm:$0x11]   ;;  %v9567_v52 = vld [vmem:[#allocation26_spill] sm:$0xff] }
 0x1e4   :  { %v8603_v63 = vpop.permute.xlu1 %4492  ;;  %v4875_v42 = vpop.permute.xlu0 %4874  ;;  %v5099_v47 = vsel %vm2828_vm13, %v5067_v25, %v4091_v12  ;;  %v2204_v14 = vrot.slane %v6278_v28, 1  ;;  %v8663_v25 = vld [vmem:[#allocation2 + $0x16c] sm:$0xf]  ;;  %v2547_v28 = vrot.slane %v2545_v62, 1 }
 0x1e5   :  { %v5131_v26 = vsel %vm2861_vm14, %v5099_v47, %v4363_v38  ;;  %v5828_v38 = vcombine.low %v3452_v24, %v8542_v9  ;;  %v1212_v9 = vld [vmem:[#allocation2 + $0x108] sm:$0xf]  ;;  %v5844_v24 = vcombine.low %v3480_v55, %v8643_v16 }
 0x1e6   :  { %3864 = vrot.lane.b32.xlu1 %v3793_v61, %s6313_s5  ;;  %v5163_v6 = vsel %vm2894_vm15, %v5131_v26, %v4491_v37  ;;  %v5827_v37 = vcombine.low %v3451_v43, %v8520_v17  ;;  %v2205_v17 = vsel %vm1657_vm9, %v2203_v11, %v2204_v14  ;;  %v4465_v61 = vrot.slane %v8557_v48, 1  ;;  %v9571_v11 = vld [vmem:[#allocation54_spill] sm:$0xff]  ;;  %v9572_v43 = vld [vmem:[#allocation69_spill] sm:$0xff] }
 0x1e7   :  { %4374 = vrot.lane.b32.xlu0 %v4293_v56, %s6316_s30  ;;  %v5195_v39 = vsel %vm2927_vm1, %v5163_v6, %v8575_v51  ;;  %v4467_v45 = vrot.slane %v5828_v38, 1  ;;  %v5679_v54 = vcombine.low %v1212_v9, %v8634_v44  ;;  %v2543_v26 = vshrl.u32 %v5680_v0, 16 }
 0x1e8   :  { %v8621_v30 = vpop.permute.xlu1 %2340  ;;  %v2739_v12 = vpop.permute.xlu0 %2738  ;;  %v5227_v3 = vsel %vm2960_vm2, %v5195_v39, %v4875_v42  ;;  %v4464_v29 = vrot.slane %v5827_v37, 1  ;;  %v9568_v42 = vld [vmem:[#allocation12_spill] sm:$0xff]  ;;  %v2550_v14 = vshll.u32 %v8652_v33, 16  ;;  %v4809_v38 = vshll.u32 %v5844_v24, 16 }
 0x1e9   :  { %v3003_v27 = vsel %vm2993_vm3, %v2970_v46, %v2739_v12  ;;  %v2774_v56 = vsel %vm2762_vm11, %v9568_v42, %v9567_v52  ;;  %v4469_v48 = vsel %vm1657_vm9, %v4467_v45, %v4468_v60  ;;  %v2533_v47 = vshll.u32 %v5679_v54, 16 }
 0x1ea   :  { %3992 = vrot.lane.b32.xlu1 %v3957_v41, %s6314_s16  ;;  %5949 = vmatprep.mubr.msk.bf16.mxu0 %vm3053_vm5, %v3003_v27  ;;  %v2807_v32 = vsel %vm2795_vm12, %v2774_v56, %v9570_v57  ;;  %v5843_v41 = vcombine.low %v3478_v58, %v8663_v25  ;;  %v2531_v37 = vshrl.u32 %v5679_v54, 16  ;;  %v2538_v39 = vshll.u32 %v8672_v35, 16 }
 0x1eb   :  { %4376 = vrot.lane.b32.xlu0 %v4305_v15, %s6316_s30  ;;  %v2840_v2 = vsel %vm2828_vm13, %v2807_v32, %v9571_v11  ;;  %v8683_v15 = vld [vmem:[#allocation2 + $0x17c] ss:$0 sps:$4 sm:$0x11]   ;;  %v2535_v18 = vrot.slane %v2533_v47, 1  ;;  %v2548_v9 = vor.u32 %v2547_v28, %v2543_v26  ;;  %v4811_v55 = vrot.slane %v4809_v38, 1 }
 0x1ec   :  { %v8638_v10 = vpop.permute.xlu1 %4604  ;;  %v5003_v59 = vpop.permute.xlu0 %5002  ;;  %v2873_v6 = vsel %vm2861_vm14, %v2840_v2, %v9572_v43  ;;  %v2540_v62 = vrot.slane %v2538_v39, 1  ;;  %v5712_v52 = vcombine.low %v1251_v13, %v8625_v31  ;;  %v4795_v56 = vshrl.u32 %v5843_v41, 16  ;;  %v3352_v31 = vld [vmem:[#allocation2 + $0x168] sm:$0xf]  ;;  %v3353_v32 = vld [vmem:[#allocation2 + $0x16c] sm:$0xf] }
 0x1ed   :  { %v5259_v51 = vsel %vm2993_vm3, %v5227_v3, %v5003_v59  ;;  %v2906_v27 = vsel %vm2894_vm15, %v2873_v6, %v9573_v40  ;;  %v2552_v3 = vrot.slane %v2550_v14, 1  ;;  %v8694_v59 = vld [vmem:[#allocation2 + $0x170] ss:$0 sps:$4 sm:$0x11]   ;;  %v3517_v11 = vld [vmem:[#allocation2 + $0x174] sm:$0xe] }
 0x1ee   :  { %4104 = vrot.lane.b32.xlu1 %v8565_v7, %s6315_s25  ;;  %5987 = vmatprep.mubr.msk.bf16.mxu1 %vm3053_vm5, %v5259_v51  ;;  %v9569_v7 = vld [vmem:[#allocation63_spill] sm:$0xff]  ;;  %v2939_v22 = vsel %vm2927_vm1, %v2906_v27, %v8621_v30  ;;  %v4807_v51 = vshrl.u32 %v5844_v24, 16  ;;  %v3516_v2 = vld [vmem:[#allocation2 + $0x168] sm:$0xe]  ;;  %v3354_v28 = vld [vmem:[#allocation2 + $0x174] sm:$0xf]  ;;  %v5876_v38 = vcombine.low %v3517_v11, %v8643_v16 }
 0x1ef   :  { %2240 = vrot.lane.b32.xlu0 %v2205_v17, %s6317_s13  ;;  %v5037_v21 = vsel %vm2762_vm11, %v9569_v7, %v8464_v4  ;;  %v4466_v4 = vsel %vm1657_vm9, %v4464_v29, %v4465_v61  ;;  %v4797_v17 = vshll.u32 %v5843_v41, 16  ;;  %v4814_v29 = vshll.u32 %v8683_v15, 16  ;;  %v8724_v14 = vld [vmem:[#allocation2 + $0x178] sm:$0xf]  ;;  %v3417_v40 = vld [vmem:[#allocation2 + $0x174] sm:$0xf] }
 0x1f0   :  { %v2613_v50 = vpop.permute.xlu1 %2612  ;;  %v8660_v34 = vpop.permute.xlu0 %3854  ;;  %v5069_v49 = vsel %vm2795_vm12, %v5037_v21, %v8483_v53  ;;  %v4802_v7 = vshll.u32 %v8694_v59, 16  ;;  %v1250_v21 = vld [vmem:[#allocation2 + $0x108] sm:$0xe]  ;;  %v4812_v58 = vor.u32 %v4811_v55, %v4807_v51  ;;  %v8733_v27 = vld [vmem:[#allocation2 + $0x178] sm:$0xf]  ;;  %v8738_v13 = vcombine.low %v3354_v28, %v8724_v14 }
 0x1f1   :  { %v5101_v53 = vsel %vm2828_vm13, %v5069_v49, %v8517_v20  ;;  %v2972_v45 = vsel %vm2960_vm2, %v2939_v22, %v2613_v50  ;;  %v4816_v57 = vrot.slane %v4814_v29, 1  ;;  %v8722_v49 = vcombine.low %v3352_v31, %v3353_v32  ;;  %v6233_v39 = vld [vmem:[#allocation2 + $0x170] ss:$0 sps:$4 sm:$0x11]   ;;  %v3389_v11 = vld [vmem:[#allocation2 + $0x174] sm:$0xe] }
 0x1f2   :  { %2238 = vrot.lane.b32.xlu1 %v2202_v23, %s6317_s13  ;;  %v5133_v61 = vsel %vm2861_vm14, %v5101_v53, %v8540_v8  ;;  %v2536_v23 = vor.u32 %v2535_v18, %v2531_v37  ;;  %v4799_v8 = vrot.slane %v4797_v17, 1  ;;  %v4804_v26 = vrot.slane %v4802_v7, 1  ;;  %v3388_v37 = vld [vmem:[#allocation2 + $0x168] sm:$0xe] }
 0x1f3   :  { %4504 = vrot.lane.b32.xlu0 %v4469_v48, %s6317_s13  ;;  %v2553_v48 = vsel %vm1384_vm6, %v2548_v9, %v2552_v3  ;;  %v5875_v53 = vcombine.low %v3516_v2, %v8663_v25  ;;  %v3797_v16 = vshll.u32 %v8722_v49, 16  ;;  %v8745_v9 = vcombine.low %v3417_v40, %v8733_v27 }
 0x1f4   :  { %v4877_v46 = vpop.permute.xlu1 %4876  ;;  %v8681_v12 = vpop.permute.xlu0 %3856  ;;  %v4800_v47 = vor.u32 %v4799_v8, %v4795_v56  ;;  %v5781_v51 = vcombine.low %v3388_v37, %v3353_v32  ;;  %v4977_v29 = vrot.slane %v8694_v59, 1 }
 0x1f5   :  { %v4976_v55 = vrot.slane %v5875_v53, 1  ;;  %v4309_v59 = vshll.u32 %v8745_v9, 16  ;;  %v9576_v53 = vld [vmem:[#allocation36_spill] sm:$0xff] }
 0x1f6   :  { %4502 = vrot.lane.b32.xlu1 %v4466_v4, %s6317_s13  ;;  %v2541_v4 = vsel %vm1384_vm6, %v2536_v23, %v2540_v62  ;;  %v4805_v22 = vsel %vm1384_vm6, %v4800_v47, %v4804_v26  ;;  %v3809_v23 = vshll.u32 %v8738_v13, 16 }
 0x1f7   :  { %2352 = vrot.lane.b32.xlu0 %v5680_v0, %s6318_s26  ;;  %v5165_v0 = vsel %vm2894_vm15, %v5133_v61, %v8603_v63  ;;  %v3419_v61 = vld [vmem:[#allocation2 + $0x180] sm:$0xf]  ;;  %v4311_v2 = vrot.slane %v4309_v59, 1  ;;  %v6280_v59 = vld [vmem:[#allocation2 + $0x124] sm:$0xf] }
 0x1f8   :  { %v2741_v20 = vpop.permute.xlu1 %2740  ;;  %v8697_v60 = vpop.permute.xlu0 %3984  ;;  %v5197_v42 = vsel %vm2927_vm1, %v5165_v0, %v8638_v10  ;;  %v8757_v0 = vld [vmem:[#allocation2 + $0x17c] ss:$0 sps:$4 sm:$0x11]   ;;  %v3811_v31 = vrot.slane %v3809_v23, 1 }
 0x1f9   :  { %v3005_v30 = vsel %vm2993_vm3, %v2972_v45, %v2741_v20  ;;  %v5229_v63 = vsel %vm2960_vm2, %v5197_v42, %v4877_v46  ;;  %v2715_v46 = vrot.slane %v5712_v52, 1  ;;  %v4979_v45 = vrot.slane %v5876_v38, 1  ;;  %v8763_v42 = vld [vmem:[#allocation2 + $0x17c] ss:$0 sps:$4 sm:$0x11]   ;;  %v9575_v38 = vld [vmem:[#allocation13_spill] sm:$0xff] }
 0x1fa   :  { %2350 = vrot.lane.b32.xlu1 %v5679_v54, %s6318_s26  ;;  %5950 = vmatmul.mubr.msk.bf16.gmra.mrb[8].mxu0 %vm3053_vm5, %v3005_v30  ;;  %v4980_v20 = vrot.slane %v8683_v15, 1  ;;  %v3802_v30 = vshll.u32 %v6233_v39, 16  ;;  %v3795_v15 = vshrl.u32 %v8722_v49, 16  ;;  %v3799_v52 = vrot.slane %v3797_v16, 1 }
 0x1fb   :  { %4616 = vrot.lane.b32.xlu0 %v5844_v24, %s6318_s26  ;;  %v5711_v24 = vcombine.low %v1250_v21, %v8634_v44  ;;  %v2716_v44 = vrot.slane %v8652_v33, 1  ;;  %v2713_v33 = vrot.slane %v8672_v35, 1  ;;  %v8754_v35 = vld [vmem:[#allocation2 + $0x184] sm:$0xf]  ;;  %v3958_v21 = vrot.slane %v5781_v51, 1 }
 0x1fc   :  { %v5005_v50 = vpop.permute.xlu1 %5004  ;;  %v8713_v54 = vpop.permute.xlu0 %4096  ;;  %v4981_v7 = vsel %vm1657_vm9, %v4979_v45, %v4980_v20  ;;  %v3814_v32 = vshll.u32 %v8757_v0, 16  ;;  %v9577_v20 = vld [vmem:[#allocation51_spill] sm:$0xff] }
 0x1fd   :  { %v5261_v10 = vsel %vm2993_vm3, %v5229_v63, %v5005_v50  ;;  %v2712_v18 = vrot.slane %v5711_v24, 1  ;;  %v2717_v17 = vsel %vm1657_vm9, %v2715_v46, %v2716_v44  ;;  %v3959_v63 = vrot.slane %v6233_v39, 1  ;;  %v9574_v44 = vld [vmem:[#allocation27_spill] sm:$0xff] }
 0x1fe   :  { %4614 = vrot.lane.b32.xlu1 %v5843_v41, %s6318_s26  ;;  %5988 = vmatmul.mubr.msk.bf16.gmra.mrb[8].mxu1 %vm3053_vm5, %v5261_v10  ;;  %v4817_v41 = vsel %vm1384_vm6, %v4812_v58, %v4816_v57  ;;  %v8770_v50 = vcombine.low %v3419_v61, %v8754_v35  ;;  %v3804_v58 = vrot.slane %v3802_v30, 1  ;;  %v3807_v57 = vshrl.u32 %v8738_v13, 16 }
 0x1ff   :  { %2624 = vrot.lane.b32.xlu0 %v2553_v48, %s6319_s6  ;;  %v2714_v62 = vsel %vm1657_vm9, %v2712_v18, %v2713_v33  ;;  %v4978_v48 = vsel %vm1657_vm9, %v4976_v55, %v4977_v29  ;;  %v3800_v10 = vor.u32 %v3799_v52, %v3795_v15  ;;  %v4307_v24 = vshrl.u32 %v8745_v9, 16  ;;  %v9579_v15 = vld [vmem:[#allocation80_spill] sm:$0xff] }
 0x200   :  { %v8726_v43 = vpop.permute.xlu1 %3982  ;;  %v8728_v6 = vpop.permute.xlu0 %4368  ;;  %v3960_v28 = vsel %vm1657_vm9, %v3958_v21, %v3959_v63  ;;  %v4321_v46 = vshll.u32 %v8770_v50, 16  ;;  %v2776_v40 = vsel %vm2762_vm11, %v9575_v38, %v9574_v44  ;;  %v3816_v18 = vrot.slane %v3814_v32, 1  ;;  %v9580_v21 = vld [vmem:[#allocation79_spill] sm:$0xff] }
 0x201   :  { %v2809_v37 = vsel %vm2795_vm12, %v2776_v40, %v9576_v53  ;;  %v5782_v39 = vcombine.low %v3389_v11, %v8724_v14  ;;  %v3805_v33 = vsel %vm1384_vm6, %v3800_v10, %v3804_v58  ;;  %v3812_v16 = vor.u32 %v3811_v31, %v3807_v57  ;;  %v9578_v14 = vld [vmem:[#allocation66_spill] sm:$0xff] }
 0x202   :  { %2622 = vrot.lane.b32.xlu1 %v2541_v4, %s6319_s6  ;;  %v4314_v4 = vshll.u32 %v8763_v42, 16  ;;  %v2842_v51 = vsel %vm2828_vm13, %v2809_v37, %v9577_v20  ;;  %v4319_v61 = vshrl.u32 %v8770_v50, 16  ;;  %v4323_v30 = vrot.slane %v4321_v46, 1  ;;  %v1187_v10 = vld [vmem:[#allocation2 + $0x114] sm:$0xe] }
 0x203   :  { %4888 = vrot.lane.b32.xlu0 %v4817_v41, %s6319_s6  ;;  %v8780_v41 = vld [vmem:[#allocation2 + $0x188] ss:$0 sps:$4 sm:$0x11]   ;;  %v5039_v52 = vsel %vm2762_vm11, %v9579_v15, %v8660_v34  ;;  %v3961_v58 = vrot.slane %v5782_v39, 1  ;;  %v3817_v31 = vsel %vm1384_vm6, %v3812_v16, %v3816_v18  ;;  %v3962_v34 = vrot.slane %v8757_v0, 1 }
 0x204   :  { %v8747_v25 = vpop.permute.xlu1 %4094  ;;  %v8749_v3 = vpop.permute.xlu0 %2342  ;;  %v4316_v45 = vrot.slane %v4314_v4, 1  ;;  %v4326_v23 = vshll.u32 %v8780_v41, 16  ;;  %v6281_v44 = vld [vmem:[#allocation2 + $0x118] sm:$0xf] }
 0x205   :  { %v5665_v38 = vcombine.low %v1187_v10, %v6281_v44  ;;  %v3963_v40 = vsel %vm1657_vm9, %v3961_v58, %v3962_v34  ;;  %v6282_v37 = vld [vmem:[#allocation2 + $0x128] ss:$0 sps:$4 sm:$0x11]   ;;  %v8854_v58 = vld [vmem:[#allocation2 + $0x190] sm:$0xf]  ;;  %v4471_v34 = vrot.slane %v8763_v42, 1 }
 0x206   :  { %4886 = vrot.lane.b32.xlu1 %v4805_v22, %s6319_s6  ;;  %v1188_v22 = vld [vmem:[#allocation2 + $0x120] sm:$0xe]  ;;  %v4328_v4 = vrot.slane %v4326_v23, 1  ;;  %v2210_v18 = vrot.slane %v6282_v37, 1  ;;  %v9587_v44 = vld [vmem:[#allocation85_spill] sm:$0xff] }
 0x207   :  { %2752 = vrot.lane.b32.xlu0 %v2717_v17, %s6320_s11  ;;  %v4312_v17 = vor.u32 %v4311_v2, %v4307_v24  ;;  %v4324_v2 = vor.u32 %v4323_v30, %v4319_v61  ;;  %v2206_v20 = vrot.slane %v5665_v38, 1  ;;  %v8841_v30 = vld [vmem:[#allocation2 + $0x124] sm:$0xf] }
 0x208   :  { %v4367_v56 = vpop.permute.xlu1 %4366  ;;  %v8766_v8 = vpop.permute.xlu0 %4606 }
 0x209   :  { %v4317_v32 = vsel %vm1384_vm6, %v4312_v17, %v4316_v45  ;;  %v4329_v53 = vsel %vm1384_vm6, %v4324_v2, %v4328_v4  ;;  %v8868_v2 = vld [vmem:[#allocation2 + $0x134] ss:$0 sps:$4 sm:$0x11]  }
 0x20a   :  { %2750 = vrot.lane.b32.xlu1 %v2714_v62, %s6320_s11  ;;  %v2875_v62 = vsel %vm2861_vm14, %v2842_v51, %v9578_v14  ;;  %v6283_v51 = vld [vmem:[#allocation2 + $0x11c] ss:$0 sps:$4 sm:$0x11]  }
 0x20b   :  { %5016 = vrot.lane.b32.xlu0 %v4981_v7, %s6320_s11  ;;  %v5666_v7 = vcombine.low %v1188_v22, %v6280_v59  ;;  %v2908_v63 = vsel %vm2894_vm15, %v2875_v62, %v9580_v21  ;;  %v1218_v22 = vld [vmem:[#allocation2 + $0x12c] sm:$0xf]  ;;  %v2207_v61 = vrot.slane %v6283_v51, 1  ;;  %v9582_v59 = vld [vmem:[#allocation28_spill] sm:$0xff] }
 0x20c   :  { %v4495_v47 = vpop.permute.xlu1 %4494  ;;  %v2615_v26 = vpop.permute.xlu0 %2614 }
 0x20e   :  { %5014 = vrot.lane.b32.xlu1 %v4978_v48, %s6320_s11  ;;  %v5071_v48 = vsel %vm2795_vm12, %v5039_v52, %v8726_v43  ;;  %v2941_v43 = vsel %vm2927_vm1, %v2908_v63, %v8749_v3  ;;  %v3453_v3 = vld [vmem:[#allocation2 + $0x174] sm:$0xe]  ;;  %v4474_v52 = vrot.slane %v8780_v41, 1 }
 0x20f   :  { %3994 = vrot.lane.b32.xlu0 %v3960_v28, %s6314_s16  ;;  %v5103_v57 = vsel %vm2828_vm13, %v5071_v48, %v8747_v25  ;;  %v2974_v28 = vsel %vm2960_vm2, %v2941_v43, %v2615_v26  ;;  %v3484_v48 = vld [vmem:[#allocation2 + $0x18c] sm:$0xf]  ;;  %v2208_v43 = vsel %vm1657_vm9, %v2206_v20, %v2207_v61 }
 0x210   :  { %v8794_v55 = vpop.permute.xlu1 %4496  ;;  %v4879_v29 = vpop.permute.xlu0 %4878  ;;  %v5135_v11 = vsel %vm2861_vm14, %v5103_v57, %v4367_v56  ;;  %v2209_v56 = vrot.slane %v5666_v7, 1  ;;  %v9583_v7 = vld [vmem:[#allocation14_spill] sm:$0xff] }
 0x211   :  { %v5167_v25 = vsel %vm2894_vm15, %v5135_v11, %v4495_v47  ;;  %v2778_v21 = vsel %vm2762_vm11, %v9583_v7, %v9582_v59  ;;  %v9584_v57 = vld [vmem:[#allocation42_spill] sm:$0xff] }
 0x212   :  { %3866 = vrot.lane.b32.xlu1 %v3805_v33, %s6313_s5  ;;  %v5199_v47 = vsel %vm2927_vm1, %v5167_v25, %v8766_v8  ;;  %v8833_v33 = vld [vmem:[#allocation2 + $0x130] sm:$0xf]  ;;  %v5829_v8 = vcombine.low %v3453_v3, %v8733_v27  ;;  %v2211_v15 = vsel %vm1657_vm9, %v2209_v56, %v2210_v18  ;;  %v9586_v25 = vld [vmem:[#allocation71_spill] sm:$0xff]  ;;  %v8884_v3 = vld [vmem:[#allocation2 + $0x128] ss:$0 sps:$4 sm:$0x11]  }
 0x213   :  { %4106 = vrot.lane.b32.xlu0 %v8745_v9, %s6315_s25  ;;  %v3454_v9 = vld [vmem:[#allocation2 + $0x180] sm:$0xe]  ;;  %v5231_v16 = vsel %vm2960_vm2, %v5199_v47, %v4879_v29  ;;  %v5682_v23 = vcombine.low %v1218_v22, %v8833_v33  ;;  %v2574_v22 = vshll.u32 %v8868_v2, 16 }
 0x214   :  { %v8818_v24 = vpop.permute.xlu1 %2344  ;;  %v5830_v39 = vcombine.low %v3454_v9, %v8754_v35  ;;  %v1216_v35 = vld [vmem:[#allocation2 + $0x120] sm:$0xf]  ;;  %v8873_v9 = vld [vmem:[#allocation2 + $0x184] sm:$0xf] }
 0x215   :  { %v2743_v46 = vpop.permute.xlu0 %2742  ;;  %v9581_v29 = vld [vmem:[#allocation83_spill] sm:$0xff]  ;;  %v5681_v41 = vcombine.low %v1216_v35, %v8841_v30  ;;  %v2569_v4 = vshll.u32 %v5682_v23, 16 }
 0x216   :  { %3868 = vrot.lane.b32.xlu1 %v3817_v31, %s6313_s5  ;;  %v3007_v0 = vsel %vm2993_vm3, %v2974_v28, %v2743_v46  ;;  %v5041_v14 = vsel %vm2762_vm11, %v9581_v29, %v8681_v12  ;;  %v4473_v27 = vrot.slane %v5830_v39, 1  ;;  %v2811_v31 = vsel %vm2795_vm12, %v2778_v21, %v9584_v57  ;;  %v3482_v46 = vld [vmem:[#allocation2 + $0x180] sm:$0xf] }
 0x217   :  { %4378 = vrot.lane.b32.xlu0 %v4317_v32, %s6316_s30  ;;  %5953 = vmatprep.mubr.msk.bf16.mxu0 %vm3053_vm5, %v3007_v0  ;;  %v4470_v12 = vrot.slane %v5829_v8, 1  ;;  %v9585_v32 = vld [vmem:[#allocation56_spill] sm:$0xff]  ;;  %v5073_v11 = vsel %vm2795_vm12, %v5041_v14, %v8697_v60  ;;  %v5846_v0 = vcombine.low %v3484_v48, %v8854_v58  ;;  %v2557_v47 = vshll.u32 %v5681_v41, 16  ;;  %v1253_v14 = vld [vmem:[#allocation2 + $0x12c] sm:$0xe] }
 0x218   :  { %v8829_v26 = vpop.permute.xlu1 %4608  ;;  %v2844_v10 = vsel %vm2828_vm13, %v2811_v31, %v9585_v32  ;;  %v4475_v42 = vsel %vm1657_vm9, %v4473_v27, %v4474_v52  ;;  %v5105_v56 = vsel %vm2828_vm13, %v5073_v11, %v8713_v54  ;;  %v5845_v18 = vcombine.low %v3482_v46, %v8873_v9  ;;  %v8907_v27 = vld [vmem:[#allocation2 + $0x188] ss:$0 sps:$4 sm:$0x11]   ;;  %v1252_v11 = vld [vmem:[#allocation2 + $0x120] sm:$0xe] }
 0x219   :  { %v5007_v17 = vpop.permute.xlu0 %5006  ;;  %v2571_v39 = vrot.slane %v2569_v4, 1  ;;  %v5137_v8 = vsel %vm2861_vm14, %v5105_v56, %v8728_v6  ;;  %v2555_v61 = vshrl.u32 %v5681_v41, 16  ;;  %v2559_v35 = vrot.slane %v2557_v47, 1  ;;  %v3519_v46 = vld [vmem:[#allocation2 + $0x18c] sm:$0xe] }
 0x21a   :  { %3996 = vrot.lane.b32.xlu1 %v3963_v40, %s6314_s16  ;;  %v5263_v45 = vsel %vm2993_vm3, %v5231_v16, %v5007_v17  ;;  %v4472_v40 = vsel %vm1657_vm9, %v4470_v12, %v4471_v34  ;;  %v8892_v17 = vld [vmem:[#allocation2 + $0x194] ss:$0 sps:$4 sm:$0x11]   ;;  %v2562_v29 = vshll.u32 %v8884_v3, 16  ;;  %v4821_v52 = vshll.u32 %v5845_v18, 16 }
 0x21b   :  { %4380 = vrot.lane.b32.xlu0 %v4329_v53, %s6316_s30  ;;  %5991 = vmatprep.mubr.msk.bf16.mxu1 %vm3053_vm5, %v5263_v45  ;;  %v2567_v53 = vshrl.u32 %v5682_v23, 16  ;;  %v4833_v45 = vshll.u32 %v5846_v0, 16  ;;  %v4831_v7 = vshrl.u32 %v5846_v0, 16  ;;  %v4838_v48 = vshll.u32 %v8892_v17, 16  ;;  %v3518_v47 = vld [vmem:[#allocation2 + $0x180] sm:$0xe] }
 0x21c   :  { %v2617_v62 = vpop.permute.xlu1 %2616  ;;  %v5714_v12 = vcombine.low %v1253_v14, %v8833_v33  ;;  %v4819_v34 = vshrl.u32 %v5845_v18, 16  ;;  %v4823_v32 = vrot.slane %v4821_v52, 1 }
 0x21d   :  { %v8852_v63 = vpop.permute.xlu0 %3858  ;;  %v2572_v6 = vor.u32 %v2571_v39, %v2567_v53  ;;  %v4835_v21 = vrot.slane %v4833_v45, 1  ;;  %v3421_v45 = vld [vmem:[#allocation2 + $0x18c] sm:$0xf] }
 0x21e   :  { %4108 = vrot.lane.b32.xlu1 %v8770_v50, %s6315_s25  ;;  %v2877_v50 = vsel %vm2861_vm14, %v2844_v10, %v9586_v25  ;;  %v4826_v10 = vshll.u32 %v8907_v27, 16 }
 0x21f   :  { %2244 = vrot.lane.b32.xlu0 %v2211_v15, %s6317_s13  ;;  %v2910_v60 = vsel %vm2894_vm15, %v2877_v50, %v9587_v44  ;;  %v2576_v15 = vrot.slane %v2574_v22, 1  ;;  %v4836_v25 = vor.u32 %v4835_v21, %v4831_v7  ;;  %v4840_v50 = vrot.slane %v4838_v48, 1  ;;  %v3358_v22 = vld [vmem:[#allocation2 + $0x18c] sm:$0xf]  ;;  %v8958_v7 = vld [vmem:[#allocation2 + $0x19c] sm:$0xf] }
 0x220   :  { %v4881_v28 = vpop.permute.xlu1 %4880  ;;  %v2943_v37 = vsel %vm2927_vm1, %v2910_v60, %v8818_v24  ;;  %v5169_v24 = vsel %vm2894_vm15, %v5137_v8, %v8794_v55  ;;  %v2721_v44 = vrot.slane %v5714_v12, 1  ;;  %v4824_v60 = vor.u32 %v4823_v32, %v4819_v34  ;;  %v8939_v8 = vld [vmem:[#allocation2 + $0x190] sm:$0xf] }
 0x221   :  { %v8878_v38 = vpop.permute.xlu0 %3860  ;;  %v2976_v54 = vsel %vm2960_vm2, %v2943_v37, %v2617_v62  ;;  %v5201_v62 = vsel %vm2927_vm1, %v5169_v24, %v8829_v26  ;;  %v2560_v26 = vor.u32 %v2559_v35, %v2555_v61  ;;  %v2577_v4 = vsel %vm1384_vm6, %v2572_v6, %v2576_v15  ;;  %v6252_v61 = vld [vmem:[#allocation2 + $0x188] ss:$0 sps:$4 sm:$0x11]  }
 0x222   :  { %2242 = vrot.lane.b32.xlu1 %v2208_v43, %s6317_s13  ;;  %v5233_v55 = vsel %vm2960_vm2, %v5201_v62, %v4881_v28  ;;  %v3357_v28 = vld [vmem:[#allocation2 + $0x184] sm:$0xf]  ;;  %v4828_v56 = vrot.slane %v4826_v10, 1  ;;  %v4841_v39 = vsel %vm1384_vm6, %v4836_v25, %v4840_v50  ;;  %v5877_v24 = vcombine.low %v3518_v47, %v8873_v9 }
 0x223   :  { %4508 = vrot.lane.b32.xlu0 %v4475_v42, %s6317_s13  ;;  %v4986_v15 = vrot.slane %v8892_v17, 1  ;;  %v5799_v9 = vcombine.low %v3421_v45, %v8939_v8  ;;  %v3826_v48 = vshll.u32 %v6252_v61, 16 }
 0x224   :  { %v2745_v16 = vpop.permute.xlu1 %2744  ;;  %v4829_v35 = vsel %vm1384_vm6, %v4824_v60, %v4828_v56  ;;  %v4982_v21 = vrot.slane %v5877_v24, 1  ;;  %v3391_v60 = vld [vmem:[#allocation2 + $0x18c] sm:$0xe] }
 0x225   :  { %v3009_v20 = vsel %vm2993_vm3, %v2976_v54, %v2745_v16  ;;  %v8897_v51 = vpop.permute.xlu0 %3988  ;;  %v8935_v54 = vld [vmem:[#allocation2 + $0x190] sm:$0xf]  ;;  %v3390_v16 = vld [vmem:[#allocation2 + $0x180] sm:$0xe]  ;;  %v1189_v24 = vld [vmem:[#allocation2 + $0x12c] sm:$0xe] }
 0x226   :  { %4506 = vrot.lane.b32.xlu1 %v4472_v40, %s6317_s13  ;;  %5954 = vmatmul.mubr.msk.bf16.gmra.mrb[12].mxu0 %vm3053_vm5, %v3009_v20  ;;  %v2722_v40 = vrot.slane %v8868_v2, 1  ;;  %v2719_v20 = vrot.slane %v8884_v3, 1  ;;  %v8949_v14 = vcombine.low %v3358_v22, %v8935_v54  ;;  %v5783_v3 = vcombine.low %v3390_v16, %v3357_v28  ;;  %v8986_v22 = vld [vmem:[#allocation2 + $0x1a0] ss:$0 sps:$4 sm:$0x11]  }
 0x227   :  { %2356 = vrot.lane.b32.xlu0 %v5682_v23, %s6318_s26  ;;  %v2564_v23 = vrot.slane %v2562_v29, 1 }
 0x228   :  { %v5009_v59 = vpop.permute.xlu1 %5008  ;;  %v3833_v34 = vshll.u32 %v8949_v14, 16 }
 0x229   :  { %v5265_v57 = vsel %vm2993_vm3, %v5233_v55, %v5009_v59  ;;  %v8912_v31 = vpop.permute.xlu0 %4100  ;;  %v2565_v33 = vsel %vm1384_vm6, %v2560_v26, %v2564_v23  ;;  %v4983_v55 = vrot.slane %v8907_v27, 1  ;;  %v3423_v59 = vld [vmem:[#allocation2 + $0x198] sm:$0xf]  ;;  %v8961_v26 = vld [vmem:[#allocation2 + $0x194] ss:$0 sps:$4 sm:$0x11]  }
 0x22a   :  { %2354 = vrot.lane.b32.xlu1 %v5681_v41, %s6318_s26  ;;  %5992 = vmatmul.mubr.msk.bf16.gmra.mrb[12].mxu1 %vm3053_vm5, %v5265_v57  ;;  %v3356_v41 = vld [vmem:[#allocation2 + $0x180] sm:$0xf]  ;;  %v3965_v57 = vrot.slane %v6252_v61, 1  ;;  %v8967_v27 = vld [vmem:[#allocation2 + $0x194] ss:$0 sps:$4 sm:$0x11]   ;;  %v8973_v25 = vcombine.low %v3423_v59, %v8958_v7 }
 0x22b   :  { %4620 = vrot.lane.b32.xlu0 %v5846_v0, %s6318_s26  ;;  %v5713_v0 = vcombine.low %v1252_v11, %v8841_v30  ;;  %v8929_v53 = vcombine.low %v3356_v41, %v3357_v28  ;;  %v3964_v11 = vrot.slane %v5783_v3, 1  ;;  %v4984_v41 = vsel %vm1657_vm9, %v4982_v21, %v4983_v55  ;;  %v6284_v21 = vld [vmem:[#allocation2 + $0x13c] sm:$0xf] }
 0x22c   :  { %v8919_v43 = vpop.permute.xlu1 %3986  ;;  %v3828_v28 = vrot.slane %v3826_v48, 1  ;;  %v4338_v56 = vshll.u32 %v8967_v27, 16  ;;  %v4345_v16 = vshll.u32 %v8973_v25, 16  ;;  %v4343_v3 = vshrl.u32 %v8973_v25, 16 }
 0x22d   :  { %v8922_v42 = vpop.permute.xlu0 %4372  ;;  %v2718_v2 = vrot.slane %v5713_v0, 1  ;;  %v3821_v29 = vshll.u32 %v8929_v53, 16  ;;  %v3819_v17 = vshrl.u32 %v8929_v53, 16  ;;  %v3831_v0 = vshrl.u32 %v8949_v14, 16 }
 0x22e   :  { %4618 = vrot.lane.b32.xlu1 %v5845_v18, %s6318_s26  ;;  %v5878_v18 = vcombine.low %v3519_v46, %v8854_v58  ;;  %v2723_v58 = vsel %vm1657_vm9, %v2721_v44, %v2722_v40  ;;  %v3838_v46 = vshll.u32 %v8961_v26, 16  ;;  %v3835_v44 = vrot.slane %v3833_v34, 1 }
 0x22f   :  { %2628 = vrot.lane.b32.xlu0 %v2577_v4, %s6319_s6  ;;  %v2720_v23 = vsel %vm1657_vm9, %v2718_v2, %v2719_v20  ;;  %v3823_v12 = vrot.slane %v3821_v29, 1  ;;  %v4333_v4 = vshll.u32 %v5799_v9, 16  ;;  %v3966_v47 = vsel %vm1657_vm9, %v3964_v11, %v3965_v57  ;;  %v1190_v2 = vld [vmem:[#allocation2 + $0x138] sm:$0xe] }
 0x230   :  { %v8931_v37 = vpop.permute.xlu1 %4098  ;;  %v4985_v6 = vrot.slane %v5878_v18, 1  ;;  %v5784_v20 = vcombine.low %v3391_v60, %v8935_v54  ;;  %v4340_v29 = vrot.slane %v4338_v56, 1  ;;  %v4347_v55 = vrot.slane %v4345_v16, 1  ;;  %v6285_v54 = vld [vmem:[#allocation2 + $0x130] sm:$0xf] }
 0x231   :  { %v8937_v30 = vpop.permute.xlu0 %2236  ;;  %v4335_v18 = vrot.slane %v4333_v4, 1  ;;  %v4350_v59 = vshll.u32 %v8986_v22, 16  ;;  %v5668_v48 = vcombine.low %v1190_v2, %v6284_v21  ;;  %v3456_v11 = vld [vmem:[#allocation2 + $0x198] sm:$0xe]  ;;  %v9593_v16 = vld [vmem:[#allocation45_spill] sm:$0xff] }
 0x232   :  { %2626 = vrot.lane.b32.xlu1 %v2565_v33, %s6319_s6  ;;  %v4987_v10 = vsel %vm1657_vm9, %v4985_v6, %v4986_v15  ;;  %v3824_v33 = vor.u32 %v3823_v12, %v3819_v17  ;;  %v5045_v17 = vsel %vm2762_vm11, %v8223_v19, %v8878_v38  ;;  %v3967_v34 = vrot.slane %v5784_v20, 1  ;;  %v9588_v4 = vld [vmem:[#allocation23_spill] sm:$0xff]  ;;  %v9590_v56 = vld [vmem:[#allocation30_spill] sm:$0xff]  ;;  %v9591_v19 = vld [vmem:[#allocation16_spill] sm:$0xff] }
 0x233   :  { %4892 = vrot.lane.b32.xlu0 %v4841_v39, %s6319_s6  ;;  %v4331_v39 = vshrl.u32 %v5799_v9, 16  ;;  %v2215_v60 = vrot.slane %v5668_v48, 1  ;;  %v2782_v38 = vsel %vm2762_vm11, %v9591_v19, %v9590_v56  ;;  %v9594_v20 = vld [vmem:[#allocation53_spill] sm:$0xff]  ;;  %v1222_v48 = vld [vmem:[#allocation2 + $0x144] sm:$0xf]  ;;  %v5043_v19 = vsel %vm2762_vm11, %v8172_v36, %v8852_v63 }
 0x234   :  { %v8951_v62 = vpop.permute.xlu1 %4370  ;;  %v3829_v61 = vsel %vm1384_vm6, %v3824_v33, %v3828_v28  ;;  %v2815_v2 = vsel %vm2795_vm12, %v2782_v38, %v9593_v16  ;;  %v4480_v36 = vrot.slane %v8986_v22, 1  ;;  %v1220_v63 = vld [vmem:[#allocation2 + $0x138] sm:$0xf] }
 0x235   :  { %v8955_v52 = vpop.permute.xlu0 %4500  ;;  %v4336_v15 = vor.u32 %v4335_v18, %v4331_v39 }
 0x236   :  { %4890 = vrot.lane.b32.xlu1 %v4829_v35, %s6319_s6  ;;  %v3836_v35 = vor.u32 %v3835_v44, %v3831_v0  ;;  %v4348_v0 = vor.u32 %v4347_v55, %v4343_v3  ;;  %v4352_v44 = vrot.slane %v4350_v59, 1  ;;  %v9596_v55 = vld [vmem:[#allocation68_spill] sm:$0xff] }
 0x237   :  { %2756 = vrot.lane.b32.xlu0 %v2723_v58, %s6320_s11  ;;  %v3840_v58 = vrot.slane %v3838_v46, 1  ;;  %v4341_v33 = vsel %vm1384_vm6, %v4336_v15, %v4340_v29  ;;  %v9595_v15 = vld [vmem:[#allocation58_spill] sm:$0xff] }
 0x238   :  { %v8969_v32 = vpop.permute.xlu1 %4498  ;;  %v2848_v3 = vsel %vm2828_vm13, %v2815_v2, %v9595_v15  ;;  %v9072_v2 = vld [vmem:[#allocation2 + $0x1a8] sm:$0xf] }
 0x239   :  { %v8975_v50 = vpop.permute.xlu0 %2348  ;;  %v3841_v12 = vsel %vm1384_vm6, %v3836_v35, %v3840_v58  ;;  %v3455_v35 = vld [vmem:[#allocation2 + $0x18c] sm:$0xe]  ;;  %v5832_v58 = vcombine.low %v3456_v11, %v8958_v7  ;;  %v4353_v11 = vsel %vm1384_vm6, %v4348_v0, %v4352_v44 }
 0x23a   :  { %2754 = vrot.lane.b32.xlu1 %v2720_v23, %s6320_s11  ;;  %v5667_v23 = vcombine.low %v1189_v24, %v6285_v54  ;;  %v9029_v54 = vld [vmem:[#allocation2 + $0x148] sm:$0xf]  ;;  %v5831_v56 = vcombine.low %v3455_v35, %v8939_v8 }
 0x23b   :  { %5020 = vrot.lane.b32.xlu0 %v4987_v10, %s6320_s11  ;;  %v3968_v10 = vrot.slane %v8961_v26, 1  ;;  %v6286_v26 = vld [vmem:[#allocation2 + $0x140] ss:$0 sps:$4 sm:$0x11]   ;;  %v4479_v44 = vrot.slane %v5832_v58, 1 }
 0x23c   :  { %v8983_v40 = vpop.permute.xlu1 %2346  ;;  %v2216_v18 = vrot.slane %v6286_v26, 1  ;;  %v2212_v29 = vrot.slane %v5667_v23, 1 }
 0x23d   :  { %v8989_v45 = vpop.permute.xlu0 %4612  ;;  %v3969_v21 = vsel %vm1657_vm9, %v3967_v34, %v3968_v10  ;;  %v4481_v58 = vsel %vm1657_vm9, %v4479_v44, %v4480_v36  ;;  %v1255_v36 = vld [vmem:[#allocation2 + $0x144] sm:$0xe] }
 0x23e   :  { %5018 = vrot.lane.b32.xlu1 %v4984_v41, %s6320_s11  ;;  %v9589_v41 = vld [vmem:[#allocation7_spill] sm:$0xff] }
 0x23f   :  { %3998 = vrot.lane.b32.xlu0 %v3966_v47, %s6314_s16  ;;  %v2780_v28 = vsel %vm2762_vm11, %v9589_v41, %v9588_v4  ;;  %v9592_v47 = vld [vmem:[#allocation38_spill] sm:$0xff] }
 0x240   :  { %v8995_v6 = vpop.permute.xlu1 %4610  ;;  %v6287_v4 = vld [vmem:[#allocation2 + $0x134] ss:$0 sps:$4 sm:$0x11]  }
 0x241   :  { %v2621_v57 = vpop.permute.xlu0 %2620  ;;  %v2213_v41 = vrot.slane %v6287_v4, 1 }
 0x242   :  { %3870 = vrot.lane.b32.xlu1 %v3829_v61, %s6313_s5  ;;  %v5077_v61 = vsel %vm2795_vm12, %v5045_v17, %v8897_v51  ;;  %v9597_v51 = vld [vmem:[#allocation73_spill] sm:$0xff] }
 0x243   :  { %4110 = vrot.lane.b32.xlu0 %v5799_v9, %s6315_s25  ;;  %v2813_v9 = vsel %vm2795_vm12, %v2780_v28, %v9592_v47  ;;  %v2881_v17 = vsel %vm2861_vm14, %v2848_v3, %v9597_v51  ;;  %v5109_v28 = vsel %vm2828_vm13, %v5077_v61, %v8912_v31  ;;  %v9049_v31 = vcombine.low %v1222_v48, %v9029_v54  ;;  %v6266_v48 = vld [vmem:[#allocation2 + $0x140] ss:$0 sps:$4 sm:$0x11]  }
 0x244   :  { %v2619_v46 = vpop.permute.xlu1 %2618  ;;  %v2846_v24 = vsel %vm2828_vm13, %v2813_v9, %v9594_v20  ;;  %v2914_v34 = vsel %vm2894_vm15, %v2881_v17, %v8937_v30  ;;  %v5075_v30 = vsel %vm2795_vm12, %v5043_v19, %v8919_v43  ;;  %v5141_v47 = vsel %vm2861_vm14, %v5109_v28, %v8922_v42 }
 0x245   :  { %v4885_v39 = vpop.permute.xlu0 %4884  ;;  %v2879_v59 = vsel %vm2861_vm14, %v2846_v24, %v9596_v55  ;;  %v2947_v0 = vsel %vm2927_vm1, %v2914_v34, %v8975_v50  ;;  %v9058_v50 = vld [vmem:[#allocation2 + $0x13c] sm:$0xf]  ;;  %v5107_v38 = vsel %vm2828_vm13, %v5075_v30, %v8931_v37  ;;  %v5173_v22 = vsel %vm2894_vm15, %v5141_v47, %v8955_v52  ;;  %v3488_v37 = vld [vmem:[#allocation2 + $0x1a4] sm:$0xf] }
 0x246   :  { %3872 = vrot.lane.b32.xlu1 %v3841_v12, %s6313_s5  ;;  %v9598_v12 = vld [vmem:[#allocation82_spill] sm:$0xff]  ;;  %v2980_v8 = vsel %vm2960_vm2, %v2947_v0, %v2621_v57  ;;  %v5139_v57 = vsel %vm2861_vm14, %v5107_v38, %v8951_v62  ;;  %v2214_v16 = vsel %vm1657_vm9, %v2212_v29, %v2213_v41  ;;  %v4477_v62 = vrot.slane %v8967_v27, 1 }
 0x247   :  { %4382 = vrot.lane.b32.xlu0 %v4341_v33, %s6316_s30  ;;  %v2912_v7 = vsel %vm2894_vm15, %v2879_v59, %v9598_v12  ;;  %v2217_v33 = vsel %vm1657_vm9, %v2215_v60, %v2216_v18  ;;  %v5171_v42 = vsel %vm2894_vm15, %v5139_v57, %v8969_v32  ;;  %v5683_v52 = vcombine.low %v1220_v63, %v9058_v50  ;;  %v3486_v29 = vld [vmem:[#allocation2 + $0x198] sm:$0xf] }
 0x248   :  { %v4883_v23 = vpop.permute.xlu1 %4882  ;;  %v2945_v60 = vsel %vm2927_vm1, %v2912_v7, %v8983_v40  ;;  %v5203_v20 = vsel %vm2927_vm1, %v5171_v42, %v8995_v6  ;;  %v4476_v32 = vrot.slane %v5831_v56, 1  ;;  %v9094_v6 = vld [vmem:[#allocation2 + $0x19c] sm:$0xf]  ;;  %v2591_v51 = vshrl.u32 %v9049_v31, 16 }
 0x249   :  { %v2749_v10 = vpop.permute.xlu0 %2748  ;;  %v2978_v43 = vsel %vm2960_vm2, %v2945_v60, %v2619_v46  ;;  %v5205_v46 = vsel %vm2927_vm1, %v5173_v22, %v8989_v45  ;;  %v9088_v45 = vld [vmem:[#allocation2 + $0x14c] ss:$0 sps:$4 sm:$0x11]   ;;  %v5235_v61 = vsel %vm2960_vm2, %v5203_v20, %v4883_v23  ;;  %v2581_v55 = vshll.u32 %v5683_v52, 16 }
 0x24a   :  { %4000 = vrot.lane.b32.xlu1 %v3969_v21, %s6314_s16  ;;  %v3013_v40 = vsel %vm2993_vm3, %v2980_v8, %v2749_v10  ;;  %v5237_v24 = vsel %vm2960_vm2, %v5205_v46, %v4885_v39  ;;  %v5848_v39 = vcombine.low %v3488_v37, %v9072_v2  ;;  %v4478_v59 = vsel %vm1657_vm9, %v4476_v32, %v4477_v62  ;;  %v9110_v23 = vld [vmem:[#allocation2 + $0x1ac] ss:$0 sps:$4 sm:$0x11]  }
 0x24b   :  { %4384 = vrot.lane.b32.xlu0 %v4353_v11, %s6316_s30  ;;  %v5847_v21 = vcombine.low %v3486_v29, %v9094_v6  ;;  %v2598_v7 = vshll.u32 %v9088_v45, 16  ;;  %v2579_v41 = vshrl.u32 %v5683_v52, 16  ;;  %v2583_v28 = vrot.slane %v2581_v55, 1 }
 0x24c   :  { %v2747_v9 = vpop.permute.xlu1 %2746  ;;  %v4857_v11 = vshll.u32 %v5848_v39, 16  ;;  %v2586_v34 = vshll.u32 %v6266_v48, 16  ;;  %v4855_v44 = vshrl.u32 %v5848_v39, 16  ;;  %v4862_v60 = vshll.u32 %v9110_v23, 16 }
 0x24d   :  { %v3011_v26 = vsel %vm2993_vm3, %v2978_v43, %v2747_v9  ;;  %v5013_v18 = vpop.permute.xlu0 %5012  ;;  %v4845_v56 = vshll.u32 %v5847_v21, 16  ;;  %v2600_v0 = vrot.slane %v2598_v7, 1  ;;  %v2584_v63 = vor.u32 %v2583_v28, %v2579_v41 }
 0x24e   :  { %4112 = vrot.lane.b32.xlu1 %v8973_v25, %s6315_s25  ;;  %5957 = vmatprep.mubr.msk.bf16.mxu0 %vm3053_vm5, %v3011_v26  ;;  %v2593_v25 = vshll.u32 %v9049_v31, 16  ;;  %v5269_v27 = vsel %vm2993_vm3, %v5237_v24, %v5013_v18  ;;  %v4859_v30 = vrot.slane %v4857_v11, 1  ;;  %v4843_v38 = vshrl.u32 %v5847_v21, 16  ;;  %v1254_v26 = vld [vmem:[#allocation2 + $0x138] sm:$0xe] }
 0x24f   :  { %5958 = vmatmul.mubr.msk.bf16.gmra.mrb[16].mxu0 %vm3053_vm5, %v3013_v40  ;;  %2248 = vrot.lane.b32.xlu0 %v2217_v33, %s6317_s13  ;;  %v6268_v33 = vld [vmem:[#allocation2 + $0x1a0] ss:$0 sps:$4 sm:$0x11]   ;;  %v4847_v47 = vrot.slane %v4845_v56, 1  ;;  %v4864_v22 = vrot.slane %v4862_v60, 1  ;;  %v5716_v18 = vcombine.low %v1255_v36, %v9029_v54  ;;  %v5715_v62 = vcombine.low %v1254_v26, %v9058_v50  ;;  %v9599_v56 = vld [vmem:[#allocation29_spill] sm:$0xff] }
 0x250   :  { %v5011_v35 = vpop.permute.xlu1 %5010  ;;  %v2595_v17 = vrot.slane %v2593_v25, 1  ;;  %v4850_v43 = vshll.u32 %v6268_v33, 16  ;;  %v4860_v57 = vor.u32 %v4859_v30, %v4855_v44  ;;  %v2728_v32 = vrot.slane %v9088_v45, 1  ;;  %v3520_v25 = vld [vmem:[#allocation2 + $0x198] sm:$0xe]  ;;  %v9606_v26 = vld [vmem:[#allocation60_spill] sm:$0xff] }
 0x251   :  { %v5267_v15 = vsel %vm2993_vm3, %v5235_v61, %v5011_v35  ;;  %v9098_v3 = vpop.permute.xlu0 %3990  ;;  %v4848_v42 = vor.u32 %v4847_v47, %v4843_v38  ;;  %v2727_v24 = vrot.slane %v5716_v18, 1  ;;  %v2724_v35 = vrot.slane %v5715_v62, 1  ;;  %v9162_v60 = vld [vmem:[%s9427_s2] ss:$0 sm:$0xff]  ;;  %v9601_v36 = vld [vmem:[#allocation22_spill] sm:$0xff]  ;;  %s6321_s2 = smov [#allocation3]  }
 0x252   :  { %2246 = vrot.lane.b32.xlu1 %v2214_v16, %s6317_s13  ;;  %5995 = vmatprep.mubr.msk.bf16.mxu1 %vm3053_vm5, %v5267_v15  ;;  %v2596_v10 = vor.u32 %v2595_v17, %v2591_v51  ;;  %v4852_v46 = vrot.slane %v4850_v43, 1  ;;  %v4865_v20 = vsel %vm1384_vm6, %v4860_v57, %v4864_v22  ;;  %v4992_v7 = vrot.slane %v9110_v23, 1  ;;  %v9600_v23 = vld [vmem:[#allocation15_spill] sm:$0xff]  ;;  %s5565_s16 = sshll.u32 %s6321_s2, 4  ;;  %s5566_s16 = int_to_ptr.vmem [resolvable:$true] %s5565_s16 }
 0x253   :  { %5996 = vmatmul.mubr.msk.bf16.gmra.mrb[16].mxu1 %vm3053_vm5, %v5269_v27  ;;  %4512 = vrot.lane.b32.xlu0 %v4481_v58, %s6317_s13  ;;  %v2725_v27 = vrot.slane %v6266_v48, 1  ;;  %v5879_v58 = vcombine.low %v3520_v25, %v9094_v6  ;;  %v2729_v50 = vsel %vm1657_vm9, %v2727_v24, %v2728_v32  ;;  %v9604_v47 = vld [vmem:[#allocation47_spill] sm:$0xff]  ;;  %s6288_s25 = scalar_lea.vmem %s5566_s16, 32  ;;  %p6293_p1 = scmp.lt.s32.totalorder %s5566_s16, %s5566_s16 }
 0x254   :  { %v9107_v12 = vpop.permute.xlu1 %3862  ;;  %v2601_v40 = vsel %vm1384_vm6, %v2596_v10, %v2600_v0  ;;  %v4853_v61 = vsel %vm1384_vm6, %v4848_v42, %v4852_v46  ;;  %v2784_v0 = vsel %vm2762_vm11, %v9600_v23, %v9599_v56  ;;  %p6289_p0 = scmp.ne.s32.totalorder %s5566_s16, %s6288_s25  ;;  %p6294_p2 = scmp.lt.s32.totalorder %s6288_s25, %s6288_s25 }
 0x255   :  { %v9112_v4 = vpop.permute.xlu0 %4102  ;;  %v2726_v45 = vsel %vm1657_vm9, %v2724_v35, %v2725_v27  ;;  %v4988_v55 = vrot.slane %v5879_v58, 1 }
 0x256   :  { %4510 = vrot.lane.b32.xlu1 %v4478_v59, %s6317_s13  ;;  %v4989_v59 = vrot.slane %v6268_v33, 1  ;;  %p6295_p3 = por %p6294_p2, %p6293_p1 }
 0x257   :  { %2360 = vrot.lane.b32.xlu0 %v9049_v31, %s6318_s26  ;;  %v2588_v31 = vrot.slane %v2586_v34, 1 }
 0x258   :  { %v9117_v19 = vpop.permute.xlu1 %3864  ;;  %v4990_v6 = vsel %vm1657_vm9, %v4988_v55, %v4989_v59  ;;  %p6296_p4 = pnand %p6295_p3, %p6289_p0 }
 0x259   :  { %v9120_v8 = vpop.permute.xlu0 %4374  ;;  %v2589_v37 = vsel %vm1384_vm6, %v2584_v63, %v2588_v31  ;;  %v5049_v33 = vsel %vm2762_vm11, %v8533_v1, %v9117_v19  ;;  %v9602_v63 = vld [vmem:[#allocation18_spill] sm:$0xff] }
 0x25a   :  { %2358 = vrot.lane.b32.xlu1 %v5683_v52, %s6318_s26 }
 0x25b   :  { %4624 = vrot.lane.b32.xlu0 %v5848_v39, %s6318_s26  ;;  %v3521_v39 = vld [vmem:[#allocation2 + $0x1a4] sm:$0xe] }
 0x25c   :  { %v3993_v9 = vpop.permute.xlu1 %3992 }
 0x25d   :  { %v9126_v16 = vpop.permute.xlu0 %4376  ;;  %v5081_v44 = vsel %vm2795_vm12, %v5049_v33, %v3993_v9  ;;  %v9605_v9 = vld [vmem:[#allocation55_spill] sm:$0xff] }
 0x25e   :  { %4622 = vrot.lane.b32.xlu1 %v5847_v21, %s6318_s26  ;;  %v5880_v21 = vcombine.low %v3521_v39, %v9072_v2  ;;  %v5047_v2 = vsel %vm2762_vm11, %v8512_v5, %v9107_v12  ;;  %v2786_v5 = vsel %vm2762_vm11, %v9602_v63, %v9601_v36  ;;  %v9603_v12 = vld [vmem:[#allocation40_spill] sm:$0xff] }
 0x25f   :  { %2632 = vrot.lane.b32.xlu0 %v2601_v40, %s6319_s6  ;;  %v2817_v31 = vsel %vm2795_vm12, %v2784_v0, %v9603_v12  ;;  %v2819_v43 = vsel %vm2795_vm12, %v2786_v5, %v9604_v47  ;;  %v5079_v57 = vsel %vm2795_vm12, %v5047_v2, %v9098_v3 }
 0x260   :  { %v4105_v52 = vpop.permute.xlu1 %4104  ;;  %v4991_v48 = vrot.slane %v5880_v21, 1  ;;  %v2850_v40 = vsel %vm2828_vm13, %v2817_v31, %v9605_v9  ;;  %v2852_v18 = vsel %vm2828_vm13, %v2819_v43, %v9606_v26  ;;  %v5111_v46 = vsel %vm2828_vm13, %v5079_v57, %v9112_v4 }
 0x261   :  { %v2241_v54 = vpop.permute.xlu0 %2240  ;;  %v5113_v1 = vsel %vm2828_vm13, %v5081_v44, %v4105_v52  ;;  %v5143_v32 = vsel %vm2861_vm14, %v5111_v46, %v9120_v8 }
 0x262   :  { %2630 = vrot.lane.b32.xlu1 %v2589_v37, %s6319_s6  ;;  %v4993_v28 = vsel %vm1657_vm9, %v4991_v48, %v4992_v7  ;;  %v9607_v37 = vld [vmem:[#allocation70_spill] sm:$0xff]  ;;  %v5145_v3 = vsel %vm2861_vm14, %v5113_v1, %v9126_v16 }
 0x263   :  { %4896 = vrot.lane.b32.xlu0 %v4865_v20, %s6319_s6  ;;  %v2883_v42 = vsel %vm2861_vm14, %v2850_v40, %v9607_v37  ;;  %v9608_v20 = vld [vmem:[#allocation75_spill] sm:$0xff] }
 0x264   :  { %v2239_v29 = vpop.permute.xlu1 %2238  ;;  %v2885_v24 = vsel %vm2861_vm14, %v2852_v18, %v9608_v20 }
 0x265   :  { %v4505_v15 = vpop.permute.xlu0 %4504  ;;  %v2916_v27 = vsel %vm2894_vm15, %v2883_v42, %v2239_v29  ;;  %v2918_v4 = vsel %vm2894_vm15, %v2885_v24, %v2241_v54 }
 0x266   :  { %4894 = vrot.lane.b32.xlu1 %v4853_v61, %s6319_s6  ;;  %v5177_v58 = vsel %vm2894_vm15, %v5145_v3, %v4505_v15 }
 0x267   :  { %2760 = vrot.lane.b32.xlu0 %v2729_v50, %s6320_s11 }
 0x268   :  { %v4503_v51 = vpop.permute.xlu1 %4502 }
 0x269   :  { %v2353_v17 = vpop.permute.xlu0 %2352  ;;  %v5175_v55 = vsel %vm2894_vm15, %v5143_v32, %v4503_v51 }
 0x26a   :  { %2758 = vrot.lane.b32.xlu1 %v2726_v45, %s6320_s11  ;;  %v2951_v16 = vsel %vm2927_vm1, %v2918_v4, %v2353_v17 }
 0x26c   :  { %v2351_v11 = vpop.permute.xlu1 %2350 }
 0x26d   :  { %v4617_v41 = vpop.permute.xlu0 %4616  ;;  %v2949_v8 = vsel %vm2927_vm1, %v2916_v27, %v2351_v11 }
 0x26e   :  { %5022 = vrot.lane.b32.xlu1 %v4990_v6, %s6320_s11  ;;  %v5209_v7 = vsel %vm2927_vm1, %v5177_v58, %v4617_v41 }
 0x270   :  { %v4615_v34 = vpop.permute.xlu1 %4614 }
 0x271   :  { %v2625_v10 = vpop.permute.xlu0 %2624  ;;  %v5207_v44 = vsel %vm2927_vm1, %v5175_v55, %v4615_v34  ;;  %v9611_v55 = vld [vmem:[#allocation33_spill] sm:$0xff] }
 0x272   :  { %5024 = vrot.lane.b32.xlu1 %v4993_v28, %s6320_s11  ;;  %v2984_v6 = vsel %vm2960_vm2, %v2951_v16, %v2625_v10 }
 0x274   :  { %v2623_v30 = vpop.permute.xlu1 %2622 }
 0x275   :  { %v5943_v19 = vpop.f32.mrb[0].mxu0  ;;  %v4889_v38 = vpop.permute.xlu0 %4888  ;;  %v2982_v28 = vsel %vm2960_vm2, %v2949_v8, %v2623_v30  ;;  %v9612_v8 = vld [vmem:[#allocation20_spill] sm:$0xff] }
 0x276   :  { %v3124_v22 = vpop.f32.mrb[1].mxu0  ;;  %v3133_v25 = vadd.f32 %v5943_v19, %v9162_v60  ;;  %v5241_v41 = vsel %vm2960_vm2, %v5209_v7, %v4889_v38  ;;  %v2790_v16 = vsel %vm2762_vm11, %v9612_v8, %v9611_v55 }
 0x277   :  { %v3125_v62 = vadd.f32 %v9162_v60, %v3124_v22  ;;  %v5944_v52 = vpop.f32.mrb[2].mxu0 }
 0x278   :  { %v4887_v61 = vpop.permute.xlu1 %4886  ;;  %v3127_v35 = vpop.f32.mrb[3].mxu0  ;;  %v3136_v59 = vadd.f32 %v5944_v52, %v9162_v60  ;;  %v3253_v2 = vmax.f32 %v3133_v25, 0.0 }
 0x279   :  { %v3128_v50 = vadd.f32 %v9162_v60, %v3127_v35  ;;  %v5981_v39 = vpop.f32.mrb[0].mxu1  ;;  %v2753_v45 = vpop.permute.xlu0 %2752  ;;  %v3251_v29 = vmax.f32 %v3125_v62, 0.0  ;;  %v5239_v31 = vsel %vm2960_vm2, %v5207_v44, %v4887_v61 }
 0x27a   :  { %v5348_v21 = vpop.f32.mrb[1].mxu1  ;;  %v3017_v11 = vsel %vm2993_vm3, %v2984_v6, %v2753_v45  ;;  %v5357_v56 = vadd.f32 %v5981_v39, %v9162_v60  ;;  %v3254_v36 = vmax.f32 %v3136_v59, 0.0  ;;  %v9610_v39 = vld [vmem:[#allocation17_spill] sm:$0xff] }
 0x27b   :  { %v3252_v48 = vmax.f32 %v3128_v50, 0.0  ;;  %v5349_v54 = vadd.f32 %v9162_v60, %v5348_v21  ;;  %v5982_v15 = vpop.f32.mrb[2].mxu1  ;;  %v9609_v50 = vld [vmem:[#allocation31_spill] sm:$0xff] }
 0x27c   :  { %v2751_v51 = vpop.permute.xlu1 %2750  ;;  %v5351_v33 = vpop.f32.mrb[3].mxu1  ;;  %v5360_v5 = vadd.f32 %v5982_v15, %v9162_v60  ;;  %v5477_v47 = vmax.f32 %v5357_v56, 0.0  ;;  %v2788_v45 = vsel %vm2762_vm11, %v9610_v39, %v9609_v50  ;;  %v9613_v21 = vld [vmem:[#allocation43_spill] sm:$0xff] }
 0x27d   :  { %v3283_v17 = vadd.f32 %v3252_v48, %v3251_v29  ;;  %v3015_v23 = vsel %vm2993_vm3, %v2982_v28, %v2751_v51  ;;  %v5352_v10 = vadd.f32 %v9162_v60, %v5351_v33  ;;  %v5017_v0 = vpop.permute.xlu0 %5016  ;;  %v5475_v63 = vmax.f32 %v5349_v54, 0.0  ;;  %v9614_v29 = vld [vmem:[#allocation48_spill] sm:$0xff]  ;;  %v9615_v28 = vld [vmem:[#allocation57_spill] sm:$0xff]  ;;  %v9616_v51 = vld [vmem:[#allocation62_spill] sm:$0xff] }
 0x27e   :  { %5961 = vmatprep.mubr.msk.bf16.mxu0 %vm3053_vm5, %v3015_v23  ;;  %v5273_v19 = vsel %vm2993_vm3, %v5241_v41, %v5017_v0  ;;  %v5478_v40 = vmax.f32 %v5360_v5, 0.0  ;;  %v2821_v6 = vsel %vm2795_vm12, %v2788_v45, %v9613_v21  ;;  %v2823_v48 = vsel %vm2795_vm12, %v2790_v16, %v9614_v29 }
 0x27f   :  { %v3284_v30 = vadd.f32 %v3283_v17, %v3253_v2  ;;  %v5476_v12 = vmax.f32 %v5352_v10, 0.0  ;;  %5962 = vmatmul.mubr.msk.bf16.gmra.mrb[20].mxu0 %vm3053_vm5, %v3017_v11  ;;  %v2854_v2 = vsel %vm2828_vm13, %v2821_v6, %v9615_v28  ;;  %v2856_v33 = vsel %vm2828_vm13, %v2823_v48, %v9616_v51  ;;  %v9617_v10 = vld [vmem:[#allocation72_spill] sm:$0xff] }
 0x280   :  { %v5015_v1 = vpop.permute.xlu1 %5014  ;;  %v2887_v0 = vsel %vm2861_vm14, %v2854_v2, %v9617_v10 }
 0x281   :  { %v5507_v43 = vadd.f32 %v5476_v12, %v5475_v63  ;;  %v5271_v34 = vsel %vm2993_vm3, %v5239_v31, %v5015_v1  ;;  %v3995_v9 = vpop.permute.xlu0 %3994  ;;  %v3285_v38 = vadd.f32 %v3284_v30, %v3254_v36  ;;  %v9618_v63 = vld [vmem:[#allocation76_spill] sm:$0xff] }
 0x282   :  { %5999 = vmatprep.mubr.msk.bf16.mxu1 %vm3053_vm5, %v5271_v34  ;;  %v2889_v5 = vsel %vm2861_vm14, %v2856_v33, %v9618_v63 }
 0x283   :  { %v5508_v57 = vadd.f32 %v5507_v43, %v5477_v47  ;;  %6000 = vmatmul.mubr.msk.bf16.gmra.mrb[20].mxu1 %vm3053_vm5, %v5273_v19 }
 0x284   :  { %v3867_v22 = vpop.permute.xlu1 %3866 }
 0x285   :  { %v4107_v26 = vpop.permute.xlu0 %4106  ;;  %v5509_v18 = vadd.f32 %v5508_v57, %v5478_v40  ;;  %v5051_v54 = vsel %vm2762_vm11, %v8722_v49, %v3867_v22 }
 0x286   :  { %v5083_v12 = vsel %vm2795_vm12, %v5051_v54, %v3995_v9 }
 0x287   :  { %v5115_v57 = vsel %vm2828_vm13, %v5083_v12, %v4107_v26 }
 0x288   :  { %v3869_v37 = vpop.permute.xlu1 %3868 }
 0x289   :  { %v9216_v42 = vpop.permute.xlu0 %4378  ;;  %v5053_v11 = vsel %vm2762_vm11, %v8738_v13, %v3869_v37 }
 0x28a   :  { %v5147_v21 = vsel %vm2861_vm14, %v5115_v57, %v9216_v42 }
 0x28c   :  { %v3997_v46 = vpop.permute.xlu1 %3996 }
 0x28d   :  { %v4381_v62 = vpop.permute.xlu0 %4380  ;;  %v5085_v49 = vsel %vm2795_vm12, %v5053_v11, %v3997_v46 }
 0x290   :  { %v4109_v52 = vpop.permute.xlu1 %4108 }
 0x291   :  { %v2245_v20 = vpop.permute.xlu0 %2244  ;;  %v5117_v13 = vsel %vm2828_vm13, %v5085_v49, %v4109_v52 }
 0x292   :  { %v2922_v19 = vsel %vm2894_vm15, %v2889_v5, %v2245_v20  ;;  %v5149_v45 = vsel %vm2861_vm14, %v5117_v13, %v4381_v62 }
 0x294   :  { %v2243_v24 = vpop.permute.xlu1 %2242 }
 0x295   :  { %v4509_v32 = vpop.permute.xlu0 %4508  ;;  %v2920_v22 = vsel %vm2894_vm15, %v2887_v0, %v2243_v24 }
 0x296   :  { %v5181_v6 = vsel %vm2894_vm15, %v5149_v45, %v4509_v32  ;;  %v9622_v45 = vld [vmem:[#allocation21_spill] sm:$0xff] }
 0x298   :  { %v9218_v3 = vpop.permute.xlu1 %4506 }
 0x299   :  { %v2357_v25 = vpop.permute.xlu0 %2356 }
 0x29a   :  { %v2955_v37 = vsel %vm2927_vm1, %v2922_v19, %v2357_v25 }
 0x29c   :  { %v2355_v61 = vpop.permute.xlu1 %2354 }
 0x29d   :  { %v9220_v35 = vpop.permute.xlu0 %4620  ;;  %v2953_v55 = vsel %vm2927_vm1, %v2920_v22, %v2355_v61 }
 0x29e   :  { %v5213_v28 = vsel %vm2927_vm1, %v5181_v6, %v9220_v35 }
 0x2a0   :  { %v9222_v27 = vpop.permute.xlu1 %4618 }
 0x2a1   :  { %v5947_v4 = vpop.f32.mrb[4].mxu0  ;;  %v2629_v58 = vpop.permute.xlu0 %2628 }
 0x2a2   :  { %v3140_v59 = vpop.f32.mrb[5].mxu0  ;;  %v3149_v17 = vadd.f32 %v5947_v4, %v9162_v60  ;;  %v2988_v26 = vsel %vm2960_vm2, %v2955_v37, %v2629_v58 }
 0x2a3   :  { %v3141_v15 = vadd.f32 %v9162_v60, %v3140_v59  ;;  %v5948_v7 = vpop.f32.mrb[6].mxu0 }
 0x2a4   :  { %v2627_v56 = vpop.permute.xlu1 %2626  ;;  %v3143_v23 = vpop.f32.mrb[7].mxu0  ;;  %v3152_v31 = vadd.f32 %v5948_v7, %v9162_v60  ;;  %v3257_v46 = vmax.f32 %v3149_v17, 0.0 }
 0x2a5   :  { %v3255_v44 = vmax.f32 %v3141_v15, 0.0  ;;  %v3144_v36 = vadd.f32 %v9162_v60, %v3143_v23  ;;  %v5985_v41 = vpop.f32.mrb[4].mxu1  ;;  %v4893_v30 = vpop.permute.xlu0 %4892  ;;  %v2986_v29 = vsel %vm2960_vm2, %v2953_v55, %v2627_v56 }
 0x2a6   :  { %v5364_v1 = vpop.f32.mrb[5].mxu1  ;;  %v5373_v50 = vadd.f32 %v5985_v41, %v9162_v60  ;;  %v3258_v8 = vmax.f32 %v3152_v31, 0.0  ;;  %v5245_v51 = vsel %vm2960_vm2, %v5213_v28, %v4893_v30 }
 0x2a7   :  { %v3286_v47 = vadd.f32 %v3285_v38, %v3255_v44  ;;  %v3256_v43 = vmax.f32 %v3144_v36, 0.0  ;;  %v5365_v34 = vadd.f32 %v9162_v60, %v5364_v1  ;;  %v5986_v40 = vpop.f32.mrb[6].mxu1 }
 0x2a8   :  { %v4891_v9 = vpop.permute.xlu1 %4890  ;;  %v5367_v4 = vpop.f32.mrb[7].mxu1  ;;  %v5376_v25 = vadd.f32 %v5986_v40, %v9162_v60  ;;  %v5481_v54 = vmax.f32 %v5373_v50, 0.0 }
 0x2a9   :  { %v3287_v52 = vadd.f32 %v3286_v47, %v3256_v43  ;;  %v5479_v39 = vmax.f32 %v5365_v34, 0.0  ;;  %v5368_v20 = vadd.f32 %v9162_v60, %v5367_v4  ;;  %v2757_v38 = vpop.permute.xlu0 %2756  ;;  %v9619_v4 = vld [vmem:[#allocation32_spill] sm:$0xff] }
 0x2aa   :  { %v3021_v62 = vsel %vm2993_vm3, %v2988_v26, %v2757_v38  ;;  %v5482_v32 = vmax.f32 %v5376_v25, 0.0  ;;  %v9621_v38 = vld [vmem:[#allocation34_spill] sm:$0xff] }
 0x2ab   :  { %v3288_v24 = vadd.f32 %v3287_v52, %v3257_v46  ;;  %v5510_v16 = vadd.f32 %v5509_v18, %v5479_v39  ;;  %v5480_v59 = vmax.f32 %v5368_v20, 0.0  ;;  %v5179_v18 = vsel %vm2894_vm15, %v5147_v21, %v9218_v3  ;;  %v9620_v52 = vld [vmem:[#allocation19_spill] sm:$0xff]  ;;  %v9623_v25 = vld [vmem:[#allocation46_spill] sm:$0xff]  ;;  %v9624_v21 = vld [vmem:[#allocation49_spill] sm:$0xff] }
 0x2ac   :  { %v2755_v48 = vpop.permute.xlu1 %2754  ;;  %v5211_v42 = vsel %vm2927_vm1, %v5179_v18, %v9222_v27  ;;  %v2792_v50 = vsel %vm2762_vm11, %v9620_v52, %v9619_v4  ;;  %v2794_v55 = vsel %vm2762_vm11, %v9622_v45, %v9621_v38  ;;  %v9625_v18 = vld [vmem:[#allocation59_spill] sm:$0xff] }
 0x2ad   :  { %v5511_v61 = vadd.f32 %v5510_v16, %v5480_v59  ;;  %v3019_v15 = vsel %vm2993_vm3, %v2986_v29, %v2755_v48  ;;  %v5021_v58 = vpop.permute.xlu0 %5020  ;;  %v3289_v7 = vadd.f32 %v3288_v24, %v3258_v8  ;;  %v5243_v33 = vsel %vm2960_vm2, %v5211_v42, %v4891_v9  ;;  %v9626_v42 = vld [vmem:[#allocation64_spill] sm:$0xff] }
 0x2ae   :  { %5965 = vmatprep.mubr.msk.bf16.mxu0 %vm3053_vm5, %v3019_v15  ;;  %v5277_v17 = vsel %vm2993_vm3, %v5245_v51, %v5021_v58  ;;  %v2825_v59 = vsel %vm2795_vm12, %v2792_v50, %v9623_v25  ;;  %v2827_v6 = vsel %vm2795_vm12, %v2794_v55, %v9624_v21 }
 0x2af   :  { %v5512_v2 = vadd.f32 %v5511_v61, %v5481_v54  ;;  %5966 = vmatmul.mubr.msk.bf16.gmra.mrb[24].mxu0 %vm3053_vm5, %v3021_v62  ;;  %v2858_v28 = vsel %vm2828_vm13, %v2825_v59, %v9625_v18 }
 0x2b0   :  { %v5019_v11 = vpop.permute.xlu1 %5018 }
 0x2b1   :  { %v5275_v3 = vsel %vm2993_vm3, %v5243_v33, %v5019_v11  ;;  %v9282_v56 = vpop.permute.xlu0 %3998  ;;  %v5513_v35 = vadd.f32 %v5512_v2, %v5482_v32  ;;  %v2860_v32 = vsel %vm2828_vm13, %v2827_v6, %v9626_v42 }
 0x2b2   :  { %6003 = vmatprep.mubr.msk.bf16.mxu1 %vm3053_vm5, %v5275_v3 }
 0x2b3   :  { %6004 = vmatmul.mubr.msk.bf16.gmra.mrb[24].mxu1 %vm3053_vm5, %v5277_v17 }
 0x2b4   :  { %v3871_v27 = vpop.permute.xlu1 %3870 }
 0x2b5   :  { %v9286_v23 = vpop.permute.xlu0 %4110  ;;  %v5055_v2 = vsel %vm2762_vm11, %v8929_v53, %v3871_v27 }
 0x2b6   :  { %v5087_v53 = vsel %vm2795_vm12, %v5055_v2, %v9282_v56 }
 0x2b7   :  { %v5119_v38 = vsel %vm2828_vm13, %v5087_v53, %v9286_v23 }
 0x2b8   :  { %v9288_v10 = vpop.permute.xlu1 %3872 }
 0x2b9   :  { %v9290_v0 = vpop.permute.xlu0 %4382 }
 0x2bc   :  { %v9292_v49 = vpop.permute.xlu1 %4000 }
 0x2bd   :  { %v9294_v44 = vpop.permute.xlu0 %4384 }
 0x2c0   :  { %v9296_v36 = vpop.permute.xlu1 %4112 }
 0x2c1   :  { %v2249_v41 = vpop.permute.xlu0 %2248 }
 0x2c4   :  { %v2247_v30 = vpop.permute.xlu1 %2246 }
 0x2c5   :  { %v9298_v63 = vpop.permute.xlu0 %4512 }
 0x2c8   :  { %v9300_v5 = vpop.permute.xlu1 %4510 }
 0x2c9   :  { %v2361_v12 = vpop.permute.xlu0 %2360 }
 0x2cc   :  { %v2359_v13 = vpop.permute.xlu1 %2358 }
 0x2cd   :  { %v5951_v31 = vpop.f32.mrb[8].mxu0  ;;  %v9302_v1 = vpop.permute.xlu0 %4624 }
 0x2ce   :  { %v3156_v19 = vpop.f32.mrb[9].mxu0  ;;  %v3165_v34 = vadd.f32 %v5951_v31, %v9162_v60  ;;  %v9627_v31 = vld [vmem:[#allocation74_spill] sm:$0xff] }
 0x2cf   :  { %v3157_v47 = vadd.f32 %v9162_v60, %v3156_v19  ;;  %v5952_v43 = vpop.f32.mrb[10].mxu0  ;;  %v2891_v19 = vsel %vm2861_vm14, %v2858_v28, %v9627_v31 }
 0x2d0   :  { %v4623_v40 = vpop.permute.xlu1 %4622  ;;  %v3159_v57 = vpop.f32.mrb[11].mxu0  ;;  %v3168_v39 = vadd.f32 %v5952_v43, %v9162_v60  ;;  %v3261_v29 = vmax.f32 %v3165_v34, 0.0 }
 0x2d1   :  { %v3259_v22 = vmax.f32 %v3157_v47, 0.0  ;;  %v3160_v37 = vadd.f32 %v9162_v60, %v3159_v57  ;;  %v5989_v46 = vpop.f32.mrb[8].mxu1  ;;  %v2633_v9 = vpop.permute.xlu0 %2632  ;;  %v9628_v47 = vld [vmem:[#allocation77_spill] sm:$0xff] }
 0x2d2   :  { %v5380_v20 = vpop.f32.mrb[9].mxu1  ;;  %v5389_v61 = vadd.f32 %v5989_v46, %v9162_v60  ;;  %v3262_v51 = vmax.f32 %v3168_v39, 0.0  ;;  %v2893_v43 = vsel %vm2861_vm14, %v2860_v32, %v9628_v47 }
 0x2d3   :  { %v3290_v8 = vadd.f32 %v3289_v7, %v3259_v22  ;;  %v3260_v26 = vmax.f32 %v3160_v37, 0.0  ;;  %v5381_v24 = vadd.f32 %v9162_v60, %v5380_v20  ;;  %v5990_v16 = vpop.f32.mrb[10].mxu1  ;;  %v2926_v57 = vsel %vm2894_vm15, %v2893_v43, %v2249_v41 }
 0x2d4   :  { %v2631_v48 = vpop.permute.xlu1 %2630  ;;  %v5383_v62 = vpop.f32.mrb[11].mxu1  ;;  %v5392_v17 = vadd.f32 %v5990_v16, %v9162_v60  ;;  %v5485_v22 = vmax.f32 %v5389_v61, 0.0  ;;  %v2959_v27 = vsel %vm2927_vm1, %v2926_v57, %v2361_v12  ;;  %v5057_v41 = vsel %vm2762_vm11, %v8949_v14, %v9288_v10 }
 0x2d5   :  { %v3291_v54 = vadd.f32 %v3290_v8, %v3260_v26  ;;  %v5483_v15 = vmax.f32 %v5381_v24, 0.0  ;;  %v5384_v58 = vadd.f32 %v9162_v60, %v5383_v62  ;;  %v4897_v7 = vpop.permute.xlu0 %4896  ;;  %v2992_v20 = vsel %vm2960_vm2, %v2959_v27, %v2633_v9 }
 0x2d6   :  { %v5486_v50 = vmax.f32 %v5392_v17, 0.0  ;;  %v5089_v12 = vsel %vm2795_vm12, %v5057_v41, %v9292_v49 }
 0x2d7   :  { %v3292_v33 = vadd.f32 %v3291_v54, %v3261_v29  ;;  %v5514_v11 = vadd.f32 %v5513_v35, %v5483_v15  ;;  %v5484_v3 = vmax.f32 %v5384_v58, 0.0  ;;  %v2924_v35 = vsel %vm2894_vm15, %v2891_v19, %v2247_v30 }
 0x2d8   :  { %v4895_v34 = vpop.permute.xlu1 %4894  ;;  %v2957_v52 = vsel %vm2927_vm1, %v2924_v35, %v2359_v13  ;;  %v5151_v13 = vsel %vm2861_vm14, %v5119_v38, %v9290_v0  ;;  %v5121_v14 = vsel %vm2828_vm13, %v5089_v12, %v9296_v36 }
 0x2d9   :  { %v5515_v37 = vadd.f32 %v5514_v11, %v5484_v3  ;;  %v2761_v46 = vpop.permute.xlu0 %2760  ;;  %v3293_v4 = vadd.f32 %v3292_v33, %v3262_v51  ;;  %v2990_v45 = vsel %vm2960_vm2, %v2957_v52, %v2631_v48  ;;  %v5183_v23 = vsel %vm2894_vm15, %v5151_v13, %v9300_v5 }
 0x2da   :  { %v3025_v30 = vsel %vm2993_vm3, %v2992_v20, %v2761_v46  ;;  %v5215_v10 = vsel %vm2927_vm1, %v5183_v23, %v4623_v40  ;;  %v5153_v0 = vsel %vm2861_vm14, %v5121_v14, %v9294_v44 }
 0x2db   :  { %v5516_v39 = vadd.f32 %v5515_v37, %v5485_v22  ;;  %v5247_v49 = vsel %vm2960_vm2, %v5215_v10, %v4895_v34  ;;  %v5185_v36 = vsel %vm2894_vm15, %v5153_v0, %v9298_v63 }
 0x2dc   :  { %v2759_v56 = vpop.permute.xlu1 %2758  ;;  %v5217_v5 = vsel %vm2927_vm1, %v5185_v36, %v9302_v1 }
 0x2dd   :  { %v3023_v9 = vsel %vm2993_vm3, %v2990_v45, %v2759_v56  ;;  %v5517_v55 = vadd.f32 %v5516_v39, %v5486_v50  ;;  %v5249_v40 = vsel %vm2960_vm2, %v5217_v5, %v4897_v7 }
 0x2de   :  { %5969 = vmatprep.mubr.msk.bf16.mxu0 %vm3053_vm5, %v3023_v9 }
 0x2df   :  { %5970 = vmatmul.mubr.msk.bf16.gmra.mrb[28].mxu0 %vm3053_vm5, %v3025_v30 }
 0x2e0   :  { %v5023_v8 = vpop.permute.xlu1 %5022 }
 0x2e1   :  { %v5279_v26 = vsel %vm2993_vm3, %v5247_v49, %v5023_v8 }
 0x2e2   :  { %6007 = vmatprep.mubr.msk.bf16.mxu1 %vm3053_vm5, %v5279_v26 }
 0x2e4   :  { %v5025_v24 = vpop.permute.xlu1 %5024 }
 0x2e5   :  { %v5281_v16 = vsel %vm2993_vm3, %v5249_v40, %v5025_v24 }
 0x2e6   :  { %6008 = vmatmul.mubr.msk.bf16.gmra.mrb[28].mxu1 %vm3053_vm5, %v5281_v16 }
 0x2f9   :  { %v5955_v25 = vpop.f32.mrb[12].mxu0 }
 0x2fa   :  { %v3172_v59 = vpop.f32.mrb[13].mxu0  ;;  %v3181_v6 = vadd.f32 %v5955_v25, %v9162_v60 }
 0x2fb   :  { %v3173_v44 = vadd.f32 %v9162_v60, %v3172_v59  ;;  %v5956_v21 = vpop.f32.mrb[14].mxu0 }
 0x2fc   :  { %v3175_v63 = vpop.f32.mrb[15].mxu0  ;;  %v3184_v1 = vadd.f32 %v5956_v21, %v9162_v60  ;;  %v3265_v18 = vmax.f32 %v3181_v6, 0.0 }
 0x2fd   :  { %v3263_v29 = vmax.f32 %v3173_v44, 0.0  ;;  %v3176_v48 = vadd.f32 %v9162_v60, %v3175_v63  ;;  %v5993_v62 = vpop.f32.mrb[12].mxu1 }
 0x2fe   :  { %v5396_v54 = vpop.f32.mrb[13].mxu1  ;;  %v5405_v32 = vadd.f32 %v5993_v62, %v9162_v60  ;;  %v3266_v33 = vmax.f32 %v3184_v1, 0.0 }
 0x2ff   :  { %v3294_v61 = vadd.f32 %v3293_v4, %v3263_v29  ;;  %v3264_v15 = vmax.f32 %v3176_v48, 0.0  ;;  %v5397_v58 = vadd.f32 %v9162_v60, %v5396_v54  ;;  %v5994_v7 = vpop.f32.mrb[14].mxu1 }
 0x300   :  { %v5399_v28 = vpop.f32.mrb[15].mxu1  ;;  %v5408_v3 = vadd.f32 %v5994_v7, %v9162_v60  ;;  %v5489_v47 = vmax.f32 %v5405_v32, 0.0 }
 0x301   :  { %v3295_v42 = vadd.f32 %v3294_v61, %v3264_v15  ;;  %v5487_v2 = vmax.f32 %v5397_v58, 0.0  ;;  %v5400_v51 = vadd.f32 %v9162_v60, %v5399_v28 }
 0x302   :  { %v5490_v57 = vmax.f32 %v5408_v3, 0.0 }
 0x303   :  { %v3296_v11 = vadd.f32 %v3295_v42, %v3265_v18  ;;  %v5518_v17 = vadd.f32 %v5517_v55, %v5487_v2  ;;  %v5488_v31 = vmax.f32 %v5400_v51, 0.0 }
 0x305   :  { %v3297_v19 = vadd.f32 %v3296_v11, %v3266_v33  ;;  %v5519_v43 = vadd.f32 %v5518_v17, %v5488_v31 }
 0x307   :  { %v3298_v34 = vrot.slane %v3297_v19, 4  ;;  %v5520_v22 = vadd.f32 %v5519_v43, %v5489_v47 }
 0x309   :  { %v3299_v37 = vadd.f32 %v3298_v34, %v3297_v19  ;;  %v5521_v46 = vadd.f32 %v5520_v22, %v5490_v57 }
 0x30b   :  { %v3300_v4 = vrot.slane %v3299_v37, 2  ;;  %v5522_v53 = vrot.slane %v5521_v46, 4 }
 0x30d   :  { %v5523_v35 = vadd.f32 %v5522_v53, %v5521_v46  ;;  %v3301_v27 = vadd.f32 %v3300_v4, %v3299_v37 }
 0x30f   :  { %v5524_v52 = vrot.slane %v5523_v35, 2  ;;  %v3302_v50 = vrot.slane %v3301_v27, 1 }
 0x311   :  { %v5525_v39 = vadd.f32 %v5524_v52, %v5523_v35  ;;  %v3303_v41 = vadd.f32 %v3302_v50, %v3301_v27 }
 0x313   :  { %v5526_v20 = vrot.slane %v5525_v39, 1 }
 0x315   :  { %v5527_v38 = vadd.f32 %v5526_v20, %v5525_v39 }
 0x317   :  { %v9378_v45 = vadd.f32 %v5527_v38, %v3303_v41 }
 0x322   :  { %v5959_v56 = vpop.f32.mrb[16].mxu0 }
 0x323   :  { %v3188_v30 = vpop.f32.mrb[17].mxu0  ;;  %v3197_v55 = vadd.f32 %v5959_v56, %v9162_v60 }
 0x324   :  { %v3189_v12 = vadd.f32 %v9162_v60, %v3188_v30  ;;  %v5960_v13 = vpop.f32.mrb[18].mxu0 }
 0x325   :  { %v3191_v9 = vpop.f32.mrb[19].mxu0  ;;  %v3200_v10 = vadd.f32 %v5960_v13, %v9162_v60  ;;  %v3269_v40 = vmax.f32 %v3197_v55, 0.0 }
 0x326   :  { %v3192_v14 = vadd.f32 %v9162_v60, %v3191_v9  ;;  %v5997_v23 = vpop.f32.mrb[16].mxu1  ;;  %v3267_v8 = vmax.f32 %v3189_v12, 0.0 }
 0x327   :  { %v5412_v49 = vpop.f32.mrb[17].mxu1  ;;  %v5421_v16 = vadd.f32 %v5997_v23, %v9162_v60  ;;  %v3270_v59 = vmax.f32 %v3200_v10, 0.0 }
 0x328   :  { %v3268_v0 = vmax.f32 %v3192_v14, 0.0  ;;  %v5413_v26 = vadd.f32 %v9162_v60, %v5412_v49  ;;  %v5998_v36 = vpop.f32.mrb[18].mxu1 }
 0x329   :  { %v5415_v5 = vpop.f32.mrb[19].mxu1  ;;  %v5424_v6 = vadd.f32 %v5998_v36, %v9162_v60  ;;  %v5493_v29 = vmax.f32 %v5421_v16, 0.0 }
 0x32a   :  { %v3304_v24 = vadd.f32 %v3268_v0, %v3267_v8  ;;  %v5416_v25 = vadd.f32 %v9162_v60, %v5415_v5  ;;  %v5491_v21 = vmax.f32 %v5413_v26, 0.0 }
 0x32b   :  { %v5494_v1 = vmax.f32 %v5424_v6, 0.0 }
 0x32c   :  { %v3305_v44 = vadd.f32 %v3304_v24, %v3269_v40  ;;  %v5492_v63 = vmax.f32 %v5416_v25, 0.0 }
 0x32e   :  { %v5528_v48 = vadd.f32 %v5492_v63, %v5491_v21  ;;  %v3306_v62 = vadd.f32 %v3305_v44, %v3270_v59 }
 0x330   :  { %v5529_v54 = vadd.f32 %v5528_v48, %v5493_v29 }
 0x332   :  { %v5530_v61 = vadd.f32 %v5529_v54, %v5494_v1 }
 0x352   :  { %v5963_v15 = vpop.f32.mrb[20].mxu0 }
 0x353   :  { %v3204_v58 = vpop.f32.mrb[21].mxu0  ;;  %v3213_v28 = vadd.f32 %v5963_v15, %v9162_v60 }
 0x354   :  { %v3205_v7 = vadd.f32 %v9162_v60, %v3204_v58  ;;  %v5964_v18 = vpop.f32.mrb[22].mxu0 }
 0x355   :  { %v3207_v42 = vpop.f32.mrb[23].mxu0  ;;  %v3216_v33 = vadd.f32 %v5964_v18, %v9162_v60  ;;  %v3273_v47 = vmax.f32 %v3213_v28, 0.0 }
 0x356   :  { %v3271_v32 = vmax.f32 %v3205_v7, 0.0  ;;  %v3208_v2 = vadd.f32 %v9162_v60, %v3207_v42  ;;  %v6001_v51 = vpop.f32.mrb[20].mxu1 }
 0x357   :  { %v5428_v11 = vpop.f32.mrb[21].mxu1  ;;  %v5437_v57 = vadd.f32 %v6001_v51, %v9162_v60  ;;  %v3274_v46 = vmax.f32 %v3216_v33, 0.0 }
 0x358   :  { %v3307_v17 = vadd.f32 %v3306_v62, %v3271_v32  ;;  %v3272_v3 = vmax.f32 %v3208_v2, 0.0  ;;  %v5429_v31 = vadd.f32 %v9162_v60, %v5428_v11  ;;  %v6002_v19 = vpop.f32.mrb[22].mxu1 }
 0x359   :  { %v5431_v43 = vpop.f32.mrb[23].mxu1  ;;  %v5440_v35 = vadd.f32 %v6002_v19, %v9162_v60  ;;  %v5497_v52 = vmax.f32 %v5437_v57, 0.0 }
 0x35a   :  { %v3308_v34 = vadd.f32 %v3307_v17, %v3272_v3  ;;  %v5495_v22 = vmax.f32 %v5429_v31, 0.0  ;;  %v5432_v37 = vadd.f32 %v9162_v60, %v5431_v43 }
 0x35b   :  { %v5498_v20 = vmax.f32 %v5440_v35, 0.0 }
 0x35c   :  { %v3309_v4 = vadd.f32 %v3308_v34, %v3273_v47  ;;  %v5531_v53 = vadd.f32 %v5530_v61, %v5495_v22  ;;  %v5496_v27 = vmax.f32 %v5432_v37, 0.0 }
 0x35e   :  { %v5532_v50 = vadd.f32 %v5531_v53, %v5496_v27  ;;  %v3310_v39 = vadd.f32 %v3309_v4, %v3274_v46 }
 0x360   :  { %v5533_v41 = vadd.f32 %v5532_v50, %v5497_v52 }
 0x362   :  { %v5534_v38 = vadd.f32 %v5533_v41, %v5498_v20 }
 0x382   :  { %v5967_v56 = vpop.f32.mrb[24].mxu0 }
 0x383   :  { %v3220_v30 = vpop.f32.mrb[25].mxu0  ;;  %v3229_v9 = vadd.f32 %v5967_v56, %v9162_v60 }
 0x384   :  { %v3221_v12 = vadd.f32 %v9162_v60, %v3220_v30  ;;  %v5968_v13 = vpop.f32.mrb[26].mxu0 }
 0x385   :  { %v3223_v55 = vpop.f32.mrb[27].mxu0  ;;  %v3232_v49 = vadd.f32 %v5968_v13, %v9162_v60  ;;  %v3277_v40 = vmax.f32 %v3229_v9, 0.0 }
 0x386   :  { %v3275_v14 = vmax.f32 %v3221_v12, 0.0  ;;  %v3224_v23 = vadd.f32 %v9162_v60, %v3223_v55  ;;  %v6005_v10 = vpop.f32.mrb[24].mxu1 }
 0x387   :  { %v5444_v8 = vpop.f32.mrb[25].mxu1  ;;  %v5453_v25 = vadd.f32 %v6005_v10, %v9162_v60  ;;  %v3278_v21 = vmax.f32 %v3232_v49, 0.0 }
 0x388   :  { %v3311_v0 = vadd.f32 %v3310_v39, %v3275_v14  ;;  %v3276_v26 = vmax.f32 %v3224_v23, 0.0  ;;  %v5445_v36 = vadd.f32 %v9162_v60, %v5444_v8  ;;  %v6006_v5 = vpop.f32.mrb[26].mxu1 }
 0x389   :  { %v5447_v24 = vpop.f32.mrb[27].mxu1  ;;  %v5456_v29 = vadd.f32 %v6006_v5, %v9162_v60  ;;  %v5501_v62 = vmax.f32 %v5453_v25, 0.0 }
 0x38a   :  { %v3312_v16 = vadd.f32 %v3311_v0, %v3276_v26  ;;  %v5499_v59 = vmax.f32 %v5445_v36, 0.0  ;;  %v5448_v44 = vadd.f32 %v9162_v60, %v5447_v24 }
 0x38b   :  { %v5502_v61 = vmax.f32 %v5456_v29, 0.0 }
 0x38c   :  { %v3313_v6 = vadd.f32 %v3312_v16, %v3277_v40  ;;  %v5535_v63 = vadd.f32 %v5534_v38, %v5499_v59  ;;  %v5500_v48 = vmax.f32 %v5448_v44, 0.0 }
 0x38e   :  { %v5536_v1 = vadd.f32 %v5535_v63, %v5500_v48  ;;  %v3314_v54 = vadd.f32 %v3313_v6, %v3278_v21 }
 0x390   :  { %v5537_v15 = vadd.f32 %v5536_v1, %v5501_v62 }
 0x392   :  { %v5538_v58 = vadd.f32 %v5537_v15, %v5502_v61 }
 0x3b2   :  { %v5971_v7 = vpop.f32.mrb[28].mxu0 }
 0x3b3   :  { %v3236_v18 = vpop.f32.mrb[29].mxu0  ;;  %v3245_v2 = vadd.f32 %v5971_v7, %v9162_v60 }
 0x3b4   :  { %v3237_v28 = vadd.f32 %v9162_v60, %v3236_v18  ;;  %v5972_v42 = vpop.f32.mrb[30].mxu0 }
 0x3b5   :  { %v3239_v32 = vpop.f32.mrb[31].mxu0  ;;  %v3248_v17 = vadd.f32 %v5972_v42, %v9162_v60  ;;  %v3281_v19 = vmax.f32 %v3245_v2, 0.0 }
 0x3b6   :  { %v3279_v51 = vmax.f32 %v3237_v28, 0.0  ;;  %v3240_v33 = vadd.f32 %v9162_v60, %v3239_v32 }
 0x3b7   :  { %v3282_v22 = vmax.f32 %v3248_v17, 0.0 }
 0x3b8   :  { %v3315_v11 = vadd.f32 %v3314_v54, %v3279_v51  ;;  %v3280_v3 = vmax.f32 %v3240_v33, 0.0 }
 0x3b9   :  { %v6009_v31 = vpop.f32.mrb[28].mxu1 }
 0x3ba   :  { %v3316_v47 = vadd.f32 %v3315_v11, %v3280_v3  ;;  %v5460_v43 = vpop.f32.mrb[29].mxu1  ;;  %v5469_v4 = vadd.f32 %v6009_v31, %v9162_v60 }
 0x3bb   :  { %v5461_v34 = vadd.f32 %v9162_v60, %v5460_v43  ;;  %v6010_v57 = vpop.f32.mrb[30].mxu1 }
 0x3bc   :  { %v3317_v37 = vadd.f32 %v3316_v47, %v3281_v19  ;;  %v5463_v46 = vpop.f32.mrb[31].mxu1  ;;  %v5472_v50 = vadd.f32 %v6010_v57, %v9162_v60  ;;  %v5505_v41 = vmax.f32 %v5469_v4, 0.0 }
 0x3bd   :  { %v5503_v53 = vmax.f32 %v5461_v34, 0.0  ;;  %v5464_v35 = vadd.f32 %v9162_v60, %v5463_v46  ;;  %v5551_v60 = vmul.f32 0.00390625, %v9378_v45 }
 0x3be   :  { %v3318_v27 = vadd.f32 %v3317_v37, %v3282_v22  ;;  %v5506_v30 = vmax.f32 %v5472_v50, 0.0 }
 0x3bf   :  { %v5539_v52 = vadd.f32 %v5538_v58, %v5503_v53  ;;  %v5504_v39 = vmax.f32 %v5464_v35, 0.0 }
 0x3c0   :  { %v3319_v20 = vrot.slane %v3318_v27, 4 }
 0x3c1   :  { %v5540_v38 = vadd.f32 %v5539_v52, %v5504_v39 }
 0x3c2   :  { %v3320_v56 = vadd.f32 %v3319_v20, %v3318_v27 }
 0x3c3   :  { %v5541_v12 = vadd.f32 %v5540_v38, %v5505_v41 }
 0x3c4   :  { %v3321_v13 = vrot.slane %v3320_v56, 2 }
 0x3c5   :  { %v5542_v9 = vadd.f32 %v5541_v12, %v5506_v30 }
 0x3c6   :  { %v3322_v23 = vadd.f32 %v3321_v13, %v3320_v56 }
 0x3c7   :  { %v5543_v55 = vrot.slane %v5542_v9, 4 }
 0x3c8   :  { %v3323_v49 = vrot.slane %v3322_v23, 1 }
 0x3c9   :  { %v5544_v14 = vadd.f32 %v5543_v55, %v5542_v9 }
 0x3ca   :  { %v3324_v26 = vadd.f32 %v3323_v49, %v3322_v23 }
 0x3cb   :  { %v5545_v10 = vrot.slane %v5544_v14, 2 }
 0x3cd   :  { %v5546_v8 = vadd.f32 %v5545_v10, %v5544_v14 }
 0x3cf   :  { %v5547_v0 = vrot.slane %v5546_v8, 1 }
 0x3d1   :  { %v5548_v36 = vadd.f32 %v5547_v0, %v5546_v8 }
 0x3d3   :  { %v5550_v5 = vadd.f32 %v5548_v36, %v3324_v26 }
 0x3d5   :  { %v5552_v40 = vmul.f32 0.00390625, %v5550_v5 }
 0x3d7   :  { %v5556_v24 = vsel %vm5555_vm0, %v5552_v40, %v5551_v60 }
 0x3d8   :  { %5558 = vst [vmem:[#allocation3] sm:$0x3] %v5556_v24 }
 0x3d9   :  { %6299 = shalt.err (!%p6296_p4)
}
 0x3da   :  { %s6300_s26 = scalar_lea.hbm %s9428_s3, 32 }
 0x3db   :  { %p6301_p5 = scmp.ne.s32.totalorder %s9428_s3, %s6300_s26  ;;  %p6304_p6 = scmp.lt.u32.totalorder %s6300_s26, %s9428_s3 }
 0x3dd   :  { %p6306_p7 = pnand %p6304_p6, %p6301_p5 }
 0x3df   :  { %6309 = shalt.err (!%p6306_p7)
}
 0x3e0   :  { %5568 = dma.vmem_to_hbm [thread:$0]  %s5566_s16, 32, %s9428_s3, [#allocation4]  }
 0x3e1   :  { %6310 = dma.done.wait [#allocation4], 32  }
 0x3e2   :  { %6311 = vsyncadd [#allocation4], 4294967264 }
 0x3e3   :  { %5572 = vsyncpa [#allocation4], 1 }

</bundles_post_ra>
